<compile_context>
chip_gen: v5e
topology: v5e:2x2
jax: 0.10.0
libtpu: 0.0.40
codegen_flags: <defaults>
</compile_context>

<pallas_src>
import jax
import jax.numpy as jnp
from jax.experimental import pallas as pl
from jax.experimental.pallas import tpu as pltpu


def _round_up(v, m):
    return ((v + m - 1) // m) * m


# ----------------------------------------------------------------------------
# Fused kernel factory: all GRU layers + MLP head in one kernel invocation.
# ----------------------------------------------------------------------------
def _make_encoder_kernel(T, TB, Hp, layers, unroll):
    """Builds a kernel operating on one batch tile of TB sequences."""

    def kernel(*refs):
        # ---- unpack refs -----------------------------------------------------
        x_ref, len_ref, noise_ref = refs[0:3]      # (T*TB, D) bf16, (TB,1) i32, (TB,E) bf16
        pos = 3
        layer_refs = []
        for _ in range(layers):
            layer_refs.append(refs[pos:pos + 4])   # w_ih, w_hh, b_ih, b_hh
            pos += 4
        w1h_ref, w1e_ref, b1_ref, w2_ref, b2_ref = refs[pos:pos + 5]
        pos += 5
        out_ref = refs[pos]                        # (TB, Zp) f32
        pos += 1
        gates_ref = refs[pos]                      # (T*TB, 3*Hp) f32
        pos += 1
        y_ref = refs[pos] if layers > 1 else None  # (T*TB, Hp) bf16

        lengths = len_ref[...]                     # (TB, 1) int32

        h_last = jnp.zeros((TB, Hp), jnp.float32)
        for l in range(layers):
            wih_ref, whh_ref, bih_ref, bhh_ref = layer_refs[l]
            is_last = (l == layers - 1)

            # Layer input, flattened over (t, batch-in-tile): row = t*TB + j.
            inp2 = x_ref[...] if l == 0 else y_ref[...]          # bf16

            # Hoisted input-to-hidden projection for ALL timesteps: one fused
            # (T*TB, D) @ (D, 3*Hp) MXU matmul, input bias folded in.
            gates_ref[...] = (jnp.dot(inp2, wih_ref[...],
                                      preferred_element_type=jnp.float32)
                              + bih_ref[...])

            whh_v = whh_ref[...]                                 # (Hp, 3Hp) bf16
            bhh_v = bhh_ref[...]                                 # (1, 3Hp) f32

            def step(t, h):
                off = pl.multiple_of(t * TB, TB)   # TB % 8 == 0 => sublane aligned
                gi = gates_ref[pl.ds(off, TB), :]                # (TB, 3Hp)
                gh = (jnp.dot(h.astype(jnp.bfloat16), whh_v,
                              preferred_element_type=jnp.float32) + bhh_v)
                # PyTorch GRU gate math (r, z, n); gate math stays f32.
                # Gate slabs sit at 128-lane-aligned offsets k*Hp.
                r = jax.nn.sigmoid(gi[:, 0:Hp] + gh[:, 0:Hp])
                z = jax.nn.sigmoid(gi[:, Hp:2 * Hp] + gh[:, Hp:2 * Hp])
                n = jnp.tanh(gi[:, 2 * Hp:3 * Hp] + r * gh[:, 2 * Hp:3 * Hp])
                h_new = (1.0 - z) * n + z * h
                # packed-sequence semantics: freeze hidden once t >= T_in[b].
                h_next = jnp.where(t < lengths, h_new, h)
                if not is_last:
                    # Non-final layers keep the full output sequence in VMEM
                    # scratch (bf16 - it is only a matmul operand next layer).
                    y_ref[pl.ds(off, TB), :] = h_next.astype(jnp.bfloat16)
                return h_next

            h_last = jax.lax.fori_loop(0, T, step,
                                       jnp.zeros((TB, Hp), jnp.float32),
                                       unroll=unroll)

        # ---- fused MLP head: Linear(H+E -> H) -> LeakyReLU(0.1) -> Linear(H -> Z)
        hid = (jnp.dot(h_last.astype(jnp.bfloat16), w1h_ref[...],
                       preferred_element_type=jnp.float32)
               + jnp.dot(noise_ref[...], w1e_ref[...],
                         preferred_element_type=jnp.float32)
               + b1_ref[...])
        hid = jnp.where(hid > 0, hid, 0.1 * hid)
        out_ref[...] = (jnp.dot(hid.astype(jnp.bfloat16), w2_ref[...],
                                preferred_element_type=jnp.float32)
                        + b2_ref[...])

    return kernel


def _invariant_spec(shape):
    """Whole-array, grid-invariant weight block; single-buffered if supported."""
    idx = lambda b: (0, 0)
    try:
        return pl.BlockSpec(shape, idx, pipeline_mode=pl.Buffered(1))
    except TypeError:  # older JAX without pipeline_mode kwarg
        return pl.BlockSpec(shape, idx)


def _encoder_pallas(x_tiles, lengths, noise, flat_w, *, layers, Hp, Zp, TB,
                    vmem_limit):
    """x_tiles: (nb, T*TB, D) bf16, lengths: (B_pad, 1) i32, noise: (B_pad, E) bf16."""
    nb, TTB, D0 = x_tiles.shape
    T = TTB // TB
    E = noise.shape[1]
    B_pad = nb * TB

    unroll = True if T <= 16 else 4
    kernel = _make_encoder_kernel(T, TB, Hp, layers, unroll)

    in_specs = [
        # one batch tile of the flattened, time-major input (leading dim squeezed)
        pl.BlockSpec((None, T * TB, D0), lambda b: (b, 0, 0)),
        pl.BlockSpec((TB, 1), lambda b: (b, 0)),
        pl.BlockSpec((TB, E), lambda b: (b, 0)),
    ]
    # weights / biases: whole-array VMEM residency, single-buffered.
    in_specs += [_invariant_spec(w.shape) for w in flat_w]

    scratch_shapes = [pltpu.VMEM((T * TB, 3 * Hp), jnp.float32)]   # fused gates
    if layers > 1:
        scratch_shapes.append(pltpu.VMEM((T * TB, Hp), jnp.bfloat16))  # inter-layer y

    return pl.pallas_call(
        kernel,
        out_shape=jax.ShapeDtypeStruct((B_pad, Zp), jnp.float32),
        grid=(nb,),
        in_specs=in_specs,
        out_specs=pl.BlockSpec((TB, Zp), lambda b: (b, 0)),
        scratch_shapes=scratch_shapes,
        compiler_params=pltpu.CompilerParams(
            dimension_semantics=("parallel",),
            vmem_limit_bytes=vmem_limit,
        ),
    )(x_tiles, lengths, noise, *flat_w)


# ----------------------------------------------------------------------------
# Parameter construction (arrays only — no Python scalars in the traced pytree).
# ----------------------------------------------------------------------------
def init_encoder_params(key, Z_dim, S_dim, F_dim, eta_dim, nhidden, layers):
    Zcat = F_dim + S_dim
    k = 1.0 / (nhidden ** 0.5)
    gru = []
    for l in range(layers):
        d_in = Zcat if l == 0 else nhidden
        key, *ks = jax.random.split(key, 13)
        names = ("w_ir", "w_iz", "w_in", "w_hr", "w_hz", "w_hn",
                 "b_ir", "b_iz", "b_in", "b_hr", "b_hz", "b_hn")
        shapes = ((d_in, nhidden),) * 3 + ((nhidden, nhidden),) * 3 \
                 + ((nhidden,),) * 6
        gru.append({n: jax.random.uniform(kk, s, jnp.float32, -k, k)
                    for n, kk, s in zip(names, ks, shapes)})
    key, k1, k2, k3, k4 = jax.random.split(key, 5)
    kl1 = 1.0 / ((nhidden + eta_dim) ** 0.5)
    kl2 = 1.0 / (nhidden ** 0.5)
    return {
        "gru": gru,
        "w1": jax.random.uniform(k1, (nhidden + eta_dim, nhidden), jnp.float32,
                                 -kl1, kl1),
        "b1": jax.random.uniform(k2, (nhidden,), jnp.float32, -kl1, kl1),
        "w2": jax.random.uniform(k3, (nhidden, Z_dim), jnp.float32, -kl2, kl2),
        "b2": jax.random.uniform(k4, (Z_dim,), jnp.float32, -kl2, kl2),
    }


# ----------------------------------------------------------------------------
# Full forward. All config is derived from static shapes (jit-safe).
# ----------------------------------------------------------------------------
@jax.jit
def encoder_forward(params, x, s, T_in, noise):
    """x: (B, T, F) f32, s: (B, T, S) f32 or None, T_in: (B,) lengths,
    noise: (B, eta) f32 (rsample output). Returns (B, Z_dim)."""
    H = params["w2"].shape[0]
    Z = params["w2"].shape[1]
    layers = len(params["gru"])

    x = x.astype(jnp.float32)
    if s is not None and s.shape[-1] > 0:               # static shape check
        x = jnp.concatenate([x, s.astype(jnp.float32)], axis=-1)

    B, T, D0 = x.shape
    E = noise.shape[1]

    Hp = _round_up(H, 128)                              # lane-dense hidden width
    Zp = _round_up(Z, 128)                              # lane-dense head output

    # Batch padding / tiling: padded rows have length 0 (free); keep >= 2 tiles
    # so both TensorCores are used on v7x, and grow tiles for larger batches.
    if B >= 64:
        B_pad = _round_up(B, 64)
    else:
        B_pad = max(16, _round_up(B, 8))
    TB = next(t for t in (128, 64, 32, 16, 8)
              if B_pad % t == 0 and B_pad // t >= 2)
    nb = B_pad // TB

    pad = B_pad - B
    lengths = T_in.astype(jnp.int32)
    noise_b = noise.astype(jnp.bfloat16)
    if pad:
        x = jnp.pad(x, ((0, pad), (0, 0), (0, 0)))
        lengths = jnp.pad(lengths, (0, pad))            # padded rows: len 0 -> h stays 0
        noise_b = jnp.pad(noise_b, ((0, pad), (0, 0)))
    lengths = lengths.reshape(B_pad, 1)

    # bf16, time-major flattened batch tiles (row = t*TB + j): halves input DMA.
    x_tiles = (x.astype(jnp.bfloat16)
                 .reshape(nb, TB, T, D0)
                 .transpose(0, 2, 1, 3)
                 .reshape(nb, T * TB, D0))

    # ---- pack gate weights: each gate slab starts at a 128-lane-aligned k*Hp.
    def pack_w(wr, wz, wn, rows):
        d = wr.shape[0]
        w = jnp.zeros((rows, 3 * Hp), jnp.float32)
        w = w.at[:d, 0:H].set(wr)
        w = w.at[:d, Hp:Hp + H].set(wz)
        w = w.at[:d, 2 * Hp:2 * Hp + H].set(wn)
        return w.astype(jnp.bfloat16)

    def pack_b(br, bz, bn):
        b = jnp.zeros((1, 3 * Hp), jnp.float32)
        b = b.at[0, 0:H].set(br)
        b = b.at[0, Hp:Hp + H].set(bz)
        b = b.at[0, 2 * Hp:2 * Hp + H].set(bn)
        return b

    flat_w = []
    for l, g in enumerate(params["gru"]):
        in_rows = D0 if l == 0 else Hp
        flat_w.append(pack_w(g["w_ir"], g["w_iz"], g["w_in"], in_rows))
        flat_w.append(pack_w(g["w_hr"], g["w_hz"], g["w_hn"], Hp))
        flat_w.append(pack_b(g["b_ir"], g["b_iz"], g["b_in"]))
        flat_w.append(pack_b(g["b_hr"], g["b_hz"], g["b_hn"]))

    w1 = params["w1"]
    flat_w += [
        jnp.zeros((Hp, Hp), jnp.float32).at[:H, :H].set(w1[:H, :]).astype(jnp.bfloat16),
        jnp.zeros((E, Hp), jnp.float32).at[:, :H].set(w1[H:, :]).astype(jnp.bfloat16),
        jnp.zeros((1, Hp), jnp.float32).at[0, :H].set(params["b1"]),
        jnp.zeros((Hp, Zp), jnp.float32).at[:H, :Z].set(params["w2"]).astype(jnp.bfloat16),
        jnp.zeros((1, Zp), jnp.float32).at[0, :Z].set(params["b2"]),
    ]

    # VMEM budget derived from the actual footprint (instead of hard-coded 64 MiB).
    w_bytes = sum(int(w.size) * w.dtype.itemsize for w in flat_w)
    scratch_bytes = T * TB * 3 * Hp * 4 + (T * TB * Hp * 2 if layers > 1 else 0)
    io_bytes = 2 * (T * TB * D0 * 2 + TB * E * 2 + TB * 4 + TB * Zp * 4)
    est = scratch_bytes + io_bytes + 2 * w_bytes
    vmem_limit = int(min(max(2 * est, 32 << 20), 100 << 20))
    # TODO(synk): for very long T, tile the time axis as a trailing "arbitrary"
    # grid dimension carrying h in scratch so gates/y fit v7x's 64 MiB VMEM.

    out_pad = _encoder_pallas(x_tiles, lengths, noise_b, flat_w,
                              layers=layers, Hp=Hp, Zp=Zp, TB=TB,
                              vmem_limit=vmem_limit)
    return out_pad[:B, :Z]


if __name__ == "__main__":
    # Small shapes consistent with the module's forward.
    B, T = 2, 8
    Z_dim, S_dim, F_dim, eta_dim = 5, 2, 6, 4
    nhidden, layers = 32, 2

    key = jax.random.PRNGKey(0)
    kp, kx, ks, kn = jax.random.split(key, 4)

    params = init_encoder_params(kp, Z_dim, S_dim, F_dim, eta_dim,
                                 nhidden, layers)

    x = jax.random.normal(kx, (B, T, F_dim), jnp.float32)
    s = jax.random.normal(ks, (B, T, S_dim), jnp.float32)
    T_in = jnp.array([8, 5], dtype=jnp.int32)            # true sequence lengths
    # rsample([B, eta_dim]) stand-in: deterministic Gaussian noise.
    noise = jax.random.normal(kn, (B, eta_dim), jnp.float32)

    out = encoder_forward(params, x, s, T_in, noise)
    jax.block_until_ready(out)
    assert out.shape == (B, Z_dim)
    assert bool(jnp.all(jnp.isfinite(out)))
    print("KERNEL_OK")
</pallas_src>

<mosaic_0001>
module attributes {stable_mosaic.version = 11 : i64} {
  func.func @kernel(%arg0: i32, %arg1: memref<1x64x8xbf16, #tpu.memory_space<vmem>>, %arg2: memref<8x1xi32, #tpu.memory_space<vmem>>, %arg3: memref<8x4xbf16, #tpu.memory_space<vmem>>, %arg4: memref<8x384xbf16, #tpu.memory_space<vmem>>, %arg5: memref<128x384xbf16, #tpu.memory_space<vmem>>, %arg6: memref<1x384xf32, #tpu.memory_space<vmem>>, %arg7: memref<1x384xf32, #tpu.memory_space<vmem>>, %arg8: memref<128x384xbf16, #tpu.memory_space<vmem>>, %arg9: memref<128x384xbf16, #tpu.memory_space<vmem>>, %arg10: memref<1x384xf32, #tpu.memory_space<vmem>>, %arg11: memref<1x384xf32, #tpu.memory_space<vmem>>, %arg12: memref<128x128xbf16, #tpu.memory_space<vmem>>, %arg13: memref<4x128xbf16, #tpu.memory_space<vmem>>, %arg14: memref<1x128xf32, #tpu.memory_space<vmem>>, %arg15: memref<128x128xbf16, #tpu.memory_space<vmem>>, %arg16: memref<1x128xf32, #tpu.memory_space<vmem>>, %arg17: memref<8x128xf32, #tpu.memory_space<vmem>>, %arg18: memref<64x384xf32, #tpu.memory_space<vmem>>, %arg19: memref<64x128xbf16, #tpu.memory_space<vmem>>) attributes {dimension_semantics = [#tpu.dimension_semantics<parallel>], iteration_bounds = array<i64: 2>, scalar_prefetch = 0 : i64, scratch_operands = 2 : i64, tpu.core_type = #tpu.core_type<tc>, window_params = [{transform_indices = @transform_0, window_bounds = array<i64: 1, 64, 8>}, {transform_indices = @transform_1, window_bounds = array<i64: 8, 1>}, {transform_indices = @transform_2, window_bounds = array<i64: 8, 4>}, {pipeline_mode = #tpu.pipeline_mode<synchronous>, transform_indices = @transform_3, window_bounds = array<i64: 8, 384>}, {pipeline_mode = #tpu.pipeline_mode<synchronous>, transform_indices = @transform_4, window_bounds = array<i64: 128, 384>}, {pipeline_mode = #tpu.pipeline_mode<synchronous>, transform_indices = @transform_5, window_bounds = array<i64: 1, 384>}, {pipeline_mode = #tpu.pipeline_mode<synchronous>, transform_indices = @transform_6, window_bounds = array<i64: 1, 384>}, {pipeline_mode = #tpu.pipeline_mode<synchronous>, transform_indices = @transform_7, window_bounds = array<i64: 128, 384>}, {pipeline_mode = #tpu.pipeline_mode<synchronous>, transform_indices = @transform_8, window_bounds = array<i64: 128, 384>}, {pipeline_mode = #tpu.pipeline_mode<synchronous>, transform_indices = @transform_9, window_bounds = array<i64: 1, 384>}, {pipeline_mode = #tpu.pipeline_mode<synchronous>, transform_indices = @transform_10, window_bounds = array<i64: 1, 384>}, {pipeline_mode = #tpu.pipeline_mode<synchronous>, transform_indices = @transform_11, window_bounds = array<i64: 128, 128>}, {pipeline_mode = #tpu.pipeline_mode<synchronous>, transform_indices = @transform_12, window_bounds = array<i64: 4, 128>}, {pipeline_mode = #tpu.pipeline_mode<synchronous>, transform_indices = @transform_13, window_bounds = array<i64: 1, 128>}, {pipeline_mode = #tpu.pipeline_mode<synchronous>, transform_indices = @transform_14, window_bounds = array<i64: 128, 128>}, {pipeline_mode = #tpu.pipeline_mode<synchronous>, transform_indices = @transform_15, window_bounds = array<i64: 1, 128>}, {transform_indices = @transform_16, window_bounds = array<i64: 8, 128>}]} {
    %c0 = arith.constant 0 : index
    %c0_0 = arith.constant 0 : index
    %0 = vector.load %arg2[%c0, %c0_0] : memref<8x1xi32, #tpu.memory_space<vmem>>, vector<8x1xi32>
    %c0_1 = arith.constant 0 : index
    %c0_2 = arith.constant 0 : index
    %c0_3 = arith.constant 0 : index
    %1 = vector.load %arg1[%c0_1, %c0_2, %c0_3] : memref<1x64x8xbf16, #tpu.memory_space<vmem>>, vector<1x64x8xbf16>
    %2 = vector.shape_cast %1 : vector<1x64x8xbf16> to vector<64x8xbf16>
    %c0_4 = arith.constant 0 : index
    %c0_5 = arith.constant 0 : index
    %3 = vector.load %arg4[%c0_4, %c0_5] : memref<8x384xbf16, #tpu.memory_space<vmem>>, vector<8x384xbf16>
    %cst = arith.constant dense<0.000000e+00> : vector<64x384xf32>
    %4 = tpu.matmul %2, %3, %cst {dimension_numbers = #tpu.dot_dimension_numbers<[1], [0], [0], [1], [0, 0, 1, 1], [], []>} : vector<64x8xbf16>, vector<8x384xbf16>, vector<64x384xf32> -> vector<64x384xf32>
    %c0_6 = arith.constant 0 : index
    %c0_7 = arith.constant 0 : index
    %5 = vector.load %arg6[%c0_6, %c0_7] : memref<1x384xf32, #tpu.memory_space<vmem>>, vector<1x384xf32>
    %6 = vector.broadcast %5 : vector<1x384xf32> to vector<64x384xf32>
    %7 = arith.addf %4, %6 : vector<64x384xf32>
    %c0_8 = arith.constant 0 : index
    %c0_9 = arith.constant 0 : index
    %8 = vector.load %arg18[%c0_8, %c0_9] : memref<64x384xf32, #tpu.memory_space<vmem>>, vector<64x384xf32>
    tpu.vector_store %arg18[%c0_8, %c0_9], %7 {strides = array<i32>} : memref<64x384xf32, #tpu.memory_space<vmem>>, vector<64x384xf32>,
    %c0_10 = arith.constant 0 : index
    %c0_11 = arith.constant 0 : index
    %9 = vector.load %arg5[%c0_10, %c0_11] : memref<128x384xbf16, #tpu.memory_space<vmem>>, vector<128x384xbf16>
    %c0_12 = arith.constant 0 : index
    %c0_13 = arith.constant 0 : index
    %10 = vector.load %arg7[%c0_12, %c0_13] : memref<1x384xf32, #tpu.memory_space<vmem>>, vector<1x384xf32>
    %cst_14 = arith.constant 0.000000e+00 : f32
    %11 = vector.broadcast %cst_14 : f32 to vector<8x128xf32>
    %c0_i32 = arith.constant 0 : i32
    %c8_i32 = arith.constant 8 : i32
    %12 = arith.muli %c0_i32, %c8_i32 : i32
    %13 = tpu.assume_multiple %12, 8 : i32
    %14 = arith.index_cast %13 : i32 to index
    %c0_15 = arith.constant 0 : index
    %15 = vector.load %arg18[%14, %c0_15] : memref<64x384xf32, #tpu.memory_space<vmem>>, vector<8x384xf32>
    %16 = arith.truncf %11 : vector<8x128xf32> to vector<8x128xbf16>
    %cst_16 = arith.constant dense<0.000000e+00> : vector<8x384xf32>
    %17 = tpu.matmul %16, %9, %cst_16 {dimension_numbers = #tpu.dot_dimension_numbers<[1], [0], [0], [1], [0, 0, 1, 1], [], []>} : vector<8x128xbf16>, vector<128x384xbf16>, vector<8x384xf32> -> vector<8x384xf32>
    %18 = vector.broadcast %10 : vector<1x384xf32> to vector<8x384xf32>
    %19 = arith.addf %17, %18 : vector<8x384xf32>
    %20 = vector.extract_strided_slice %15 {offsets = [0, 0], sizes = [8, 128], strides = [1, 1]} : vector<8x384xf32> to vector<8x128xf32>
    %21 = vector.extract_strided_slice %19 {offsets = [0, 0], sizes = [8, 128], strides = [1, 1]} : vector<8x384xf32> to vector<8x128xf32>
    %22 = arith.addf %20, %21 : vector<8x128xf32>
    %23 = arith.negf %22 : vector<8x128xf32>
    %24 = math.exp %23 : vector<8x128xf32>
    %cst_17 = arith.constant 1.000000e+00 : f32
    %25 = vector.broadcast %cst_17 : f32 to vector<8x128xf32>
    %26 = arith.addf %25, %24 : vector<8x128xf32>
    %27 = arith.divf %25, %26 : vector<8x128xf32>
    %28 = vector.extract_strided_slice %15 {offsets = [0, 128], sizes = [8, 128], strides = [1, 1]} : vector<8x384xf32> to vector<8x128xf32>
    %29 = vector.extract_strided_slice %19 {offsets = [0, 128], sizes = [8, 128], strides = [1, 1]} : vector<8x384xf32> to vector<8x128xf32>
    %30 = arith.addf %28, %29 : vector<8x128xf32>
    %31 = arith.negf %30 : vector<8x128xf32>
    %32 = math.exp %31 : vector<8x128xf32>
    %cst_18 = arith.constant 1.000000e+00 : f32
    %33 = vector.broadcast %cst_18 : f32 to vector<8x128xf32>
    %34 = arith.addf %33, %32 : vector<8x128xf32>
    %35 = arith.divf %33, %34 : vector<8x128xf32>
    %36 = vector.extract_strided_slice %15 {offsets = [0, 256], sizes = [8, 128], strides = [1, 1]} : vector<8x384xf32> to vector<8x128xf32>
    %37 = vector.extract_strided_slice %19 {offsets = [0, 256], sizes = [8, 128], strides = [1, 1]} : vector<8x384xf32> to vector<8x128xf32>
    %38 = arith.mulf %27, %37 : vector<8x128xf32>
    %39 = arith.addf %36, %38 : vector<8x128xf32>
    %40 = math.tanh %39 : vector<8x128xf32>
    %cst_19 = arith.constant 1.000000e+00 : f32
    %41 = vector.broadcast %cst_19 : f32 to vector<8x128xf32>
    %42 = arith.subf %41, %35 : vector<8x128xf32>
    %43 = arith.mulf %42, %40 : vector<8x128xf32>
    %44 = arith.mulf %35, %11 : vector<8x128xf32>
    %45 = arith.addf %43, %44 : vector<8x128xf32>
    %46 = vector.broadcast %c0_i32 : i32 to vector<8x1xi32>
    %47 = arith.cmpi slt, %46, %0 : vector<8x1xi32>
    %48 = vector.shape_cast %47 : vector<8x1xi1> to vector<8x1xi1>
    %49 = vector.broadcast %48 : vector<8x1xi1> to vector<8x128xi1>
    %50 = arith.select %49, %45, %11 : vector<8x128xi1>, vector<8x128xf32>
    %51 = arith.truncf %50 : vector<8x128xf32> to vector<8x128xbf16>
    %52 = arith.index_cast %13 : i32 to index
    %c0_20 = arith.constant 0 : index
    %53 = vector.load %arg19[%52, %c0_20] : memref<64x128xbf16, #tpu.memory_space<vmem>>, vector<8x128xbf16>
    tpu.vector_store %arg19[%52, %c0_20], %51 {strides = array<i32>} : memref<64x128xbf16, #tpu.memory_space<vmem>>, vector<8x128xbf16>,
    %c1_i32 = arith.constant 1 : i32
    %c8_i32_21 = arith.constant 8 : i32
    %54 = arith.muli %c1_i32, %c8_i32_21 : i32
    %55 = tpu.assume_multiple %54, 8 : i32
    %56 = arith.index_cast %55 : i32 to index
    %c0_22 = arith.constant 0 : index
    %57 = vector.load %arg18[%56, %c0_22] : memref<64x384xf32, #tpu.memory_space<vmem>>, vector<8x384xf32>
    %58 = arith.truncf %50 : vector<8x128xf32> to vector<8x128xbf16>
    %cst_23 = arith.constant dense<0.000000e+00> : vector<8x384xf32>
    %59 = tpu.matmul %58, %9, %cst_23 {dimension_numbers = #tpu.dot_dimension_numbers<[1], [0], [0], [1], [0, 0, 1, 1], [], []>} : vector<8x128xbf16>, vector<128x384xbf16>, vector<8x384xf32> -> vector<8x384xf32>
    %60 = vector.broadcast %10 : vector<1x384xf32> to vector<8x384xf32>
    %61 = arith.addf %59, %60 : vector<8x384xf32>
    %62 = vector.extract_strided_slice %57 {offsets = [0, 0], sizes = [8, 128], strides = [1, 1]} : vector<8x384xf32> to vector<8x128xf32>
    %63 = vector.extract_strided_slice %61 {offsets = [0, 0], sizes = [8, 128], strides = [1, 1]} : vector<8x384xf32> to vector<8x128xf32>
    %64 = arith.addf %62, %63 : vector<8x128xf32>
    %65 = arith.negf %64 : vector<8x128xf32>
    %66 = math.exp %65 : vector<8x128xf32>
    %cst_24 = arith.constant 1.000000e+00 : f32
    %67 = vector.broadcast %cst_24 : f32 to vector<8x128xf32>
    %68 = arith.addf %67, %66 : vector<8x128xf32>
    %69 = arith.divf %67, %68 : vector<8x128xf32>
    %70 = vector.extract_strided_slice %57 {offsets = [0, 128], sizes = [8, 128], strides = [1, 1]} : vector<8x384xf32> to vector<8x128xf32>
    %71 = vector.extract_strided_slice %61 {offsets = [0, 128], sizes = [8, 128], strides = [1, 1]} : vector<8x384xf32> to vector<8x128xf32>
    %72 = arith.addf %70, %71 : vector<8x128xf32>
    %73 = arith.negf %72 : vector<8x128xf32>
    %74 = math.exp %73 : vector<8x128xf32>
    %cst_25 = arith.constant 1.000000e+00 : f32
    %75 = vector.broadcast %cst_25 : f32 to vector<8x128xf32>
    %76 = arith.addf %75, %74 : vector<8x128xf32>
    %77 = arith.divf %75, %76 : vector<8x128xf32>
    %78 = vector.extract_strided_slice %57 {offsets = [0, 256], sizes = [8, 128], strides = [1, 1]} : vector<8x384xf32> to vector<8x128xf32>
    %79 = vector.extract_strided_slice %61 {offsets = [0, 256], sizes = [8, 128], strides = [1, 1]} : vector<8x384xf32> to vector<8x128xf32>
    %80 = arith.mulf %69, %79 : vector<8x128xf32>
    %81 = arith.addf %78, %80 : vector<8x128xf32>
    %82 = math.tanh %81 : vector<8x128xf32>
    %cst_26 = arith.constant 1.000000e+00 : f32
    %83 = vector.broadcast %cst_26 : f32 to vector<8x128xf32>
    %84 = arith.subf %83, %77 : vector<8x128xf32>
    %85 = arith.mulf %84, %82 : vector<8x128xf32>
    %86 = arith.mulf %77, %50 : vector<8x128xf32>
    %87 = arith.addf %85, %86 : vector<8x128xf32>
    %88 = vector.broadcast %c1_i32 : i32 to vector<8x1xi32>
    %89 = arith.cmpi slt, %88, %0 : vector<8x1xi32>
    %90 = vector.shape_cast %89 : vector<8x1xi1> to vector<8x1xi1>
    %91 = vector.broadcast %90 : vector<8x1xi1> to vector<8x128xi1>
    %92 = arith.select %91, %87, %50 : vector<8x128xi1>, vector<8x128xf32>
    %93 = arith.truncf %92 : vector<8x128xf32> to vector<8x128xbf16>
    %94 = arith.index_cast %55 : i32 to index
    %c0_27 = arith.constant 0 : index
    %95 = vector.load %arg19[%94, %c0_27] : memref<64x128xbf16, #tpu.memory_space<vmem>>, vector<8x128xbf16>
    tpu.vector_store %arg19[%94, %c0_27], %93 {strides = array<i32>} : memref<64x128xbf16, #tpu.memory_space<vmem>>, vector<8x128xbf16>,
    %c2_i32 = arith.constant 2 : i32
    %c8_i32_28 = arith.constant 8 : i32
    %96 = arith.muli %c2_i32, %c8_i32_28 : i32
    %97 = tpu.assume_multiple %96, 8 : i32
    %98 = arith.index_cast %97 : i32 to index
    %c0_29 = arith.constant 0 : index
    %99 = vector.load %arg18[%98, %c0_29] : memref<64x384xf32, #tpu.memory_space<vmem>>, vector<8x384xf32>
    %100 = arith.truncf %92 : vector<8x128xf32> to vector<8x128xbf16>
    %cst_30 = arith.constant dense<0.000000e+00> : vector<8x384xf32>
    %101 = tpu.matmul %100, %9, %cst_30 {dimension_numbers = #tpu.dot_dimension_numbers<[1], [0], [0], [1], [0, 0, 1, 1], [], []>} : vector<8x128xbf16>, vector<128x384xbf16>, vector<8x384xf32> -> vector<8x384xf32>
    %102 = vector.broadcast %10 : vector<1x384xf32> to vector<8x384xf32>
    %103 = arith.addf %101, %102 : vector<8x384xf32>
    %104 = vector.extract_strided_slice %99 {offsets = [0, 0], sizes = [8, 128], strides = [1, 1]} : vector<8x384xf32> to vector<8x128xf32>
    %105 = vector.extract_strided_slice %103 {offsets = [0, 0], sizes = [8, 128], strides = [1, 1]} : vector<8x384xf32> to vector<8x128xf32>
    %106 = arith.addf %104, %105 : vector<8x128xf32>
    %107 = arith.negf %106 : vector<8x128xf32>
    %108 = math.exp %107 : vector<8x128xf32>
    %cst_31 = arith.constant 1.000000e+00 : f32
    %109 = vector.broadcast %cst_31 : f32 to vector<8x128xf32>
    %110 = arith.addf %109, %108 : vector<8x128xf32>
    %111 = arith.divf %109, %110 : vector<8x128xf32>
    %112 = vector.extract_strided_slice %99 {offsets = [0, 128], sizes = [8, 128], strides = [1, 1]} : vector<8x384xf32> to vector<8x128xf32>
    %113 = vector.extract_strided_slice %103 {offsets = [0, 128], sizes = [8, 128], strides = [1, 1]} : vector<8x384xf32> to vector<8x128xf32>
    %114 = arith.addf %112, %113 : vector<8x128xf32>
    %115 = arith.negf %114 : vector<8x128xf32>
    %116 = math.exp %115 : vector<8x128xf32>
    %cst_32 = arith.constant 1.000000e+00 : f32
    %117 = vector.broadcast %cst_32 : f32 to vector<8x128xf32>
    %118 = arith.addf %117, %116 : vector<8x128xf32>
    %119 = arith.divf %117, %118 : vector<8x128xf32>
    %120 = vector.extract_strided_slice %99 {offsets = [0, 256], sizes = [8, 128], strides = [1, 1]} : vector<8x384xf32> to vector<8x128xf32>
    %121 = vector.extract_strided_slice %103 {offsets = [0, 256], sizes = [8, 128], strides = [1, 1]} : vector<8x384xf32> to vector<8x128xf32>
    %122 = arith.mulf %111, %121 : vector<8x128xf32>
    %123 = arith.addf %120, %122 : vector<8x128xf32>
    %124 = math.tanh %123 : vector<8x128xf32>
    %cst_33 = arith.constant 1.000000e+00 : f32
    %125 = vector.broadcast %cst_33 : f32 to vector<8x128xf32>
    %126 = arith.subf %125, %119 : vector<8x128xf32>
    %127 = arith.mulf %126, %124 : vector<8x128xf32>
    %128 = arith.mulf %119, %92 : vector<8x128xf32>
    %129 = arith.addf %127, %128 : vector<8x128xf32>
    %130 = vector.broadcast %c2_i32 : i32 to vector<8x1xi32>
    %131 = arith.cmpi slt, %130, %0 : vector<8x1xi32>
    %132 = vector.shape_cast %131 : vector<8x1xi1> to vector<8x1xi1>
    %133 = vector.broadcast %132 : vector<8x1xi1> to vector<8x128xi1>
    %134 = arith.select %133, %129, %92 : vector<8x128xi1>, vector<8x128xf32>
    %135 = arith.truncf %134 : vector<8x128xf32> to vector<8x128xbf16>
    %136 = arith.index_cast %97 : i32 to index
    %c0_34 = arith.constant 0 : index
    %137 = vector.load %arg19[%136, %c0_34] : memref<64x128xbf16, #tpu.memory_space<vmem>>, vector<8x128xbf16>
    tpu.vector_store %arg19[%136, %c0_34], %135 {strides = array<i32>} : memref<64x128xbf16, #tpu.memory_space<vmem>>, vector<8x128xbf16>,
    %c3_i32 = arith.constant 3 : i32
    %c8_i32_35 = arith.constant 8 : i32
    %138 = arith.muli %c3_i32, %c8_i32_35 : i32
    %139 = tpu.assume_multiple %138, 8 : i32
    %140 = arith.index_cast %139 : i32 to index
    %c0_36 = arith.constant 0 : index
    %141 = vector.load %arg18[%140, %c0_36] : memref<64x384xf32, #tpu.memory_space<vmem>>, vector<8x384xf32>
    %142 = arith.truncf %134 : vector<8x128xf32> to vector<8x128xbf16>
    %cst_37 = arith.constant dense<0.000000e+00> : vector<8x384xf32>
    %143 = tpu.matmul %142, %9, %cst_37 {dimension_numbers = #tpu.dot_dimension_numbers<[1], [0], [0], [1], [0, 0, 1, 1], [], []>} : vector<8x128xbf16>, vector<128x384xbf16>, vector<8x384xf32> -> vector<8x384xf32>
    %144 = vector.broadcast %10 : vector<1x384xf32> to vector<8x384xf32>
    %145 = arith.addf %143, %144 : vector<8x384xf32>
    %146 = vector.extract_strided_slice %141 {offsets = [0, 0], sizes = [8, 128], strides = [1, 1]} : vector<8x384xf32> to vector<8x128xf32>
    %147 = vector.extract_strided_slice %145 {offsets = [0, 0], sizes = [8, 128], strides = [1, 1]} : vector<8x384xf32> to vector<8x128xf32>
    %148 = arith.addf %146, %147 : vector<8x128xf32>
    %149 = arith.negf %148 : vector<8x128xf32>
    %150 = math.exp %149 : vector<8x128xf32>
    %cst_38 = arith.constant 1.000000e+00 : f32
    %151 = vector.broadcast %cst_38 : f32 to vector<8x128xf32>
    %152 = arith.addf %151, %150 : vector<8x128xf32>
    %153 = arith.divf %151, %152 : vector<8x128xf32>
    %154 = vector.extract_strided_slice %141 {offsets = [0, 128], sizes = [8, 128], strides = [1, 1]} : vector<8x384xf32> to vector<8x128xf32>
    %155 = vector.extract_strided_slice %145 {offsets = [0, 128], sizes = [8, 128], strides = [1, 1]} : vector<8x384xf32> to vector<8x128xf32>
    %156 = arith.addf %154, %155 : vector<8x128xf32>
    %157 = arith.negf %156 : vector<8x128xf32>
    %158 = math.exp %157 : vector<8x128xf32>
    %cst_39 = arith.constant 1.000000e+00 : f32
    %159 = vector.broadcast %cst_39 : f32 to vector<8x128xf32>
    %160 = arith.addf %159, %158 : vector<8x128xf32>
    %161 = arith.divf %159, %160 : vector<8x128xf32>
    %162 = vector.extract_strided_slice %141 {offsets = [0, 256], sizes = [8, 128], strides = [1, 1]} : vector<8x384xf32> to vector<8x128xf32>
    %163 = vector.extract_strided_slice %145 {offsets = [0, 256], sizes = [8, 128], strides = [1, 1]} : vector<8x384xf32> to vector<8x128xf32>
    %164 = arith.mulf %153, %163 : vector<8x128xf32>
    %165 = arith.addf %162, %164 : vector<8x128xf32>
    %166 = math.tanh %165 : vector<8x128xf32>
    %cst_40 = arith.constant 1.000000e+00 : f32
    %167 = vector.broadcast %cst_40 : f32 to vector<8x128xf32>
    %168 = arith.subf %167, %161 : vector<8x128xf32>
    %169 = arith.mulf %168, %166 : vector<8x128xf32>
    %170 = arith.mulf %161, %134 : vector<8x128xf32>
    %171 = arith.addf %169, %170 : vector<8x128xf32>
    %172 = vector.broadcast %c3_i32 : i32 to vector<8x1xi32>
    %173 = arith.cmpi slt, %172, %0 : vector<8x1xi32>
    %174 = vector.shape_cast %173 : vector<8x1xi1> to vector<8x1xi1>
    %175 = vector.broadcast %174 : vector<8x1xi1> to vector<8x128xi1>
    %176 = arith.select %175, %171, %134 : vector<8x128xi1>, vector<8x128xf32>
    %177 = arith.truncf %176 : vector<8x128xf32> to vector<8x128xbf16>
    %178 = arith.index_cast %139 : i32 to index
    %c0_41 = arith.constant 0 : index
    %179 = vector.load %arg19[%178, %c0_41] : memref<64x128xbf16, #tpu.memory_space<vmem>>, vector<8x128xbf16>
    tpu.vector_store %arg19[%178, %c0_41], %177 {strides = array<i32>} : memref<64x128xbf16, #tpu.memory_space<vmem>>, vector<8x128xbf16>,
    %c4_i32 = arith.constant 4 : i32
    %c8_i32_42 = arith.constant 8 : i32
    %180 = arith.muli %c4_i32, %c8_i32_42 : i32
    %181 = tpu.assume_multiple %180, 8 : i32
    %182 = arith.index_cast %181 : i32 to index
    %c0_43 = arith.constant 0 : index
    %183 = vector.load %arg18[%182, %c0_43] : memref<64x384xf32, #tpu.memory_space<vmem>>, vector<8x384xf32>
    %184 = arith.truncf %176 : vector<8x128xf32> to vector<8x128xbf16>
    %cst_44 = arith.constant dense<0.000000e+00> : vector<8x384xf32>
    %185 = tpu.matmul %184, %9, %cst_44 {dimension_numbers = #tpu.dot_dimension_numbers<[1], [0], [0], [1], [0, 0, 1, 1], [], []>} : vector<8x128xbf16>, vector<128x384xbf16>, vector<8x384xf32> -> vector<8x384xf32>
    %186 = vector.broadcast %10 : vector<1x384xf32> to vector<8x384xf32>
    %187 = arith.addf %185, %186 : vector<8x384xf32>
    %188 = vector.extract_strided_slice %183 {offsets = [0, 0], sizes = [8, 128], strides = [1, 1]} : vector<8x384xf32> to vector<8x128xf32>
    %189 = vector.extract_strided_slice %187 {offsets = [0, 0], sizes = [8, 128], strides = [1, 1]} : vector<8x384xf32> to vector<8x128xf32>
    %190 = arith.addf %188, %189 : vector<8x128xf32>
    %191 = arith.negf %190 : vector<8x128xf32>
    %192 = math.exp %191 : vector<8x128xf32>
    %cst_45 = arith.constant 1.000000e+00 : f32
    %193 = vector.broadcast %cst_45 : f32 to vector<8x128xf32>
    %194 = arith.addf %193, %192 : vector<8x128xf32>
    %195 = arith.divf %193, %194 : vector<8x128xf32>
    %196 = vector.extract_strided_slice %183 {offsets = [0, 128], sizes = [8, 128], strides = [1, 1]} : vector<8x384xf32> to vector<8x128xf32>
    %197 = vector.extract_strided_slice %187 {offsets = [0, 128], sizes = [8, 128], strides = [1, 1]} : vector<8x384xf32> to vector<8x128xf32>
    %198 = arith.addf %196, %197 : vector<8x128xf32>
    %199 = arith.negf %198 : vector<8x128xf32>
    %200 = math.exp %199 : vector<8x128xf32>
    %cst_46 = arith.constant 1.000000e+00 : f32
    %201 = vector.broadcast %cst_46 : f32 to vector<8x128xf32>
    %202 = arith.addf %201, %200 : vector<8x128xf32>
    %203 = arith.divf %201, %202 : vector<8x128xf32>
    %204 = vector.extract_strided_slice %183 {offsets = [0, 256], sizes = [8, 128], strides = [1, 1]} : vector<8x384xf32> to vector<8x128xf32>
    %205 = vector.extract_strided_slice %187 {offsets = [0, 256], sizes = [8, 128], strides = [1, 1]} : vector<8x384xf32> to vector<8x128xf32>
    %206 = arith.mulf %195, %205 : vector<8x128xf32>
    %207 = arith.addf %204, %206 : vector<8x128xf32>
    %208 = math.tanh %207 : vector<8x128xf32>
    %cst_47 = arith.constant 1.000000e+00 : f32
    %209 = vector.broadcast %cst_47 : f32 to vector<8x128xf32>
    %210 = arith.subf %209, %203 : vector<8x128xf32>
    %211 = arith.mulf %210, %208 : vector<8x128xf32>
    %212 = arith.mulf %203, %176 : vector<8x128xf32>
    %213 = arith.addf %211, %212 : vector<8x128xf32>
    %214 = vector.broadcast %c4_i32 : i32 to vector<8x1xi32>
    %215 = arith.cmpi slt, %214, %0 : vector<8x1xi32>
    %216 = vector.shape_cast %215 : vector<8x1xi1> to vector<8x1xi1>
    %217 = vector.broadcast %216 : vector<8x1xi1> to vector<8x128xi1>
    %218 = arith.select %217, %213, %176 : vector<8x128xi1>, vector<8x128xf32>
    %219 = arith.truncf %218 : vector<8x128xf32> to vector<8x128xbf16>
    %220 = arith.index_cast %181 : i32 to index
    %c0_48 = arith.constant 0 : index
    %221 = vector.load %arg19[%220, %c0_48] : memref<64x128xbf16, #tpu.memory_space<vmem>>, vector<8x128xbf16>
    tpu.vector_store %arg19[%220, %c0_48], %219 {strides = array<i32>} : memref<64x128xbf16, #tpu.memory_space<vmem>>, vector<8x128xbf16>,
    %c5_i32 = arith.constant 5 : i32
    %c8_i32_49 = arith.constant 8 : i32
    %222 = arith.muli %c5_i32, %c8_i32_49 : i32
    %223 = tpu.assume_multiple %222, 8 : i32
    %224 = arith.index_cast %223 : i32 to index
    %c0_50 = arith.constant 0 : index
    %225 = vector.load %arg18[%224, %c0_50] : memref<64x384xf32, #tpu.memory_space<vmem>>, vector<8x384xf32>
    %226 = arith.truncf %218 : vector<8x128xf32> to vector<8x128xbf16>
    %cst_51 = arith.constant dense<0.000000e+00> : vector<8x384xf32>
    %227 = tpu.matmul %226, %9, %cst_51 {dimension_numbers = #tpu.dot_dimension_numbers<[1], [0], [0], [1], [0, 0, 1, 1], [], []>} : vector<8x128xbf16>, vector<128x384xbf16>, vector<8x384xf32> -> vector<8x384xf32>
    %228 = vector.broadcast %10 : vector<1x384xf32> to vector<8x384xf32>
    %229 = arith.addf %227, %228 : vector<8x384xf32>
    %230 = vector.extract_strided_slice %225 {offsets = [0, 0], sizes = [8, 128], strides = [1, 1]} : vector<8x384xf32> to vector<8x128xf32>
    %231 = vector.extract_strided_slice %229 {offsets = [0, 0], sizes = [8, 128], strides = [1, 1]} : vector<8x384xf32> to vector<8x128xf32>
    %232 = arith.addf %230, %231 : vector<8x128xf32>
    %233 = arith.negf %232 : vector<8x128xf32>
    %234 = math.exp %233 : vector<8x128xf32>
    %cst_52 = arith.constant 1.000000e+00 : f32
    %235 = vector.broadcast %cst_52 : f32 to vector<8x128xf32>
    %236 = arith.addf %235, %234 : vector<8x128xf32>
    %237 = arith.divf %235, %236 : vector<8x128xf32>
    %238 = vector.extract_strided_slice %225 {offsets = [0, 128], sizes = [8, 128], strides = [1, 1]} : vector<8x384xf32> to vector<8x128xf32>
    %239 = vector.extract_strided_slice %229 {offsets = [0, 128], sizes = [8, 128], strides = [1, 1]} : vector<8x384xf32> to vector<8x128xf32>
    %240 = arith.addf %238, %239 : vector<8x128xf32>
    %241 = arith.negf %240 : vector<8x128xf32>
    %242 = math.exp %241 : vector<8x128xf32>
    %cst_53 = arith.constant 1.000000e+00 : f32
    %243 = vector.broadcast %cst_53 : f32 to vector<8x128xf32>
    %244 = arith.addf %243, %242 : vector<8x128xf32>
    %245 = arith.divf %243, %244 : vector<8x128xf32>
    %246 = vector.extract_strided_slice %225 {offsets = [0, 256], sizes = [8, 128], strides = [1, 1]} : vector<8x384xf32> to vector<8x128xf32>
    %247 = vector.extract_strided_slice %229 {offsets = [0, 256], sizes = [8, 128], strides = [1, 1]} : vector<8x384xf32> to vector<8x128xf32>
    %248 = arith.mulf %237, %247 : vector<8x128xf32>
    %249 = arith.addf %246, %248 : vector<8x128xf32>
    %250 = math.tanh %249 : vector<8x128xf32>
    %cst_54 = arith.constant 1.000000e+00 : f32
    %251 = vector.broadcast %cst_54 : f32 to vector<8x128xf32>
    %252 = arith.subf %251, %245 : vector<8x128xf32>
    %253 = arith.mulf %252, %250 : vector<8x128xf32>
    %254 = arith.mulf %245, %218 : vector<8x128xf32>
    %255 = arith.addf %253, %254 : vector<8x128xf32>
    %256 = vector.broadcast %c5_i32 : i32 to vector<8x1xi32>
    %257 = arith.cmpi slt, %256, %0 : vector<8x1xi32>
    %258 = vector.shape_cast %257 : vector<8x1xi1> to vector<8x1xi1>
    %259 = vector.broadcast %258 : vector<8x1xi1> to vector<8x128xi1>
    %260 = arith.select %259, %255, %218 : vector<8x128xi1>, vector<8x128xf32>
    %261 = arith.truncf %260 : vector<8x128xf32> to vector<8x128xbf16>
    %262 = arith.index_cast %223 : i32 to index
    %c0_55 = arith.constant 0 : index
    %263 = vector.load %arg19[%262, %c0_55] : memref<64x128xbf16, #tpu.memory_space<vmem>>, vector<8x128xbf16>
    tpu.vector_store %arg19[%262, %c0_55], %261 {strides = array<i32>} : memref<64x128xbf16, #tpu.memory_space<vmem>>, vector<8x128xbf16>,
    %c6_i32 = arith.constant 6 : i32
    %c8_i32_56 = arith.constant 8 : i32
    %264 = arith.muli %c6_i32, %c8_i32_56 : i32
    %265 = tpu.assume_multiple %264, 8 : i32
    %266 = arith.index_cast %265 : i32 to index
    %c0_57 = arith.constant 0 : index
    %267 = vector.load %arg18[%266, %c0_57] : memref<64x384xf32, #tpu.memory_space<vmem>>, vector<8x384xf32>
    %268 = arith.truncf %260 : vector<8x128xf32> to vector<8x128xbf16>
    %cst_58 = arith.constant dense<0.000000e+00> : vector<8x384xf32>
    %269 = tpu.matmul %268, %9, %cst_58 {dimension_numbers = #tpu.dot_dimension_numbers<[1], [0], [0], [1], [0, 0, 1, 1], [], []>} : vector<8x128xbf16>, vector<128x384xbf16>, vector<8x384xf32> -> vector<8x384xf32>
    %270 = vector.broadcast %10 : vector<1x384xf32> to vector<8x384xf32>
    %271 = arith.addf %269, %270 : vector<8x384xf32>
    %272 = vector.extract_strided_slice %267 {offsets = [0, 0], sizes = [8, 128], strides = [1, 1]} : vector<8x384xf32> to vector<8x128xf32>
    %273 = vector.extract_strided_slice %271 {offsets = [0, 0], sizes = [8, 128], strides = [1, 1]} : vector<8x384xf32> to vector<8x128xf32>
    %274 = arith.addf %272, %273 : vector<8x128xf32>
    %275 = arith.negf %274 : vector<8x128xf32>
    %276 = math.exp %275 : vector<8x128xf32>
    %cst_59 = arith.constant 1.000000e+00 : f32
    %277 = vector.broadcast %cst_59 : f32 to vector<8x128xf32>
    %278 = arith.addf %277, %276 : vector<8x128xf32>
    %279 = arith.divf %277, %278 : vector<8x128xf32>
    %280 = vector.extract_strided_slice %267 {offsets = [0, 128], sizes = [8, 128], strides = [1, 1]} : vector<8x384xf32> to vector<8x128xf32>
    %281 = vector.extract_strided_slice %271 {offsets = [0, 128], sizes = [8, 128], strides = [1, 1]} : vector<8x384xf32> to vector<8x128xf32>
    %282 = arith.addf %280, %281 : vector<8x128xf32>
    %283 = arith.negf %282 : vector<8x128xf32>
    %284 = math.exp %283 : vector<8x128xf32>
    %cst_60 = arith.constant 1.000000e+00 : f32
    %285 = vector.broadcast %cst_60 : f32 to vector<8x128xf32>
    %286 = arith.addf %285, %284 : vector<8x128xf32>
    %287 = arith.divf %285, %286 : vector<8x128xf32>
    %288 = vector.extract_strided_slice %267 {offsets = [0, 256], sizes = [8, 128], strides = [1, 1]} : vector<8x384xf32> to vector<8x128xf32>
    %289 = vector.extract_strided_slice %271 {offsets = [0, 256], sizes = [8, 128], strides = [1, 1]} : vector<8x384xf32> to vector<8x128xf32>
    %290 = arith.mulf %279, %289 : vector<8x128xf32>
    %291 = arith.addf %288, %290 : vector<8x128xf32>
    %292 = math.tanh %291 : vector<8x128xf32>
    %cst_61 = arith.constant 1.000000e+00 : f32
    %293 = vector.broadcast %cst_61 : f32 to vector<8x128xf32>
    %294 = arith.subf %293, %287 : vector<8x128xf32>
    %295 = arith.mulf %294, %292 : vector<8x128xf32>
    %296 = arith.mulf %287, %260 : vector<8x128xf32>
    %297 = arith.addf %295, %296 : vector<8x128xf32>
    %298 = vector.broadcast %c6_i32 : i32 to vector<8x1xi32>
    %299 = arith.cmpi slt, %298, %0 : vector<8x1xi32>
    %300 = vector.shape_cast %299 : vector<8x1xi1> to vector<8x1xi1>
    %301 = vector.broadcast %300 : vector<8x1xi1> to vector<8x128xi1>
    %302 = arith.select %301, %297, %260 : vector<8x128xi1>, vector<8x128xf32>
    %303 = arith.truncf %302 : vector<8x128xf32> to vector<8x128xbf16>
    %304 = arith.index_cast %265 : i32 to index
    %c0_62 = arith.constant 0 : index
    %305 = vector.load %arg19[%304, %c0_62] : memref<64x128xbf16, #tpu.memory_space<vmem>>, vector<8x128xbf16>
    tpu.vector_store %arg19[%304, %c0_62], %303 {strides = array<i32>} : memref<64x128xbf16, #tpu.memory_space<vmem>>, vector<8x128xbf16>,
    %c7_i32 = arith.constant 7 : i32
    %c8_i32_63 = arith.constant 8 : i32
    %306 = arith.muli %c7_i32, %c8_i32_63 : i32
    %307 = tpu.assume_multiple %306, 8 : i32
    %308 = arith.index_cast %307 : i32 to index
    %c0_64 = arith.constant 0 : index
    %309 = vector.load %arg18[%308, %c0_64] : memref<64x384xf32, #tpu.memory_space<vmem>>, vector<8x384xf32>
    %310 = arith.truncf %302 : vector<8x128xf32> to vector<8x128xbf16>
    %cst_65 = arith.constant dense<0.000000e+00> : vector<8x384xf32>
    %311 = tpu.matmul %310, %9, %cst_65 {dimension_numbers = #tpu.dot_dimension_numbers<[1], [0], [0], [1], [0, 0, 1, 1], [], []>} : vector<8x128xbf16>, vector<128x384xbf16>, vector<8x384xf32> -> vector<8x384xf32>
    %312 = vector.broadcast %10 : vector<1x384xf32> to vector<8x384xf32>
    %313 = arith.addf %311, %312 : vector<8x384xf32>
    %314 = vector.extract_strided_slice %309 {offsets = [0, 0], sizes = [8, 128], strides = [1, 1]} : vector<8x384xf32> to vector<8x128xf32>
    %315 = vector.extract_strided_slice %313 {offsets = [0, 0], sizes = [8, 128], strides = [1, 1]} : vector<8x384xf32> to vector<8x128xf32>
    %316 = arith.addf %314, %315 : vector<8x128xf32>
    %317 = arith.negf %316 : vector<8x128xf32>
    %318 = math.exp %317 : vector<8x128xf32>
    %cst_66 = arith.constant 1.000000e+00 : f32
    %319 = vector.broadcast %cst_66 : f32 to vector<8x128xf32>
    %320 = arith.addf %319, %318 : vector<8x128xf32>
    %321 = arith.divf %319, %320 : vector<8x128xf32>
    %322 = vector.extract_strided_slice %309 {offsets = [0, 128], sizes = [8, 128], strides = [1, 1]} : vector<8x384xf32> to vector<8x128xf32>
    %323 = vector.extract_strided_slice %313 {offsets = [0, 128], sizes = [8, 128], strides = [1, 1]} : vector<8x384xf32> to vector<8x128xf32>
    %324 = arith.addf %322, %323 : vector<8x128xf32>
    %325 = arith.negf %324 : vector<8x128xf32>
    %326 = math.exp %325 : vector<8x128xf32>
    %cst_67 = arith.constant 1.000000e+00 : f32
    %327 = vector.broadcast %cst_67 : f32 to vector<8x128xf32>
    %328 = arith.addf %327, %326 : vector<8x128xf32>
    %329 = arith.divf %327, %328 : vector<8x128xf32>
    %330 = vector.extract_strided_slice %309 {offsets = [0, 256], sizes = [8, 128], strides = [1, 1]} : vector<8x384xf32> to vector<8x128xf32>
    %331 = vector.extract_strided_slice %313 {offsets = [0, 256], sizes = [8, 128], strides = [1, 1]} : vector<8x384xf32> to vector<8x128xf32>
    %332 = arith.mulf %321, %331 : vector<8x128xf32>
    %333 = arith.addf %330, %332 : vector<8x128xf32>
    %334 = math.tanh %333 : vector<8x128xf32>
    %cst_68 = arith.constant 1.000000e+00 : f32
    %335 = vector.broadcast %cst_68 : f32 to vector<8x128xf32>
    %336 = arith.subf %335, %329 : vector<8x128xf32>
    %337 = arith.mulf %336, %334 : vector<8x128xf32>
    %338 = arith.mulf %329, %302 : vector<8x128xf32>
    %339 = arith.addf %337, %338 : vector<8x128xf32>
    %340 = vector.broadcast %c7_i32 : i32 to vector<8x1xi32>
    %341 = arith.cmpi slt, %340, %0 : vector<8x1xi32>
    %342 = vector.shape_cast %341 : vector<8x1xi1> to vector<8x1xi1>
    %343 = vector.broadcast %342 : vector<8x1xi1> to vector<8x128xi1>
    %344 = arith.select %343, %339, %302 : vector<8x128xi1>, vector<8x128xf32>
    %345 = arith.truncf %344 : vector<8x128xf32> to vector<8x128xbf16>
    %346 = arith.index_cast %307 : i32 to index
    %c0_69 = arith.constant 0 : index
    %347 = vector.load %arg19[%346, %c0_69] : memref<64x128xbf16, #tpu.memory_space<vmem>>, vector<8x128xbf16>
    tpu.vector_store %arg19[%346, %c0_69], %345 {strides = array<i32>} : memref<64x128xbf16, #tpu.memory_space<vmem>>, vector<8x128xbf16>,
    %c8_i32_70 = arith.constant 8 : i32
    %c0_71 = arith.constant 0 : index
    %c0_72 = arith.constant 0 : index
    %348 = vector.load %arg19[%c0_71, %c0_72] : memref<64x128xbf16, #tpu.memory_space<vmem>>, vector<64x128xbf16>
    %c0_73 = arith.constant 0 : index
    %c0_74 = arith.constant 0 : index
    %349 = vector.load %arg8[%c0_73, %c0_74] : memref<128x384xbf16, #tpu.memory_space<vmem>>, vector<128x384xbf16>
    %cst_75 = arith.constant dense<0.000000e+00> : vector<64x384xf32>
    %350 = tpu.matmul %348, %349, %cst_75 {dimension_numbers = #tpu.dot_dimension_numbers<[1], [0], [0], [1], [0, 0, 1, 1], [], []>} : vector<64x128xbf16>, vector<128x384xbf16>, vector<64x384xf32> -> vector<64x384xf32>
    %c0_76 = arith.constant 0 : index
    %c0_77 = arith.constant 0 : index
    %351 = vector.load %arg10[%c0_76, %c0_77] : memref<1x384xf32, #tpu.memory_space<vmem>>, vector<1x384xf32>
    %352 = vector.broadcast %351 : vector<1x384xf32> to vector<64x384xf32>
    %353 = arith.addf %350, %352 : vector<64x384xf32>
    %c0_78 = arith.constant 0 : index
    %c0_79 = arith.constant 0 : index
    %354 = vector.load %arg18[%c0_78, %c0_79] : memref<64x384xf32, #tpu.memory_space<vmem>>, vector<64x384xf32>
    tpu.vector_store %arg18[%c0_78, %c0_79], %353 {strides = array<i32>} : memref<64x384xf32, #tpu.memory_space<vmem>>, vector<64x384xf32>,
    %c0_80 = arith.constant 0 : index
    %c0_81 = arith.constant 0 : index
    %355 = vector.load %arg9[%c0_80, %c0_81] : memref<128x384xbf16, #tpu.memory_space<vmem>>, vector<128x384xbf16>
    %c0_82 = arith.constant 0 : index
    %c0_83 = arith.constant 0 : index
    %356 = vector.load %arg11[%c0_82, %c0_83] : memref<1x384xf32, #tpu.memory_space<vmem>>, vector<1x384xf32>
    %cst_84 = arith.constant 0.000000e+00 : f32
    %357 = vector.broadcast %cst_84 : f32 to vector<8x128xf32>
    %c0_i32_85 = arith.constant 0 : i32
    %c8_i32_86 = arith.constant 8 : i32
    %358 = arith.muli %c0_i32_85, %c8_i32_86 : i32
    %359 = tpu.assume_multiple %358, 8 : i32
    %360 = arith.index_cast %359 : i32 to index
    %c0_87 = arith.constant 0 : index
    %361 = vector.load %arg18[%360, %c0_87] : memref<64x384xf32, #tpu.memory_space<vmem>>, vector<8x384xf32>
    %362 = arith.truncf %357 : vector<8x128xf32> to vector<8x128xbf16>
    %cst_88 = arith.constant dense<0.000000e+00> : vector<8x384xf32>
    %363 = tpu.matmul %362, %355, %cst_88 {dimension_numbers = #tpu.dot_dimension_numbers<[1], [0], [0], [1], [0, 0, 1, 1], [], []>} : vector<8x128xbf16>, vector<128x384xbf16>, vector<8x384xf32> -> vector<8x384xf32>
    %364 = vector.broadcast %356 : vector<1x384xf32> to vector<8x384xf32>
    %365 = arith.addf %363, %364 : vector<8x384xf32>
    %366 = vector.extract_strided_slice %361 {offsets = [0, 0], sizes = [8, 128], strides = [1, 1]} : vector<8x384xf32> to vector<8x128xf32>
    %367 = vector.extract_strided_slice %365 {offsets = [0, 0], sizes = [8, 128], strides = [1, 1]} : vector<8x384xf32> to vector<8x128xf32>
    %368 = arith.addf %366, %367 : vector<8x128xf32>
    %369 = arith.negf %368 : vector<8x128xf32>
    %370 = math.exp %369 : vector<8x128xf32>
    %cst_89 = arith.constant 1.000000e+00 : f32
    %371 = vector.broadcast %cst_89 : f32 to vector<8x128xf32>
    %372 = arith.addf %371, %370 : vector<8x128xf32>
    %373 = arith.divf %371, %372 : vector<8x128xf32>
    %374 = vector.extract_strided_slice %361 {offsets = [0, 128], sizes = [8, 128], strides = [1, 1]} : vector<8x384xf32> to vector<8x128xf32>
    %375 = vector.extract_strided_slice %365 {offsets = [0, 128], sizes = [8, 128], strides = [1, 1]} : vector<8x384xf32> to vector<8x128xf32>
    %376 = arith.addf %374, %375 : vector<8x128xf32>
    %377 = arith.negf %376 : vector<8x128xf32>
    %378 = math.exp %377 : vector<8x128xf32>
    %cst_90 = arith.constant 1.000000e+00 : f32
    %379 = vector.broadcast %cst_90 : f32 to vector<8x128xf32>
    %380 = arith.addf %379, %378 : vector<8x128xf32>
    %381 = arith.divf %379, %380 : vector<8x128xf32>
    %382 = vector.extract_strided_slice %361 {offsets = [0, 256], sizes = [8, 128], strides = [1, 1]} : vector<8x384xf32> to vector<8x128xf32>
    %383 = vector.extract_strided_slice %365 {offsets = [0, 256], sizes = [8, 128], strides = [1, 1]} : vector<8x384xf32> to vector<8x128xf32>
    %384 = arith.mulf %373, %383 : vector<8x128xf32>
    %385 = arith.addf %382, %384 : vector<8x128xf32>
    %386 = math.tanh %385 : vector<8x128xf32>
    %cst_91 = arith.constant 1.000000e+00 : f32
    %387 = vector.broadcast %cst_91 : f32 to vector<8x128xf32>
    %388 = arith.subf %387, %381 : vector<8x128xf32>
    %389 = arith.mulf %388, %386 : vector<8x128xf32>
    %390 = arith.mulf %381, %357 : vector<8x128xf32>
    %391 = arith.addf %389, %390 : vector<8x128xf32>
    %392 = vector.broadcast %c0_i32_85 : i32 to vector<8x1xi32>
    %393 = arith.cmpi slt, %392, %0 : vector<8x1xi32>
    %394 = vector.shape_cast %393 : vector<8x1xi1> to vector<8x1xi1>
    %395 = vector.broadcast %394 : vector<8x1xi1> to vector<8x128xi1>
    %396 = arith.select %395, %391, %357 : vector<8x128xi1>, vector<8x128xf32>
    %c1_i32_92 = arith.constant 1 : i32
    %c8_i32_93 = arith.constant 8 : i32
    %397 = arith.muli %c1_i32_92, %c8_i32_93 : i32
    %398 = tpu.assume_multiple %397, 8 : i32
    %399 = arith.index_cast %398 : i32 to index
    %c0_94 = arith.constant 0 : index
    %400 = vector.load %arg18[%399, %c0_94] : memref<64x384xf32, #tpu.memory_space<vmem>>, vector<8x384xf32>
    %401 = arith.truncf %396 : vector<8x128xf32> to vector<8x128xbf16>
    %cst_95 = arith.constant dense<0.000000e+00> : vector<8x384xf32>
    %402 = tpu.matmul %401, %355, %cst_95 {dimension_numbers = #tpu.dot_dimension_numbers<[1], [0], [0], [1], [0, 0, 1, 1], [], []>} : vector<8x128xbf16>, vector<128x384xbf16>, vector<8x384xf32> -> vector<8x384xf32>
    %403 = vector.broadcast %356 : vector<1x384xf32> to vector<8x384xf32>
    %404 = arith.addf %402, %403 : vector<8x384xf32>
    %405 = vector.extract_strided_slice %400 {offsets = [0, 0], sizes = [8, 128], strides = [1, 1]} : vector<8x384xf32> to vector<8x128xf32>
    %406 = vector.extract_strided_slice %404 {offsets = [0, 0], sizes = [8, 128], strides = [1, 1]} : vector<8x384xf32> to vector<8x128xf32>
    %407 = arith.addf %405, %406 : vector<8x128xf32>
    %408 = arith.negf %407 : vector<8x128xf32>
    %409 = math.exp %408 : vector<8x128xf32>
    %cst_96 = arith.constant 1.000000e+00 : f32
    %410 = vector.broadcast %cst_96 : f32 to vector<8x128xf32>
    %411 = arith.addf %410, %409 : vector<8x128xf32>
    %412 = arith.divf %410, %411 : vector<8x128xf32>
    %413 = vector.extract_strided_slice %400 {offsets = [0, 128], sizes = [8, 128], strides = [1, 1]} : vector<8x384xf32> to vector<8x128xf32>
    %414 = vector.extract_strided_slice %404 {offsets = [0, 128], sizes = [8, 128], strides = [1, 1]} : vector<8x384xf32> to vector<8x128xf32>
    %415 = arith.addf %413, %414 : vector<8x128xf32>
    %416 = arith.negf %415 : vector<8x128xf32>
    %417 = math.exp %416 : vector<8x128xf32>
    %cst_97 = arith.constant 1.000000e+00 : f32
    %418 = vector.broadcast %cst_97 : f32 to vector<8x128xf32>
    %419 = arith.addf %418, %417 : vector<8x128xf32>
    %420 = arith.divf %418, %419 : vector<8x128xf32>
    %421 = vector.extract_strided_slice %400 {offsets = [0, 256], sizes = [8, 128], strides = [1, 1]} : vector<8x384xf32> to vector<8x128xf32>
    %422 = vector.extract_strided_slice %404 {offsets = [0, 256], sizes = [8, 128], strides = [1, 1]} : vector<8x384xf32> to vector<8x128xf32>
    %423 = arith.mulf %412, %422 : vector<8x128xf32>
    %424 = arith.addf %421, %423 : vector<8x128xf32>
    %425 = math.tanh %424 : vector<8x128xf32>
    %cst_98 = arith.constant 1.000000e+00 : f32
    %426 = vector.broadcast %cst_98 : f32 to vector<8x128xf32>
    %427 = arith.subf %426, %420 : vector<8x128xf32>
    %428 = arith.mulf %427, %425 : vector<8x128xf32>
    %429 = arith.mulf %420, %396 : vector<8x128xf32>
    %430 = arith.addf %428, %429 : vector<8x128xf32>
    %431 = vector.broadcast %c1_i32_92 : i32 to vector<8x1xi32>
    %432 = arith.cmpi slt, %431, %0 : vector<8x1xi32>
    %433 = vector.shape_cast %432 : vector<8x1xi1> to vector<8x1xi1>
    %434 = vector.broadcast %433 : vector<8x1xi1> to vector<8x128xi1>
    %435 = arith.select %434, %430, %396 : vector<8x128xi1>, vector<8x128xf32>
    %c2_i32_99 = arith.constant 2 : i32
    %c8_i32_100 = arith.constant 8 : i32
    %436 = arith.muli %c2_i32_99, %c8_i32_100 : i32
    %437 = tpu.assume_multiple %436, 8 : i32
    %438 = arith.index_cast %437 : i32 to index
    %c0_101 = arith.constant 0 : index
    %439 = vector.load %arg18[%438, %c0_101] : memref<64x384xf32, #tpu.memory_space<vmem>>, vector<8x384xf32>
    %440 = arith.truncf %435 : vector<8x128xf32> to vector<8x128xbf16>
    %cst_102 = arith.constant dense<0.000000e+00> : vector<8x384xf32>
    %441 = tpu.matmul %440, %355, %cst_102 {dimension_numbers = #tpu.dot_dimension_numbers<[1], [0], [0], [1], [0, 0, 1, 1], [], []>} : vector<8x128xbf16>, vector<128x384xbf16>, vector<8x384xf32> -> vector<8x384xf32>
    %442 = vector.broadcast %356 : vector<1x384xf32> to vector<8x384xf32>
    %443 = arith.addf %441, %442 : vector<8x384xf32>
    %444 = vector.extract_strided_slice %439 {offsets = [0, 0], sizes = [8, 128], strides = [1, 1]} : vector<8x384xf32> to vector<8x128xf32>
    %445 = vector.extract_strided_slice %443 {offsets = [0, 0], sizes = [8, 128], strides = [1, 1]} : vector<8x384xf32> to vector<8x128xf32>
    %446 = arith.addf %444, %445 : vector<8x128xf32>
    %447 = arith.negf %446 : vector<8x128xf32>
    %448 = math.exp %447 : vector<8x128xf32>
    %cst_103 = arith.constant 1.000000e+00 : f32
    %449 = vector.broadcast %cst_103 : f32 to vector<8x128xf32>
    %450 = arith.addf %449, %448 : vector<8x128xf32>
    %451 = arith.divf %449, %450 : vector<8x128xf32>
    %452 = vector.extract_strided_slice %439 {offsets = [0, 128], sizes = [8, 128], strides = [1, 1]} : vector<8x384xf32> to vector<8x128xf32>
    %453 = vector.extract_strided_slice %443 {offsets = [0, 128], sizes = [8, 128], strides = [1, 1]} : vector<8x384xf32> to vector<8x128xf32>
    %454 = arith.addf %452, %453 : vector<8x128xf32>
    %455 = arith.negf %454 : vector<8x128xf32>
    %456 = math.exp %455 : vector<8x128xf32>
    %cst_104 = arith.constant 1.000000e+00 : f32
    %457 = vector.broadcast %cst_104 : f32 to vector<8x128xf32>
    %458 = arith.addf %457, %456 : vector<8x128xf32>
    %459 = arith.divf %457, %458 : vector<8x128xf32>
    %460 = vector.extract_strided_slice %439 {offsets = [0, 256], sizes = [8, 128], strides = [1, 1]} : vector<8x384xf32> to vector<8x128xf32>
    %461 = vector.extract_strided_slice %443 {offsets = [0, 256], sizes = [8, 128], strides = [1, 1]} : vector<8x384xf32> to vector<8x128xf32>
    %462 = arith.mulf %451, %461 : vector<8x128xf32>
    %463 = arith.addf %460, %462 : vector<8x128xf32>
    %464 = math.tanh %463 : vector<8x128xf32>
    %cst_105 = arith.constant 1.000000e+00 : f32
    %465 = vector.broadcast %cst_105 : f32 to vector<8x128xf32>
    %466 = arith.subf %465, %459 : vector<8x128xf32>
    %467 = arith.mulf %466, %464 : vector<8x128xf32>
    %468 = arith.mulf %459, %435 : vector<8x128xf32>
    %469 = arith.addf %467, %468 : vector<8x128xf32>
    %470 = vector.broadcast %c2_i32_99 : i32 to vector<8x1xi32>
    %471 = arith.cmpi slt, %470, %0 : vector<8x1xi32>
    %472 = vector.shape_cast %471 : vector<8x1xi1> to vector<8x1xi1>
    %473 = vector.broadcast %472 : vector<8x1xi1> to vector<8x128xi1>
    %474 = arith.select %473, %469, %435 : vector<8x128xi1>, vector<8x128xf32>
    %c3_i32_106 = arith.constant 3 : i32
    %c8_i32_107 = arith.constant 8 : i32
    %475 = arith.muli %c3_i32_106, %c8_i32_107 : i32
    %476 = tpu.assume_multiple %475, 8 : i32
    %477 = arith.index_cast %476 : i32 to index
    %c0_108 = arith.constant 0 : index
    %478 = vector.load %arg18[%477, %c0_108] : memref<64x384xf32, #tpu.memory_space<vmem>>, vector<8x384xf32>
    %479 = arith.truncf %474 : vector<8x128xf32> to vector<8x128xbf16>
    %cst_109 = arith.constant dense<0.000000e+00> : vector<8x384xf32>
    %480 = tpu.matmul %479, %355, %cst_109 {dimension_numbers = #tpu.dot_dimension_numbers<[1], [0], [0], [1], [0, 0, 1, 1], [], []>} : vector<8x128xbf16>, vector<128x384xbf16>, vector<8x384xf32> -> vector<8x384xf32>
    %481 = vector.broadcast %356 : vector<1x384xf32> to vector<8x384xf32>
    %482 = arith.addf %480, %481 : vector<8x384xf32>
    %483 = vector.extract_strided_slice %478 {offsets = [0, 0], sizes = [8, 128], strides = [1, 1]} : vector<8x384xf32> to vector<8x128xf32>
    %484 = vector.extract_strided_slice %482 {offsets = [0, 0], sizes = [8, 128], strides = [1, 1]} : vector<8x384xf32> to vector<8x128xf32>
    %485 = arith.addf %483, %484 : vector<8x128xf32>
    %486 = arith.negf %485 : vector<8x128xf32>
    %487 = math.exp %486 : vector<8x128xf32>
    %cst_110 = arith.constant 1.000000e+00 : f32
    %488 = vector.broadcast %cst_110 : f32 to vector<8x128xf32>
    %489 = arith.addf %488, %487 : vector<8x128xf32>
    %490 = arith.divf %488, %489 : vector<8x128xf32>
    %491 = vector.extract_strided_slice %478 {offsets = [0, 128], sizes = [8, 128], strides = [1, 1]} : vector<8x384xf32> to vector<8x128xf32>
    %492 = vector.extract_strided_slice %482 {offsets = [0, 128], sizes = [8, 128], strides = [1, 1]} : vector<8x384xf32> to vector<8x128xf32>
    %493 = arith.addf %491, %492 : vector<8x128xf32>
    %494 = arith.negf %493 : vector<8x128xf32>
    %495 = math.exp %494 : vector<8x128xf32>
    %cst_111 = arith.constant 1.000000e+00 : f32
    %496 = vector.broadcast %cst_111 : f32 to vector<8x128xf32>
    %497 = arith.addf %496, %495 : vector<8x128xf32>
    %498 = arith.divf %496, %497 : vector<8x128xf32>
    %499 = vector.extract_strided_slice %478 {offsets = [0, 256], sizes = [8, 128], strides = [1, 1]} : vector<8x384xf32> to vector<8x128xf32>
    %500 = vector.extract_strided_slice %482 {offsets = [0, 256], sizes = [8, 128], strides = [1, 1]} : vector<8x384xf32> to vector<8x128xf32>
    %501 = arith.mulf %490, %500 : vector<8x128xf32>
    %502 = arith.addf %499, %501 : vector<8x128xf32>
    %503 = math.tanh %502 : vector<8x128xf32>
    %cst_112 = arith.constant 1.000000e+00 : f32
    %504 = vector.broadcast %cst_112 : f32 to vector<8x128xf32>
    %505 = arith.subf %504, %498 : vector<8x128xf32>
    %506 = arith.mulf %505, %503 : vector<8x128xf32>
    %507 = arith.mulf %498, %474 : vector<8x128xf32>
    %508 = arith.addf %506, %507 : vector<8x128xf32>
    %509 = vector.broadcast %c3_i32_106 : i32 to vector<8x1xi32>
    %510 = arith.cmpi slt, %509, %0 : vector<8x1xi32>
    %511 = vector.shape_cast %510 : vector<8x1xi1> to vector<8x1xi1>
    %512 = vector.broadcast %511 : vector<8x1xi1> to vector<8x128xi1>
    %513 = arith.select %512, %508, %474 : vector<8x128xi1>, vector<8x128xf32>
    %c4_i32_113 = arith.constant 4 : i32
    %c8_i32_114 = arith.constant 8 : i32
    %514 = arith.muli %c4_i32_113, %c8_i32_114 : i32
    %515 = tpu.assume_multiple %514, 8 : i32
    %516 = arith.index_cast %515 : i32 to index
    %c0_115 = arith.constant 0 : index
    %517 = vector.load %arg18[%516, %c0_115] : memref<64x384xf32, #tpu.memory_space<vmem>>, vector<8x384xf32>
    %518 = arith.truncf %513 : vector<8x128xf32> to vector<8x128xbf16>
    %cst_116 = arith.constant dense<0.000000e+00> : vector<8x384xf32>
    %519 = tpu.matmul %518, %355, %cst_116 {dimension_numbers = #tpu.dot_dimension_numbers<[1], [0], [0], [1], [0, 0, 1, 1], [], []>} : vector<8x128xbf16>, vector<128x384xbf16>, vector<8x384xf32> -> vector<8x384xf32>
    %520 = vector.broadcast %356 : vector<1x384xf32> to vector<8x384xf32>
    %521 = arith.addf %519, %520 : vector<8x384xf32>
    %522 = vector.extract_strided_slice %517 {offsets = [0, 0], sizes = [8, 128], strides = [1, 1]} : vector<8x384xf32> to vector<8x128xf32>
    %523 = vector.extract_strided_slice %521 {offsets = [0, 0], sizes = [8, 128], strides = [1, 1]} : vector<8x384xf32> to vector<8x128xf32>
    %524 = arith.addf %522, %523 : vector<8x128xf32>
    %525 = arith.negf %524 : vector<8x128xf32>
    %526 = math.exp %525 : vector<8x128xf32>
    %cst_117 = arith.constant 1.000000e+00 : f32
    %527 = vector.broadcast %cst_117 : f32 to vector<8x128xf32>
    %528 = arith.addf %527, %526 : vector<8x128xf32>
    %529 = arith.divf %527, %528 : vector<8x128xf32>
    %530 = vector.extract_strided_slice %517 {offsets = [0, 128], sizes = [8, 128], strides = [1, 1]} : vector<8x384xf32> to vector<8x128xf32>
    %531 = vector.extract_strided_slice %521 {offsets = [0, 128], sizes = [8, 128], strides = [1, 1]} : vector<8x384xf32> to vector<8x128xf32>
    %532 = arith.addf %530, %531 : vector<8x128xf32>
    %533 = arith.negf %532 : vector<8x128xf32>
    %534 = math.exp %533 : vector<8x128xf32>
    %cst_118 = arith.constant 1.000000e+00 : f32
    %535 = vector.broadcast %cst_118 : f32 to vector<8x128xf32>
    %536 = arith.addf %535, %534 : vector<8x128xf32>
    %537 = arith.divf %535, %536 : vector<8x128xf32>
    %538 = vector.extract_strided_slice %517 {offsets = [0, 256], sizes = [8, 128], strides = [1, 1]} : vector<8x384xf32> to vector<8x128xf32>
    %539 = vector.extract_strided_slice %521 {offsets = [0, 256], sizes = [8, 128], strides = [1, 1]} : vector<8x384xf32> to vector<8x128xf32>
    %540 = arith.mulf %529, %539 : vector<8x128xf32>
    %541 = arith.addf %538, %540 : vector<8x128xf32>
    %542 = math.tanh %541 : vector<8x128xf32>
    %cst_119 = arith.constant 1.000000e+00 : f32
    %543 = vector.broadcast %cst_119 : f32 to vector<8x128xf32>
    %544 = arith.subf %543, %537 : vector<8x128xf32>
    %545 = arith.mulf %544, %542 : vector<8x128xf32>
    %546 = arith.mulf %537, %513 : vector<8x128xf32>
    %547 = arith.addf %545, %546 : vector<8x128xf32>
    %548 = vector.broadcast %c4_i32_113 : i32 to vector<8x1xi32>
    %549 = arith.cmpi slt, %548, %0 : vector<8x1xi32>
    %550 = vector.shape_cast %549 : vector<8x1xi1> to vector<8x1xi1>
    %551 = vector.broadcast %550 : vector<8x1xi1> to vector<8x128xi1>
    %552 = arith.select %551, %547, %513 : vector<8x128xi1>, vector<8x128xf32>
    %c5_i32_120 = arith.constant 5 : i32
    %c8_i32_121 = arith.constant 8 : i32
    %553 = arith.muli %c5_i32_120, %c8_i32_121 : i32
    %554 = tpu.assume_multiple %553, 8 : i32
    %555 = arith.index_cast %554 : i32 to index
    %c0_122 = arith.constant 0 : index
    %556 = vector.load %arg18[%555, %c0_122] : memref<64x384xf32, #tpu.memory_space<vmem>>, vector<8x384xf32>
    %557 = arith.truncf %552 : vector<8x128xf32> to vector<8x128xbf16>
    %cst_123 = arith.constant dense<0.000000e+00> : vector<8x384xf32>
    %558 = tpu.matmul %557, %355, %cst_123 {dimension_numbers = #tpu.dot_dimension_numbers<[1], [0], [0], [1], [0, 0, 1, 1], [], []>} : vector<8x128xbf16>, vector<128x384xbf16>, vector<8x384xf32> -> vector<8x384xf32>
    %559 = vector.broadcast %356 : vector<1x384xf32> to vector<8x384xf32>
    %560 = arith.addf %558, %559 : vector<8x384xf32>
    %561 = vector.extract_strided_slice %556 {offsets = [0, 0], sizes = [8, 128], strides = [1, 1]} : vector<8x384xf32> to vector<8x128xf32>
    %562 = vector.extract_strided_slice %560 {offsets = [0, 0], sizes = [8, 128], strides = [1, 1]} : vector<8x384xf32> to vector<8x128xf32>
    %563 = arith.addf %561, %562 : vector<8x128xf32>
    %564 = arith.negf %563 : vector<8x128xf32>
    %565 = math.exp %564 : vector<8x128xf32>
    %cst_124 = arith.constant 1.000000e+00 : f32
    %566 = vector.broadcast %cst_124 : f32 to vector<8x128xf32>
    %567 = arith.addf %566, %565 : vector<8x128xf32>
    %568 = arith.divf %566, %567 : vector<8x128xf32>
    %569 = vector.extract_strided_slice %556 {offsets = [0, 128], sizes = [8, 128], strides = [1, 1]} : vector<8x384xf32> to vector<8x128xf32>
    %570 = vector.extract_strided_slice %560 {offsets = [0, 128], sizes = [8, 128], strides = [1, 1]} : vector<8x384xf32> to vector<8x128xf32>
    %571 = arith.addf %569, %570 : vector<8x128xf32>
    %572 = arith.negf %571 : vector<8x128xf32>
    %573 = math.exp %572 : vector<8x128xf32>
    %cst_125 = arith.constant 1.000000e+00 : f32
    %574 = vector.broadcast %cst_125 : f32 to vector<8x128xf32>
    %575 = arith.addf %574, %573 : vector<8x128xf32>
    %576 = arith.divf %574, %575 : vector<8x128xf32>
    %577 = vector.extract_strided_slice %556 {offsets = [0, 256], sizes = [8, 128], strides = [1, 1]} : vector<8x384xf32> to vector<8x128xf32>
    %578 = vector.extract_strided_slice %560 {offsets = [0, 256], sizes = [8, 128], strides = [1, 1]} : vector<8x384xf32> to vector<8x128xf32>
    %579 = arith.mulf %568, %578 : vector<8x128xf32>
    %580 = arith.addf %577, %579 : vector<8x128xf32>
    %581 = math.tanh %580 : vector<8x128xf32>
    %cst_126 = arith.constant 1.000000e+00 : f32
    %582 = vector.broadcast %cst_126 : f32 to vector<8x128xf32>
    %583 = arith.subf %582, %576 : vector<8x128xf32>
    %584 = arith.mulf %583, %581 : vector<8x128xf32>
    %585 = arith.mulf %576, %552 : vector<8x128xf32>
    %586 = arith.addf %584, %585 : vector<8x128xf32>
    %587 = vector.broadcast %c5_i32_120 : i32 to vector<8x1xi32>
    %588 = arith.cmpi slt, %587, %0 : vector<8x1xi32>
    %589 = vector.shape_cast %588 : vector<8x1xi1> to vector<8x1xi1>
    %590 = vector.broadcast %589 : vector<8x1xi1> to vector<8x128xi1>
    %591 = arith.select %590, %586, %552 : vector<8x128xi1>, vector<8x128xf32>
    %c6_i32_127 = arith.constant 6 : i32
    %c8_i32_128 = arith.constant 8 : i32
    %592 = arith.muli %c6_i32_127, %c8_i32_128 : i32
    %593 = tpu.assume_multiple %592, 8 : i32
    %594 = arith.index_cast %593 : i32 to index
    %c0_129 = arith.constant 0 : index
    %595 = vector.load %arg18[%594, %c0_129] : memref<64x384xf32, #tpu.memory_space<vmem>>, vector<8x384xf32>
    %596 = arith.truncf %591 : vector<8x128xf32> to vector<8x128xbf16>
    %cst_130 = arith.constant dense<0.000000e+00> : vector<8x384xf32>
    %597 = tpu.matmul %596, %355, %cst_130 {dimension_numbers = #tpu.dot_dimension_numbers<[1], [0], [0], [1], [0, 0, 1, 1], [], []>} : vector<8x128xbf16>, vector<128x384xbf16>, vector<8x384xf32> -> vector<8x384xf32>
    %598 = vector.broadcast %356 : vector<1x384xf32> to vector<8x384xf32>
    %599 = arith.addf %597, %598 : vector<8x384xf32>
    %600 = vector.extract_strided_slice %595 {offsets = [0, 0], sizes = [8, 128], strides = [1, 1]} : vector<8x384xf32> to vector<8x128xf32>
    %601 = vector.extract_strided_slice %599 {offsets = [0, 0], sizes = [8, 128], strides = [1, 1]} : vector<8x384xf32> to vector<8x128xf32>
    %602 = arith.addf %600, %601 : vector<8x128xf32>
    %603 = arith.negf %602 : vector<8x128xf32>
    %604 = math.exp %603 : vector<8x128xf32>
    %cst_131 = arith.constant 1.000000e+00 : f32
    %605 = vector.broadcast %cst_131 : f32 to vector<8x128xf32>
    %606 = arith.addf %605, %604 : vector<8x128xf32>
    %607 = arith.divf %605, %606 : vector<8x128xf32>
    %608 = vector.extract_strided_slice %595 {offsets = [0, 128], sizes = [8, 128], strides = [1, 1]} : vector<8x384xf32> to vector<8x128xf32>
    %609 = vector.extract_strided_slice %599 {offsets = [0, 128], sizes = [8, 128], strides = [1, 1]} : vector<8x384xf32> to vector<8x128xf32>
    %610 = arith.addf %608, %609 : vector<8x128xf32>
    %611 = arith.negf %610 : vector<8x128xf32>
    %612 = math.exp %611 : vector<8x128xf32>
    %cst_132 = arith.constant 1.000000e+00 : f32
    %613 = vector.broadcast %cst_132 : f32 to vector<8x128xf32>
    %614 = arith.addf %613, %612 : vector<8x128xf32>
    %615 = arith.divf %613, %614 : vector<8x128xf32>
    %616 = vector.extract_strided_slice %595 {offsets = [0, 256], sizes = [8, 128], strides = [1, 1]} : vector<8x384xf32> to vector<8x128xf32>
    %617 = vector.extract_strided_slice %599 {offsets = [0, 256], sizes = [8, 128], strides = [1, 1]} : vector<8x384xf32> to vector<8x128xf32>
    %618 = arith.mulf %607, %617 : vector<8x128xf32>
    %619 = arith.addf %616, %618 : vector<8x128xf32>
    %620 = math.tanh %619 : vector<8x128xf32>
    %cst_133 = arith.constant 1.000000e+00 : f32
    %621 = vector.broadcast %cst_133 : f32 to vector<8x128xf32>
    %622 = arith.subf %621, %615 : vector<8x128xf32>
    %623 = arith.mulf %622, %620 : vector<8x128xf32>
    %624 = arith.mulf %615, %591 : vector<8x128xf32>
    %625 = arith.addf %623, %624 : vector<8x128xf32>
    %626 = vector.broadcast %c6_i32_127 : i32 to vector<8x1xi32>
    %627 = arith.cmpi slt, %626, %0 : vector<8x1xi32>
    %628 = vector.shape_cast %627 : vector<8x1xi1> to vector<8x1xi1>
    %629 = vector.broadcast %628 : vector<8x1xi1> to vector<8x128xi1>
    %630 = arith.select %629, %625, %591 : vector<8x128xi1>, vector<8x128xf32>
    %c7_i32_134 = arith.constant 7 : i32
    %c8_i32_135 = arith.constant 8 : i32
    %631 = arith.muli %c7_i32_134, %c8_i32_135 : i32
    %632 = tpu.assume_multiple %631, 8 : i32
    %633 = arith.index_cast %632 : i32 to index
    %c0_136 = arith.constant 0 : index
    %634 = vector.load %arg18[%633, %c0_136] : memref<64x384xf32, #tpu.memory_space<vmem>>, vector<8x384xf32>
    %635 = arith.truncf %630 : vector<8x128xf32> to vector<8x128xbf16>
    %cst_137 = arith.constant dense<0.000000e+00> : vector<8x384xf32>
    %636 = tpu.matmul %635, %355, %cst_137 {dimension_numbers = #tpu.dot_dimension_numbers<[1], [0], [0], [1], [0, 0, 1, 1], [], []>} : vector<8x128xbf16>, vector<128x384xbf16>, vector<8x384xf32> -> vector<8x384xf32>
    %637 = vector.broadcast %356 : vector<1x384xf32> to vector<8x384xf32>
    %638 = arith.addf %636, %637 : vector<8x384xf32>
    %639 = vector.extract_strided_slice %634 {offsets = [0, 0], sizes = [8, 128], strides = [1, 1]} : vector<8x384xf32> to vector<8x128xf32>
    %640 = vector.extract_strided_slice %638 {offsets = [0, 0], sizes = [8, 128], strides = [1, 1]} : vector<8x384xf32> to vector<8x128xf32>
    %641 = arith.addf %639, %640 : vector<8x128xf32>
    %642 = arith.negf %641 : vector<8x128xf32>
    %643 = math.exp %642 : vector<8x128xf32>
    %cst_138 = arith.constant 1.000000e+00 : f32
    %644 = vector.broadcast %cst_138 : f32 to vector<8x128xf32>
    %645 = arith.addf %644, %643 : vector<8x128xf32>
    %646 = arith.divf %644, %645 : vector<8x128xf32>
    %647 = vector.extract_strided_slice %634 {offsets = [0, 128], sizes = [8, 128], strides = [1, 1]} : vector<8x384xf32> to vector<8x128xf32>
    %648 = vector.extract_strided_slice %638 {offsets = [0, 128], sizes = [8, 128], strides = [1, 1]} : vector<8x384xf32> to vector<8x128xf32>
    %649 = arith.addf %647, %648 : vector<8x128xf32>
    %650 = arith.negf %649 : vector<8x128xf32>
    %651 = math.exp %650 : vector<8x128xf32>
    %cst_139 = arith.constant 1.000000e+00 : f32
    %652 = vector.broadcast %cst_139 : f32 to vector<8x128xf32>
    %653 = arith.addf %652, %651 : vector<8x128xf32>
    %654 = arith.divf %652, %653 : vector<8x128xf32>
    %655 = vector.extract_strided_slice %634 {offsets = [0, 256], sizes = [8, 128], strides = [1, 1]} : vector<8x384xf32> to vector<8x128xf32>
    %656 = vector.extract_strided_slice %638 {offsets = [0, 256], sizes = [8, 128], strides = [1, 1]} : vector<8x384xf32> to vector<8x128xf32>
    %657 = arith.mulf %646, %656 : vector<8x128xf32>
    %658 = arith.addf %655, %657 : vector<8x128xf32>
    %659 = math.tanh %658 : vector<8x128xf32>
    %cst_140 = arith.constant 1.000000e+00 : f32
    %660 = vector.broadcast %cst_140 : f32 to vector<8x128xf32>
    %661 = arith.subf %660, %654 : vector<8x128xf32>
    %662 = arith.mulf %661, %659 : vector<8x128xf32>
    %663 = arith.mulf %654, %630 : vector<8x128xf32>
    %664 = arith.addf %662, %663 : vector<8x128xf32>
    %665 = vector.broadcast %c7_i32_134 : i32 to vector<8x1xi32>
    %666 = arith.cmpi slt, %665, %0 : vector<8x1xi32>
    %667 = vector.shape_cast %666 : vector<8x1xi1> to vector<8x1xi1>
    %668 = vector.broadcast %667 : vector<8x1xi1> to vector<8x128xi1>
    %669 = arith.select %668, %664, %630 : vector<8x128xi1>, vector<8x128xf32>
    %c8_i32_141 = arith.constant 8 : i32
    %670 = arith.truncf %669 : vector<8x128xf32> to vector<8x128xbf16>
    %c0_142 = arith.constant 0 : index
    %c0_143 = arith.constant 0 : index
    %671 = vector.load %arg12[%c0_142, %c0_143] : memref<128x128xbf16, #tpu.memory_space<vmem>>, vector<128x128xbf16>
    %cst_144 = arith.constant dense<0.000000e+00> : vector<8x128xf32>
    %672 = tpu.matmul %670, %671, %cst_144 {dimension_numbers = #tpu.dot_dimension_numbers<[1], [0], [0], [1], [0, 0, 1, 1], [], []>} : vector<8x128xbf16>, vector<128x128xbf16>, vector<8x128xf32> -> vector<8x128xf32>
    %c0_145 = arith.constant 0 : index
    %c0_146 = arith.constant 0 : index
    %673 = vector.load %arg3[%c0_145, %c0_146] : memref<8x4xbf16, #tpu.memory_space<vmem>>, vector<8x4xbf16>
    %c0_147 = arith.constant 0 : index
    %c0_148 = arith.constant 0 : index
    %674 = vector.load %arg13[%c0_147, %c0_148] : memref<4x128xbf16, #tpu.memory_space<vmem>>, vector<4x128xbf16>
    %cst_149 = arith.constant dense<0.000000e+00> : vector<8x128xf32>
    %675 = tpu.matmul %673, %674, %cst_149 {dimension_numbers = #tpu.dot_dimension_numbers<[1], [0], [0], [1], [0, 0, 1, 1], [], []>} : vector<8x4xbf16>, vector<4x128xbf16>, vector<8x128xf32> -> vector<8x128xf32>
    %676 = arith.addf %672, %675 : vector<8x128xf32>
    %c0_150 = arith.constant 0 : index
    %c0_151 = arith.constant 0 : index
    %677 = vector.load %arg14[%c0_150, %c0_151] : memref<1x128xf32, #tpu.memory_space<vmem>>, vector<1x128xf32>
    %678 = vector.broadcast %677 : vector<1x128xf32> to vector<8x128xf32>
    %679 = arith.addf %676, %678 : vector<8x128xf32>
    %cst_152 = arith.constant 0.000000e+00 : f32
    %680 = vector.broadcast %cst_152 : f32 to vector<8x128xf32>
    %681 = arith.cmpf ogt, %679, %680 : vector<8x128xf32>
    %cst_153 = arith.constant 1.000000e-01 : f32
    %682 = vector.broadcast %cst_153 : f32 to vector<8x128xf32>
    %683 = arith.mulf %682, %679 : vector<8x128xf32>
    %684 = arith.select %681, %679, %683 : vector<8x128xi1>, vector<8x128xf32>
    %685 = arith.truncf %684 : vector<8x128xf32> to vector<8x128xbf16>
    %c0_154 = arith.constant 0 : index
    %c0_155 = arith.constant 0 : index
    %686 = vector.load %arg15[%c0_154, %c0_155] : memref<128x128xbf16, #tpu.memory_space<vmem>>, vector<128x128xbf16>
    %cst_156 = arith.constant dense<0.000000e+00> : vector<8x128xf32>
    %687 = tpu.matmul %685, %686, %cst_156 {dimension_numbers = #tpu.dot_dimension_numbers<[1], [0], [0], [1], [0, 0, 1, 1], [], []>} : vector<8x128xbf16>, vector<128x128xbf16>, vector<8x128xf32> -> vector<8x128xf32>
    %c0_157 = arith.constant 0 : index
    %c0_158 = arith.constant 0 : index
    %688 = vector.load %arg16[%c0_157, %c0_158] : memref<1x128xf32, #tpu.memory_space<vmem>>, vector<1x128xf32>
    %689 = vector.broadcast %688 : vector<1x128xf32> to vector<8x128xf32>
    %690 = arith.addf %687, %689 : vector<8x128xf32>
    %c0_159 = arith.constant 0 : index
    %c0_160 = arith.constant 0 : index
    %691 = vector.load %arg17[%c0_159, %c0_160] : memref<8x128xf32, #tpu.memory_space<vmem>>, vector<8x128xf32>
    tpu.vector_store %arg17[%c0_159, %c0_160], %690 {strides = array<i32>} : memref<8x128xf32, #tpu.memory_space<vmem>>, vector<8x128xf32>,
    return
  }
  func.func @transform_0(%arg0: i32) -> (i32, i32, i32) {
    %c0_i32 = arith.constant 0 : i32
    %c0_i32_0 = arith.constant 0 : i32
    %c0_i32_1 = arith.constant 0 : i32
    return %arg0, %c0_i32, %c0_i32_0 : i32, i32, i32
  }
  func.func @transform_1(%arg0: i32) -> (i32, i32) {
    %c0_i32 = arith.constant 0 : i32
    %c0_i32_0 = arith.constant 0 : i32
    return %arg0, %c0_i32 : i32, i32
  }
  func.func @transform_2(%arg0: i32) -> (i32, i32) {
    %c0_i32 = arith.constant 0 : i32
    %c0_i32_0 = arith.constant 0 : i32
    return %arg0, %c0_i32 : i32, i32
  }
  func.func @transform_3(%arg0: i32) -> (i32, i32) {
    %c0_i32 = arith.constant 0 : i32
    %c0_i32_0 = arith.constant 0 : i32
    %c0_i32_1 = arith.constant 0 : i32
    return %c0_i32, %c0_i32_0 : i32, i32
  }
  func.func @transform_4(%arg0: i32) -> (i32, i32) {
    %c0_i32 = arith.constant 0 : i32
    %c0_i32_0 = arith.constant 0 : i32
    %c0_i32_1 = arith.constant 0 : i32
    return %c0_i32, %c0_i32_0 : i32, i32
  }
  func.func @transform_5(%arg0: i32) -> (i32, i32) {
    %c0_i32 = arith.constant 0 : i32
    %c0_i32_0 = arith.constant 0 : i32
    %c0_i32_1 = arith.constant 0 : i32
    return %c0_i32, %c0_i32_0 : i32, i32
  }
  func.func @transform_6(%arg0: i32) -> (i32, i32) {
    %c0_i32 = arith.constant 0 : i32
    %c0_i32_0 = arith.constant 0 : i32
    %c0_i32_1 = arith.constant 0 : i32
    return %c0_i32, %c0_i32_0 : i32, i32
  }
  func.func @transform_7(%arg0: i32) -> (i32, i32) {
    %c0_i32 = arith.constant 0 : i32
    %c0_i32_0 = arith.constant 0 : i32
    %c0_i32_1 = arith.constant 0 : i32
    return %c0_i32, %c0_i32_0 : i32, i32
  }
  func.func @transform_8(%arg0: i32) -> (i32, i32) {
    %c0_i32 = arith.constant 0 : i32
    %c0_i32_0 = arith.constant 0 : i32
    %c0_i32_1 = arith.constant 0 : i32
    return %c0_i32, %c0_i32_0 : i32, i32
  }
  func.func @transform_9(%arg0: i32) -> (i32, i32) {
    %c0_i32 = arith.constant 0 : i32
    %c0_i32_0 = arith.constant 0 : i32
    %c0_i32_1 = arith.constant 0 : i32
    return %c0_i32, %c0_i32_0 : i32, i32
  }
  func.func @transform_10(%arg0: i32) -> (i32, i32) {
    %c0_i32 = arith.constant 0 : i32
    %c0_i32_0 = arith.constant 0 : i32
    %c0_i32_1 = arith.constant 0 : i32
    return %c0_i32, %c0_i32_0 : i32, i32
  }
  func.func @transform_11(%arg0: i32) -> (i32, i32) {
    %c0_i32 = arith.constant 0 : i32
    %c0_i32_0 = arith.constant 0 : i32
    %c0_i32_1 = arith.constant 0 : i32
    return %c0_i32, %c0_i32_0 : i32, i32
  }
  func.func @transform_12(%arg0: i32) -> (i32, i32) {
    %c0_i32 = arith.constant 0 : i32
    %c0_i32_0 = arith.constant 0 : i32
    %c0_i32_1 = arith.constant 0 : i32
    return %c0_i32, %c0_i32_0 : i32, i32
  }
  func.func @transform_13(%arg0: i32) -> (i32, i32) {
    %c0_i32 = arith.constant 0 : i32
    %c0_i32_0 = arith.constant 0 : i32
    %c0_i32_1 = arith.constant 0 : i32
    return %c0_i32, %c0_i32_0 : i32, i32
  }
  func.func @transform_14(%arg0: i32) -> (i32, i32) {
    %c0_i32 = arith.constant 0 : i32
    %c0_i32_0 = arith.constant 0 : i32
    %c0_i32_1 = arith.constant 0 : i32
    return %c0_i32, %c0_i32_0 : i32, i32
  }
  func.func @transform_15(%arg0: i32) -> (i32, i32) {
    %c0_i32 = arith.constant 0 : i32
    %c0_i32_0 = arith.constant 0 : i32
    %c0_i32_1 = arith.constant 0 : i32
    return %c0_i32, %c0_i32_0 : i32, i32
  }
  func.func @transform_16(%arg0: i32) -> (i32, i32) {
    %c0_i32 = arith.constant 0 : i32
    %c0_i32_0 = arith.constant 0 : i32
    return %arg0, %c0_i32 : i32, i32
  }
}

</mosaic_0001>

<bundles_post_ra>
// kernel: encoder_forward.1
= control target key start
LH: loop header
LB: loop body
LE: loop exit
PB: predicated region body
PF: predicated region fallthrough
CT: control target
= control target key end

     0   :  { %s4025_s21 = smov 0   ;;  %s5557_s0 = inlined_call_operand.vmem [shape: bf16[2,64,8], index: 0, kind: input, shape index: {}]   ;;  %s5558_s1 = inlined_call_operand.vmem [shape: s32[16,1], index: 1, kind: input, shape index: {}]   ;;  %s5559_s2 = inlined_call_operand.vmem [shape: bf16[16,4], index: 2, kind: input, shape index: {}]   ;;  %s5560_s3 = inlined_call_operand.vmem [shape: bf16[8,384], index: 3, kind: input, shape index: {}]   ;;  %s5561_s4 = inlined_call_operand.vmem [shape: bf16[128,384], index: 4, kind: input, shape index: {}]   ;;  %s5562_s5 = inlined_call_operand.vmem [shape: f32[1,384], index: 5, kind: input, shape index: {}]   ;;  %s5563_s6 = inlined_call_operand.vmem [shape: f32[1,384], index: 6, kind: input, shape index: {}]   ;;  %s5564_s7 = inlined_call_operand.vmem [shape: bf16[128,384], index: 7, kind: input, shape index: {}]   ;;  %s5565_s8 = inlined_call_operand.vmem [shape: bf16[128,384], index: 8, kind: input, shape index: {}]   ;;  %s5566_s9 = inlined_call_operand.vmem [shape: f32[1,384], index: 9, kind: input, shape index: {}]   ;;  %s5567_s10 = inlined_call_operand.vmem [shape: f32[1,384], index: 10, kind: input, shape index: {}]   ;;  %s5568_s11 = inlined_call_operand.vmem [shape: bf16[128,128], index: 11, kind: input, shape index: {}]   ;;  %s5569_s12 = inlined_call_operand.vmem [shape: bf16[4,128], index: 12, kind: input, shape index: {}]   ;;  %s5570_s13 = inlined_call_operand.vmem [shape: f32[1,128], index: 13, kind: input, shape index: {}]   ;;  %s5571_s14 = inlined_call_operand.vmem [shape: bf16[128,128], index: 14, kind: input, shape index: {}]   ;;  %s5572_s15 = inlined_call_operand.vmem [shape: f32[1,128], index: 15, kind: input, shape index: {}]   ;;  %s5573_s16 = inlined_call_operand.vmem [shape: f32[16,128], index: 16, kind: output, shape index: {}]  }
   0x1   :  { %5583 = sst [smem:[#allocation19_spill]] %s5557_s0 }
   0x2 LB: > { %s3201_s22 = sadd.s32 4294967295, %s3937_s21   ;;  %p3205_p0 = scmp.ge.s32.totalorder %s3937_s21, 1  ;;  %s3937_s21 = sphi %s4025_s21, %s26_s21  }
   0x3   : > { %p480_p1 = scmp.lt.s32.totalorder %s3937_s21, 3 }
   0x5   : > { %p481_p2 = pnand %p3205_p0, %p480_p1 }
   0x7   : > { %484 = sbr.rel (%p481_p2) target bundleno = 3206 (0xc86), region = 84 }
   0xc   : > { %v3325_v0 = vld [vmem:[%s5561_s4 + $0xa8] sm:$0xf]  ;;  %v3687_v1 = vld [vmem:[%s5561_s4 + $0xb0] sm:$0xf0]  ;;  %v564_v2 = vld [vmem:[%s5560_s3] sm:$0xff]  ;;  %p537_p3 = scmp.lt.s32.totalorder %s3201_s22, 1 }
   0xd   : > { %v4042_v3 = vor.u32 %v3687_v1, %v3325_v0  ;;  %v596_v4 = vunpack.c.l.b16 %v564_v2  ;;  %v3313_v5 = vld [vmem:[%s5561_s4 + $0x90] sm:$0xf]  ;;  %v3684_v6 = vld [vmem:[%s5561_s4 + $0x98] sm:$0xf0]  ;;  %vm615_vm0 = vcmask 1043456   ;;  %v5574_v11 = vmov 0  }
   0xe   : > { %v4051_v8 = vor.u32 %v3684_v6, %v3313_v5  ;;  %s5639_s22 = smov (!%p537_p3, %s3201_s22), 1  ;;  %v3301_v9 = vld [vmem:[%s5561_s4 + $0x78] sm:$0xf]  ;;  %v3681_v10 = vld [vmem:[%s5561_s4 + $0x80] sm:$0xf0]  ;;  %3766 = vset.pattern.permute.xlu0 %v5574_v11  ;;  %3767 = vset.pattern.permute.xlu1 %v5574_v11  ;;  %s5584_s0 = sld [smem:[#allocation19_spill]]  ;;  %v597_v39 = vunpack.c.h.b16 %v564_v2 }
   0xf   : > { %910 = vmatpush.bf16.msra.mxu3 %v4042_v3  ;;  %v599_v7 = vpack.c.b16 %v596_v4, %v596_v4  ;;  %s3660_s24 = sshll.u32 %s5639_s22, 5  ;;  %v3333_v13 = vld [vmem:[%s5561_s4 + $0xb0] sm:$0xf]  ;;  %v3688_v14 = vld [vmem:[%s5561_s4 + $0xb8] sm:$0xf0]  ;;  %3768 = vset.pattern.permute.xlu2 %v5574_v11  ;;  %vm602_vm1 = vcmask 64512   ;;  %v4083_v17 = vor.u32 %v3681_v10, %v3301_v9 }
  0x10   : > { %v4077_v15 = vor.u32 %v3688_v14, %v3333_v13  ;;  %v3289_v18 = vld [vmem:[%s5561_s4 + $0x60] sm:$0xf]  ;;  %v3678_v19 = vld [vmem:[%s5561_s4 + $0x68] sm:$0xf0]  ;;  %v3321_v20 = vld [vmem:[%s5561_s4 + $0x98] sm:$0xf]  ;;  %v600_v41 = vpack.c.b16 %v597_v39, %v597_v39 }
  0x11   : > { %v617_v12 = vsel %vm615_vm0, %v599_v7, 0  ;;  %v3685_v21 = vld [vmem:[%s5561_s4 + $0xa0] sm:$0xf0]  ;;  %v4103_v23 = vor.u32 %v3678_v19, %v3289_v18  ;;  %v3309_v24 = vld [vmem:[%s5561_s4 + $0x80] sm:$0xf]  ;;  %s3208_s20 = sshll.u32 %s5639_s22, 3 }
  0x12   : > { %632 = vmatpush.bf16.msra.mxu0 %v617_v12  ;;  %v4100_v22 = vor.u32 %v3685_v21, %v3321_v20  ;;  %v3682_v25 = vld [vmem:[%s5561_s4 + $0x88] sm:$0xf0]  ;;  %v3277_v26 = vld [vmem:[%s5561_s4 + $0x48] sm:$0xf]  ;;  %v3675_v27 = vld [vmem:[%s5561_s4 + $0x50] sm:$0xf0]  ;;  %s545_s29 = scalar_lea.vmem %s5558_s1, %s3208_s20  ;;  %s553_s27 = scalar_lea.vmem %s5573_s16, %s3208_s20 }
  0x13   : > { %911 = vmatpush.bf16.msra.mxu3 %v4051_v8  ;;  %v4118_v28 = vor.u32 %v3682_v25, %v3309_v24  ;;  %v4121_v29 = vor.u32 %v3675_v27, %v3277_v26  ;;  %v3265_v30 = vld [vmem:[%s5561_s4 + $0x30] sm:$0xf]  ;;  %v3672_v31 = vld [vmem:[%s5561_s4 + $0x38] sm:$0xf0]  ;;  %v3297_v32 = vld [vmem:[%s5561_s4 + $0x68] sm:$0xf] }
  0x14   : > { %s4075_s17 = scalar_lea.vmem %s5584_s0, %s3660_s24  ;;  %v3679_v33 = vld [vmem:[%s5561_s4 + $0x70] sm:$0xf0]  ;;  %v4139_v35 = vor.u32 %v3672_v31, %v3265_v30  ;;  %v3253_v36 = vld [vmem:[%s5561_s4 + $0x18] sm:$0xf]  ;;  %v3669_v37 = vld [vmem:[%s5561_s4 + $0x20] sm:$0xf0] }
  0x15   : > { %v4081_v16 = vld [vmem:[%s4075_s17] sm:$0xff]  ;;  %v4136_v34 = vor.u32 %v3679_v33, %v3297_v32  ;;  %v4149_v38 = vld [vmem:[%s4075_s17 + $0x8] sm:$0xff]  ;;  %v4152_v40 = vor.u32 %v3669_v37, %v3253_v36  ;;  %v3285_v42 = vld [vmem:[%s5561_s4 + $0x50] sm:$0xf]  ;;  %v620_v49 = vsel %vm615_vm0, %v600_v41, 0 }
  0x16   : > { %936 = vmatpush.bf16.msrb.mxu0 %v4077_v15  ;;  %v3676_v43 = vld [vmem:[%s5561_s4 + $0x58] sm:$0xf0]  ;;  %v3241_v44 = vld [vmem:[%s5561_s4] sm:$0xf]  ;;  %v3666_v45 = vld [vmem:[%s5561_s4 + $0x8] sm:$0xf0]  ;;  %661 = vmatpush.bf16.msra.mxu1 %v620_v49 }
  0x17   : > { %3227 = vmatmul.msk.bf16.vlgmr.msra.gmra.mxu0 %vm602_vm1, %v4081_v16  ;;  %912 = vmatpush.bf16.msra.mxu3 %v4083_v17  ;;  %v4166_v46 = vor.u32 %v3676_v43, %v3285_v42  ;;  %v3686_v47 = vld [vmem:[%s5561_s4 + $0xac] sm:$0xf]  ;;  %v3327_v48 = vld [vmem:[%s5561_s4 + $0xb4] sm:$0xf0]  ;;  %v4179_v50 = vor.u32 %v3666_v45, %v3241_v44  ;;  %v3673_v52 = vld [vmem:[%s5561_s4 + $0x40] sm:$0xf0] }
  0x18   : > { %v3273_v51 = vld [vmem:[%s5561_s4 + $0x38] sm:$0xf]  ;;  %v4188_v53 = vor.u32 %v3686_v47, %v3327_v48  ;;  %v565_v55 = vld [vmem:[%s5560_s3 + $0x8] sm:$0xf]  ;;  %v3683_v56 = vld [vmem:[%s5561_s4 + $0x94] sm:$0xf] }
  0x19   : > { %v4190_v54 = vor.u32 %v3673_v52, %v3273_v51  ;;  %v3315_v57 = vld [vmem:[%s5561_s4 + $0x9c] sm:$0xf0]  ;;  %3231 = vmatmul.msk.bf16.vlgmr.msra.gmra.mxu1 %vm602_vm1, %v4081_v16  ;;  %v598_v58 = vunpack.c.l.b16 %v565_v55  ;;  %v3670_v61 = vld [vmem:[%s5561_s4 + $0x28] sm:$0xf0]  ;;  %v3249_v0 = vld [vmem:[%s5561_s4 + $0x8] sm:$0xf] }
  0x1a   : > { %937 = vmatpush.bf16.msrb.mxu0 %v4100_v22  ;;  %1011 = vmatpush.bf16.msrb.mxu1 %v4042_v3  ;;  %v3261_v60 = vld [vmem:[%s5561_s4 + $0x20] sm:$0xf]  ;;  %v4213_v62 = vor.u32 %v3683_v56, %v3315_v57  ;;  %v3667_v1 = vld [vmem:[%s5561_s4 + $0x10] sm:$0xf0]  ;;  %v3680_v2 = vld [vmem:[%s5561_s4 + $0x7c] sm:$0xf] }
  0x1b   : > { %913 = vmatpush.bf16.msra.mxu3 %v4103_v23  ;;  %v601_v59 = vpack.c.b16 %v598_v58, %v598_v58  ;;  %v4215_v63 = vor.u32 %v3670_v61, %v3261_v60  ;;  %v3303_v4 = vld [vmem:[%s5561_s4 + $0x84] sm:$0xf0]  ;;  %v4232_v6 = vor.u32 %v3667_v1, %v3249_v0  ;;  %v4241_v9 = vld [vmem:[%s4075_s17 + $0x10] sm:$0xff]  ;;  %v3677_v10 = vld [vmem:[%s5561_s4 + $0x64] sm:$0xf] }
  0x1c   : > { %v4237_v7 = vor.u32 %v3680_v2, %v3303_v4  ;;  %v3291_v12 = vld [vmem:[%s5561_s4 + $0x6c] sm:$0xf0]  ;;  %v3674_v14 = vld [vmem:[%s5561_s4 + $0x4c] sm:$0xf]  ;;  %v4270_v18 = vld [vmem:[%s545_s29] sm:$0xff]  ;;  %s3209_s29 = sshll.u32 %s5639_s22, 2 }
  0x1d   : > { %v623_v5 = vsel %vm615_vm0, %v601_v59, 0  ;;  %v4259_v13 = vor.u32 %v3677_v10, %v3291_v12  ;;  %vm996_vm2 = vcmp.gt.s32.totalorder %v4270_v18, 0  ;;  %v3671_v21 = vld [vmem:[%s5561_s4 + $0x34] sm:$0xf]  ;;  %v3267_v24 = vld [vmem:[%s5561_s4 + $0x3c] sm:$0xf0]  ;;  %s549_s24 = scalar_lea.vmem %s5559_s2, %s3209_s29 }
  0x1e   : > { %938 = vmatpush.bf16.msrb.mxu0 %v4118_v28  ;;  %1012 = vmatpush.bf16.msrb.mxu1 %v4051_v8  ;;  %v997_v19 = vsel %vm996_vm2, 1, %v5574_v11  ;;  %vm1097_vm3 = vcmp.gt.s32.totalorder %v4270_v18, 1  ;;  %v4292_v25 = vor.u32 %v3671_v21, %v3267_v24  ;;  %v3668_v26 = vld [vmem:[%s5561_s4 + $0x1c] sm:$0xf]  ;;  %v3255_v27 = vld [vmem:[%s5561_s4 + $0x24] sm:$0xf0] }
  0x1f   : > { %914 = vmatpush.bf16.msra.mxu3 %v4121_v29  ;;  %690 = vmatpush.bf16.msra.mxu2 %v623_v5  ;;  %v1098_v30 = vsel %vm1097_vm3, 1, %v5574_v11  ;;  %v4305_v31 = vor.u32 %v3668_v26, %v3255_v27  ;;  %v3664_v32 = vld [vmem:[%s4075_s17 + $0x18] sm:$0xff]  ;;  %v3665_v33 = vld [vmem:[%s5561_s4 + $0x4] sm:$0xf]  ;;  %v3243_v36 = vld [vmem:[%s5561_s4 + $0xc] sm:$0xf0] }
  0x20   : > { %999 = vperm.xlu0 %3766, %v997_v19   ;;  %vm1607_vm4 = vcmp.gt.s32.totalorder %v4270_v18, 6  ;;  %v4321_v37 = vor.u32 %v3665_v33, %v3243_v36  ;;  %v566_v42 = vld [vmem:[%s5562_s5] sm:$0x7]  ;;  %vm1199_vm15 = vcmp.gt.s32.totalorder %v4270_v18, 2  ;;  %vm1301_vm0 = vcmp.gt.s32.totalorder %v4270_v18, 3 }
  0x21   : > { %v1608_v39 = vsel %vm1607_vm4, 1, %v5574_v11  ;;  %v4386_v43 = vperm.slane %v566_v42, 0  ;;  %v768_v48 = vld [vmem:[%s5563_s6] sm:$0x7]  ;;  %v4408_v5 = vperm.slane %v566_v42, 1 }
  0x22   : > { %939 = vmatpush.bf16.msrb.mxu0 %v4136_v34  ;;  %1013 = vmatpush.bf16.msrb.mxu1 %v4083_v17  ;;  %v4396_v49 = vperm.slane %v768_v48, 0  ;;  %v4412_v12 = vperm.slane %v768_v48, 1 }
  0x23   : > { %915 = vmatpush.bf16.msra.mxu3 %v4139_v35  ;;  %1024 = vmatpush.bf16.msrb.mxu2 %v4188_v53 }
  0x24   : > { %3235 = vmatmul.msk.bf16.vlgmr.msra.gmra.mxu2 %vm602_vm1, %v4081_v16  ;;  %v3279_v16 = vld [vmem:[%s5561_s4 + $0x54] sm:$0xf0] }
  0x25   : > { %v4277_v20 = vor.u32 %v3674_v14, %v3279_v16 }
  0x26   : > { %940 = vmatpush.bf16.msrb.mxu0 %v4166_v46  ;;  %1014 = vmatpush.bf16.msrb.mxu1 %v4103_v23 }
  0x27   : > { %3228 = vmatmul.msk.bf16.gmra.mxu0 %vm602_vm1, %v4149_v38  ;;  %916 = vmatpush.bf16.msra.mxu3 %v4152_v40 }
  0x28   : > { %1025 = vmatpush.bf16.msrb.mxu2 %v4213_v62  ;;  %1100 = vperm.xlu0 %3766, %v1098_v30  }
  0x29   : > { %3232 = vmatmul.msk.bf16.gmra.mxu1 %vm602_vm1, %v4149_v38 }
  0x2a   : > { %941 = vmatpush.bf16.msrb.mxu0 %v4190_v54  ;;  %1015 = vmatpush.bf16.msrb.mxu1 %v4121_v29 }
  0x2b   : > { %917 = vmatpush.bf16.msra.mxu3 %v4179_v50 }
  0x2c   : > { %1026 = vmatpush.bf16.msrb.mxu2 %v4237_v7 }
  0x2e   : > { %918 = vmatmul.bf16.vlgmr.msra.gmra.mxu3 %v5574_v11  ;;  %942 = vmatpush.bf16.msrb.mxu0 %v4215_v63 }
  0x2f   : > { %923 = vmatpush.bf16.msrb.mxu3 %v4188_v53  ;;  %1016 = vmatpush.bf16.msrb.mxu1 %v4139_v35 }
  0x30   : > { %1027 = vmatpush.bf16.msrb.mxu2 %v4259_v13  ;;  %1610 = vperm.xlu0 %3766, %v1608_v39   ;;  %v4416_v39 = vperm.slane %v768_v48, 2 }
  0x32   : > { %943 = vmatpush.bf16.msrb.mxu0 %v4232_v6 }
  0x33   : > { %924 = vmatpush.bf16.msrb.mxu3 %v4213_v62  ;;  %1017 = vmatpush.bf16.msrb.mxu1 %v4152_v40 }
  0x34   : > { %1028 = vmatpush.bf16.msrb.mxu2 %v4277_v20 }
  0x35   : > { %3236 = vmatmul.msk.bf16.gmra.mxu2 %vm602_vm1, %v4149_v38 }
  0x36   : > { %1113 = vmatpush.bf16.msra.mxu0 %v4042_v3 }
  0x37   : > { %925 = vmatpush.bf16.msrb.mxu3 %v4237_v7  ;;  %3229 = vmatmul.msk.bf16.gmra.mxu0 %vm602_vm1, %v4241_v9 }
  0x38   : > { %1029 = vmatpush.bf16.msrb.mxu2 %v4292_v25  ;;  %1018 = vmatpush.bf16.msrb.mxu1 %v4179_v50 }
  0x39   : > { %3233 = vmatmul.msk.bf16.gmra.mxu1 %vm602_vm1, %v4241_v9 }
  0x3a   : > { %1114 = vmatpush.bf16.msra.mxu0 %v4051_v8 }
  0x3b   : > { %926 = vmatpush.bf16.msrb.mxu3 %v4259_v13 }
  0x3c   : > { %1030 = vmatpush.bf16.msrb.mxu2 %v4305_v31  ;;  %1126 = vmatpush.bf16.msra.mxu1 %v4188_v53 }
  0x3e   : > { %1115 = vmatpush.bf16.msra.mxu0 %v4083_v17 }
  0x3f   : > { %927 = vmatpush.bf16.msrb.mxu3 %v4277_v20 }
  0x40   : > { %1031 = vmatpush.bf16.msrb.mxu2 %v4321_v37  ;;  %1127 = vmatpush.bf16.msra.mxu1 %v4213_v62 }
  0x42   : > { %1116 = vmatpush.bf16.msra.mxu0 %v4103_v23 }
  0x43   : > { %928 = vmatpush.bf16.msrb.mxu3 %v4292_v25 }
  0x44   : > { %1139 = vmatpush.bf16.msra.mxu2 %v4077_v15  ;;  %1128 = vmatpush.bf16.msra.mxu1 %v4237_v7 }
  0x45   : > { %3237 = vmatmul.msk.bf16.gmra.mxu2 %vm602_vm1, %v4241_v9 }
  0x46   : > { %1117 = vmatpush.bf16.msra.mxu0 %v4121_v29 }
  0x47   : > { %929 = vmatpush.bf16.msrb.mxu3 %v4305_v31  ;;  %3230 = vmatmul.msk.bf16.gmra.mxu0 %vm602_vm1, %v3664_v32 }
  0x48   : > { %1140 = vmatpush.bf16.msra.mxu2 %v4100_v22  ;;  %1129 = vmatpush.bf16.msra.mxu1 %v4259_v13 }
  0x49   : > { %3234 = vmatmul.msk.bf16.gmra.mxu1 %vm602_vm1, %v3664_v32 }
  0x4a   : > { %1118 = vmatpush.bf16.msra.mxu0 %v4139_v35 }
  0x4b   : > { %930 = vmatpush.bf16.msrb.mxu3 %v4321_v37 }
  0x4c   : > { %1141 = vmatpush.bf16.msra.mxu2 %v4118_v28  ;;  %1130 = vmatpush.bf16.msra.mxu1 %v4277_v20 }
  0x4e   : > { %931 = vmatmul.bf16.vlgmr.msrb.gmra.mxu3 %v5574_v11  ;;  %1119 = vmatpush.bf16.msra.mxu0 %v4152_v40 }
  0x4f   : > { %1037 = vmatpush.bf16.msra.mxu3 %v4077_v15 }
  0x50   : > { %1142 = vmatpush.bf16.msra.mxu2 %v4136_v34  ;;  %1131 = vmatpush.bf16.msra.mxu1 %v4292_v25 }
  0x52   : > { %1120 = vmatpush.bf16.msra.mxu0 %v4179_v50 }
  0x53   : > { %1038 = vmatpush.bf16.msra.mxu3 %v4100_v22 }
  0x54   : > { %1143 = vmatpush.bf16.msra.mxu2 %v4166_v46  ;;  %1132 = vmatpush.bf16.msra.mxu1 %v4305_v31 }
  0x55   : > { %3238 = vmatmul.msk.bf16.gmra.mxu2 %vm602_vm1, %v3664_v32 }
  0x57   : > { %1039 = vmatpush.bf16.msra.mxu3 %v4118_v28  ;;  %944 = vmatmul.bf16.vlgmr.msrb.gmra.mxu0 %v5574_v11 }
  0x58   : > { %1228 = vmatpush.bf16.msrb.mxu0 %v4188_v53  ;;  %1144 = vmatpush.bf16.msra.mxu2 %v4190_v54 }
  0x59   : > { %1133 = vmatpush.bf16.msra.mxu1 %v4321_v37 }
  0x5b   : > { %1040 = vmatpush.bf16.msra.mxu3 %v4136_v34 }
  0x5c   : > { %1229 = vmatpush.bf16.msrb.mxu0 %v4213_v62  ;;  %1145 = vmatpush.bf16.msra.mxu2 %v4215_v63 }
  0x5f   : > { %1041 = vmatpush.bf16.msra.mxu3 %v4166_v46 }
  0x60   : > { %1230 = vmatpush.bf16.msrb.mxu0 %v4237_v7  ;;  %1146 = vmatpush.bf16.msra.mxu2 %v4232_v6 }
  0x63   : > { %1042 = vmatpush.bf16.msra.mxu3 %v4190_v54 }
  0x64   : > { %1231 = vmatpush.bf16.msrb.mxu0 %v4259_v13 }
  0x67   : > { %1043 = vmatpush.bf16.msra.mxu3 %v4215_v63 }
  0x68   : > { %1232 = vmatpush.bf16.msrb.mxu0 %v4277_v20 }
  0x6b   : > { %1044 = vmatpush.bf16.msra.mxu3 %v4232_v6 }
  0x6c   : > { %1233 = vmatpush.bf16.msrb.mxu0 %v4292_v25 }
  0x6f   : > { %1215 = vmatpush.bf16.msrb.mxu3 %v4042_v3 }
  0x70   : > { %1234 = vmatpush.bf16.msrb.mxu0 %v4305_v31 }
  0x73   : > { %1216 = vmatpush.bf16.msrb.mxu3 %v4051_v8 }
  0x74   : > { %1235 = vmatpush.bf16.msrb.mxu0 %v4321_v37 }
  0x77   : > { %1217 = vmatpush.bf16.msrb.mxu3 %v4083_v17 }
  0x7b   : > { %1218 = vmatpush.bf16.msrb.mxu3 %v4103_v23 }
  0x7f   : > { %1219 = vmatpush.bf16.msrb.mxu3 %v4121_v29 }
  0x83   : > { %1220 = vmatpush.bf16.msrb.mxu3 %v4139_v35 }
  0x87   : > { %1221 = vmatpush.bf16.msrb.mxu3 %v4152_v40 }
  0x8b   : > { %1222 = vmatpush.bf16.msrb.mxu3 %v4179_v50 }
  0x94   : > { %v634_v38 = vpop.f32.mrf.mxu0 }
  0x95   : > { %v635_v52 = vadd.f32 %v634_v38, %v4386_v43 }
  0x96   : > { %v663_v14 = vpop.f32.mrf.mxu1 }
  0x97   : > { %v664_v16 = vadd.f32 %v663_v14, %v4408_v5 }
  0x9c   : > { %v4381_v41 = vpop.f32.mrf.mxu0 }
  0xa4   : > { %v639_v44 = vpop.f32.mrf.mxu0 }
  0xa5   : > { %v4389_v45 = vadd.f32 %v639_v44, %v4386_v43 }
  0xac   : > { %v4391_v47 = vpop.f32.mrf.mxu0 }
  0xb1   : > { %v919_v51 = vpop.f32.mrf.mxu3 }
  0xb2   : > { %v920_v55 = vadd.f32 %v919_v51, %v4396_v49 }
  0xb4   : > { %v644_v56 = vpop.f32.mrf.mxu0  ;;  %v949_v58 = vadd.f32 %v920_v55, %v635_v52 }
  0xb5   : > { %v4401_v57 = vadd.f32 %v644_v56, %v4386_v43 }
  0xb6   : > { %v3335_v59 = vmul.f32 -1.442695, %v949_v58 }
  0xb8   : > { %3771 = vpow2.f32 %v3335_v59 }
  0xb9   : > { %v921_v60 = vpop.f32.mrf.mxu3 }
  0xba   : > { %v4419_v60 = vperm.slane %v566_v42, 2 }
  0xbc   : > { %v4403_v61 = vpop.f32.mrf.mxu0 }
  0xbd   : > { %5585 = vst [vmem:[#allocation4_spill] sm:$0xff] %v4403_v61 }
  0xbe   : > { %v3772_v0 = vpop.eup %3771 }
  0xbf   : > { %v953_v1 = vadd.f32 1.0, %v3772_v0 }
  0xc1   : > { %3773 = vrcp.f32 %v953_v1  ;;  %v965_v52 = vand.u32 2147483648, %v953_v1  ;;  %vm959_vm6 = vweird.f32 %v953_v1  ;;  %v963_v56 = vand.u32 2147483647, %v953_v1 }
  0xc3   : > { %v966_v0 = vor.u32 1.1754944e-38, %v965_v52  ;;  %vm964_vm8 = vcmp.eq.f32.partialorder %v963_v56, 8.507059e+37 }
  0xc4   : > { %v649_v2 = vpop.f32.mrf.mxu0 }
  0xc5   : > { %v4406_v4 = vadd.f32 %v649_v2, %v4386_v43  ;;  %v692_v2 = vpop.f32.mrf.mxu2 }
  0xc7   : > { %5586 = vst [vmem:[#allocation5_spill] sm:$0xff] %v4406_v4  ;;  %v3774_v10 = vpop.eup %3773 }
  0xc8   : > { %v955_v21 = vmul.f32 %v3774_v10, %v953_v1  ;;  %vm960_vm5 = vweird.f32 %v3774_v10 }
  0xc9   : > { %vm961_vm7 = vmor %vm959_vm6, %vm960_vm5  ;;  %vm1709_vm5 = vcmp.gt.s32.totalorder %v4270_v18, 7 }
  0xca   : > { %v956_v30 = vsub.f32 1.0, %v955_v21 }
  0xcc   : > { %v4410_v9 = vpop.f32.mrf.mxu0  ;;  %v957_v33 = vmul.f32 %v3774_v10, %v956_v30 }
  0xcd   : > { %5587 = vst [vmem:[#allocation6_spill] sm:$0xff] %v4410_v9 }
  0xce   : > { %v958_v38 = vadd.f32 %v3774_v10, %v957_v33 }
  0xd0   : > { %v962_v59 = vsel %vm961_vm7, %v3774_v10, %v958_v38 }
  0xd1   : > { %v932_v19 = vpop.f32.mrf.mxu3  ;;  %v967_v48 = vsel %vm964_vm8, %v966_v0, %v962_v59 }
  0xd2   : > { %v933_v24 = vadd.f32 %v932_v19, %v4412_v12 }
  0xd4   : > { %v969_v26 = vadd.f32 %v933_v24, %v664_v16  ;;  %v945_v27 = vpop.f32.mrf.mxu0  ;;  %v693_v16 = vadd.f32 %v692_v2, %v4419_v60  ;;  %v665_v2 = vpop.f32.mrf.mxu1 }
  0xd5   : > { %v946_v58 = vadd.f32 %v945_v27, %v4416_v39 }
  0xd6   : > { %v3336_v32 = vmul.f32 -1.442695, %v969_v26 }
  0xd7   : > { %v989_v14 = vmul.f32 %v967_v48, %v946_v58  ;;  %v5589_v58 = vmov 0  ;;  %v694_v48 = vpop.f32.mrf.mxu2 }
  0xd8   : > { %3775 = vpow2.f32 %v3336_v32 }
  0xd9   : > { %v934_v36 = vpop.f32.mrf.mxu3  ;;  %v990_v24 = vadd.f32 %v989_v14, %v693_v16 }
  0xdc   : > { %v947_v44 = vpop.f32.mrf.mxu0  ;;  %v4468_v14 = vpop.f32.mrf.mxu1 }
  0xdd   : > { %v4422_v44 = vpop.permute.xlu0 %999 }
  0xde   : > { %v3776_v51 = vpop.eup %3775  ;;  %5588 = vst [vmem:[#allocation7_spill] sm:$0xff] %v4422_v44  ;;  %vm1001_vm13 = vcmp.eq.s32.totalorder %v4422_v44, 1 }
  0xdf   : > { %v973_v55 = vadd.f32 1.0, %v3776_v51  ;;  %vm4428_vm14 = vmpackc.low %vm1001_vm13, %vm1001_vm13  ;;  %v4470_v16 = vpop.f32.mrf.mxu2 }
  0xe0   : > { %v5590_v58 = vsel %vm4428_vm14, 4294967295, %v5589_v58 }
  0xe1   : > { %3777 = vrcp.f32 %v973_v55  ;;  %v985_v30 = vand.u32 2147483648, %v973_v55  ;;  %v983_v32 = vand.u32 2147483647, %v973_v55  ;;  %vm979_vm10 = vweird.f32 %v973_v55  ;;  %5591 = vst [vmem:[#allocation8_spill] sm:$0xff] %v5590_v58 }
  0xe2   : > { %3779 = vtanh.f32 %v990_v24 }
  0xe3   : > { %v986_v42 = vor.u32 1.1754944e-38, %v985_v30  ;;  %vm984_vm12 = vcmp.eq.f32.partialorder %v983_v32, 8.507059e+37 }
  0xe7   : > { %v3778_v19 = vpop.eup %3777 }
  0xe8   : > { %v975_v21 = vmul.f32 %v3778_v19, %v973_v55  ;;  %vm980_vm9 = vweird.f32 %v3778_v19  ;;  %v3780_v38 = vpop.eup %3779 }
  0xe9   : > { %vm981_vm11 = vmor %vm979_vm10, %vm980_vm9 }
  0xea   : > { %v976_v26 = vsub.f32 1.0, %v975_v21  ;;  %v4474_v21 = vpop.f32.mrf.mxu2 }
  0xec   : > { %v977_v1 = vmul.f32 %v3778_v19, %v976_v26 }
  0xee   : > { %v978_v27 = vadd.f32 %v3778_v19, %v977_v1 }
  0xf0   : > { %v982_v10 = vsel %vm981_vm11, %v3778_v19, %v978_v27  ;;  %v4472_v19 = vpop.f32.mrf.mxu1 }
  0xf1   : > { %v987_v33 = vsel %vm984_vm12, %v986_v42, %v982_v10 }
  0xf2   : > { %v992_v36 = vsub.f32 1.0, %v987_v33  ;;  %v994_v52 = vmul.f32 0.0, %v987_v33  ;;  %v4478_v26 = vpop.f32.mrf.mxu2 }
  0xf4   : > { %v993_v51 = vmul.f32 %v3780_v38, %v992_v36  ;;  %v637_v36 = vadd.f32 %v4381_v41, %v4386_v43 }
  0xf6   : > { %v995_v56 = vadd.f32 %v994_v52, %v993_v51 }
  0xf8   : > { %v4434_v55 = vsel %vm1001_vm13, %v995_v56, 0.0  ;;  %v3338_v59 = vpack.c.bf16 %v995_v56, %v995_v56  ;;  %v4476_v24 = vpop.f32.mrf.mxu1 }
  0xf9   : > { %v1003_v0 = vpack.c.bf16 %v4434_v55, %v4434_v55 }
  0xfa   : > { %3339 = vmatmul.msk.bf16.vlgmr.msrb.gmra.mxu1 %vm4428_vm14, %v3338_v59  ;;  %3342 = vmatmul.msk.bf16.vlgmr.msrb.gmra.mxu2 %vm4428_vm14, %v3338_v59  ;;  %v4482_v1 = vpop.f32.mrf.mxu2 }
  0xfb   : > { %1004 = vst [vmem:[#allocation3] sm:$0xf] %v1003_v0  ;;  %3345 = vmatmul.msk.bf16.vlgmr.msra.gmra.mxu3 %vm4428_vm14, %v3338_v59  ;;  %1241 = vmatpush.bf16.msrb.mxu1 %v4077_v15  ;;  %v666_v59 = vadd.f32 %v665_v2, %v4408_v5 }
  0xfc   : > { %1317 = vmatpush.bf16.msrb.mxu2 %v4042_v3  ;;  %1330 = vmatpush.bf16.msra.mxu3 %v4188_v53  ;;  %5593 = vst [vmem:[#allocation10_spill] sm:$0xff] %v4482_v1 }
  0xff   : > { %1242 = vmatpush.bf16.msrb.mxu1 %v4100_v22 }
 0x100   : > { %1318 = vmatpush.bf16.msrb.mxu2 %v4051_v8  ;;  %1331 = vmatpush.bf16.msra.mxu3 %v4213_v62  ;;  %v4480_v30 = vpop.f32.mrf.mxu1 }
 0x101   : > { %5592 = vst [vmem:[#allocation9_spill] sm:$0xff] %v4480_v30 }
 0x102   : > { %v4486_v27 = vpop.f32.mrf.mxu2 }
 0x103   : > { %1243 = vmatpush.bf16.msrb.mxu1 %v4118_v28  ;;  %5595 = vst [vmem:[#allocation12_spill] sm:$0xff] %v4486_v27 }
 0x104   : > { %1319 = vmatpush.bf16.msrb.mxu2 %v4083_v17  ;;  %1332 = vmatpush.bf16.msra.mxu3 %v4237_v7 }
 0x107   : > { %1244 = vmatpush.bf16.msrb.mxu1 %v4136_v34 }
 0x108   : > { %1320 = vmatpush.bf16.msrb.mxu2 %v4103_v23  ;;  %1333 = vmatpush.bf16.msra.mxu3 %v4259_v13  ;;  %v4484_v32 = vpop.f32.mrf.mxu1 }
 0x109   : > { %5594 = vst [vmem:[#allocation11_spill] sm:$0xff] %v4484_v32 }
 0x10a   : > { %v4490_v10 = vpop.f32.mrf.mxu2 }
 0x10b   : > { %1245 = vmatpush.bf16.msrb.mxu1 %v4166_v46  ;;  %5597 = vst [vmem:[#allocation14_spill] sm:$0xff] %v4490_v10 }
 0x10c   : > { %1321 = vmatpush.bf16.msrb.mxu2 %v4121_v29  ;;  %1334 = vmatpush.bf16.msra.mxu3 %v4277_v20 }
 0x10f   : > { %1246 = vmatpush.bf16.msrb.mxu1 %v4190_v54 }
 0x110   : > { %1322 = vmatpush.bf16.msrb.mxu2 %v4139_v35  ;;  %1335 = vmatpush.bf16.msra.mxu3 %v4292_v25  ;;  %v4488_v42 = vpop.f32.mrf.mxu1 }
 0x111   : > { %5596 = vst [vmem:[#allocation13_spill] sm:$0xff] %v4488_v42 }
 0x113   : > { %1247 = vmatpush.bf16.msrb.mxu1 %v4215_v63 }
 0x114   : > { %1323 = vmatpush.bf16.msrb.mxu2 %v4152_v40  ;;  %1336 = vmatpush.bf16.msra.mxu3 %v4305_v31 }
 0x117   : > { %1248 = vmatpush.bf16.msrb.mxu1 %v4232_v6 }
 0x118   : > { %1324 = vmatpush.bf16.msrb.mxu2 %v4179_v50  ;;  %1337 = vmatpush.bf16.msra.mxu3 %v4321_v37 }
 0x177   : > { %v1020_v33 = vpop.f32.mrf.mxu1 }
 0x178   : > { %v1021_v38 = vadd.f32 %v1020_v33, %v4396_v49 }
 0x17a   : > { %v1050_v51 = vadd.f32 %v1021_v38, %v637_v36  ;;  %v5598_v36 = vmov 0  }
 0x17b   : > { %v1200_v38 = vsel %vm1199_vm15, 1, %v5598_v36 }
 0x17c   : > { %v3346_v52 = vmul.f32 -1.442695, %v1050_v51  ;;  %1202 = vperm.xlu1 %3767, %v1200_v38  }
 0x17d   : > { %v1033_v56 = vpop.f32.mrf.mxu2 }
 0x17e   : > { %3781 = vpow2.f32 %v3346_v52  ;;  %v1034_v0 = vadd.f32 %v1033_v56, %v4412_v12  ;;  %v1046_v11 = vpop.f32.mrf.mxu3 }
 0x17f   : > { %v1022_v44 = vpop.f32.mrf.mxu1 }
 0x180   : > { %v1070_v58 = vadd.f32 %v1034_v0, %v666_v59 }
 0x182   : > { %v3347_v9 = vmul.f32 -1.442695, %v1070_v58 }
 0x184   : > { %v3782_v42 = vpop.eup %3781  ;;  %3783 = vpow2.f32 %v3347_v9 }
 0x185   : > { %v1054_v10 = vadd.f32 1.0, %v3782_v42  ;;  %v1035_v27 = vpop.f32.mrf.mxu2 }
 0x186   : > { %v1048_v4 = vpop.f32.mrf.mxu3 }
 0x187   : > { %3785 = vrcp.f32 %v1054_v10  ;;  %v1066_v58 = vand.u32 2147483648, %v1054_v10  ;;  %v1064_v9 = vand.u32 2147483647, %v1054_v10  ;;  %v1302_v4 = vsel %vm1301_vm0, 1, %v5598_v36 }
 0x188   : > { %vm1060_vm2 = vweird.f32 %v1054_v10  ;;  %1304 = vperm.xlu1 %3767, %v1302_v4  }
 0x189   : > { %v1067_v59 = vor.u32 1.1754944e-38, %v1066_v58  ;;  %vm1065_vm4 = vcmp.eq.f32.partialorder %v1064_v9, 8.507059e+37  ;;  %v1710_v58 = vsel %vm1709_vm5, 1, %v5598_v36 }
 0x18a   : > { %v3784_v41 = vpop.eup %3783 }
 0x18b   : > { %v1074_v33 = vadd.f32 1.0, %v3784_v41  ;;  %v1047_v41 = vadd.f32 %v1046_v11, %v4416_v39 }
 0x18d   : > { %v3786_v2 = vpop.eup %3785  ;;  %3787 = vrcp.f32 %v1074_v33  ;;  %v1086_v1 = vand.u32 2147483648, %v1074_v33  ;;  %v1084_v61 = vand.u32 2147483647, %v1074_v33  ;;  %vm1080_vm7 = vweird.f32 %v1074_v33 }
 0x18e   : > { %v1056_v51 = vmul.f32 %v3786_v2, %v1054_v10  ;;  %vm1061_vm1 = vweird.f32 %v3786_v2 }
 0x18f   : > { %vm1062_vm3 = vmor %vm1060_vm2, %vm1061_vm1  ;;  %v1087_v4 = vor.u32 1.1754944e-38, %v1086_v1  ;;  %vm1085_vm9 = vcmp.eq.f32.partialorder %v1084_v61, 8.507059e+37 }
 0x190   : > { %v1057_v44 = vsub.f32 1.0, %v1056_v51  ;;  %v695_v51 = vadd.f32 %v694_v48, %v4419_v60  ;;  %1712 = vperm.xlu1 %3767, %v1710_v58  }
 0x192   : > { %v1058_v52 = vmul.f32 %v3786_v2, %v1057_v44 }
 0x193   : > { %v3788_v27 = vpop.eup %3787 }
 0x194   : > { %v1076_v42 = vmul.f32 %v3788_v27, %v1074_v33  ;;  %v1059_v56 = vadd.f32 %v3786_v2, %v1058_v52  ;;  %vm1081_vm6 = vweird.f32 %v3788_v27  ;;  %v669_v33 = vadd.f32 %v4468_v14, %v4408_v5 }
 0x195   : > { %vm1082_vm8 = vmor %vm1080_vm7, %vm1081_vm6  ;;  %vm1403_vm6 = vcmp.gt.s32.totalorder %v4270_v18, 4  ;;  %vm1505_vm7 = vcmp.gt.s32.totalorder %v4270_v18, 5 }
 0x196   : > { %v1077_v0 = vsub.f32 1.0, %v1076_v42  ;;  %v1063_v38 = vsel %vm1062_vm3, %v3786_v2, %v1059_v56 }
 0x197   : > { %v1068_v32 = vsel %vm1065_vm4, %v1067_v59, %v1063_v38  ;;  %v4506_v59 = vpop.permute.xlu0 %1100 }
 0x198   : > { %v1078_v44 = vmul.f32 %v3788_v27, %v1077_v0  ;;  %v1090_v30 = vmul.f32 %v1068_v32, %v1047_v41  ;;  %vm1102_vm10 = vcmp.eq.s32.totalorder %v4506_v59, 1 }
 0x19a   : > { %v1079_v10 = vadd.f32 %v3788_v27, %v1078_v44  ;;  %v1091_v52 = vadd.f32 %v1090_v30, %v695_v51 }
 0x19c   : > { %v1083_v11 = vsel %vm1082_vm8, %v3788_v27, %v1079_v10  ;;  %3789 = vtanh.f32 %v1091_v52 }
 0x19d   : > { %v1088_v48 = vsel %vm1085_vm9, %v1087_v4, %v1083_v11 }
 0x19e   : > { %v1093_v2 = vsub.f32 1.0, %v1088_v48  ;;  %v1095_v56 = vmul.f32 %v1088_v48, %v4434_v55 }
 0x1a2   : > { %v3790_v9 = vpop.eup %3789 }
 0x1a3   : > { %v1094_v42 = vmul.f32 %v3790_v9, %v1093_v2 }
 0x1a5   : > { %v1096_v32 = vadd.f32 %v1095_v56, %v1094_v42 }
 0x1a7   : > { %v4512_v30 = vsel %vm1102_vm10, %v1096_v32, %v4434_v55 }
 0x1a8   : > { %v1104_v61 = vpack.c.bf16 %v4512_v30, %v4512_v30 }
 0x1aa   : > { %1106 = vst [vmem:[#allocation3 + $0x4] sm:$0xf] %v1104_v61  ;;  %1121 = vmatmul.bf16.vlgmr.msra.gmra.mxu0 %v1104_v61  ;;  %1134 = vmatmul.bf16.vlgmr.msra.gmra.mxu1 %v1104_v61 }
 0x1ab   : > { %1147 = vmatmul.bf16.vlgmr.msra.gmra.mxu2 %v1104_v61  ;;  %1343 = vmatpush.bf16.msra.mxu0 %v4077_v15 }
 0x1ac   : > { %1419 = vmatpush.bf16.msra.mxu1 %v4042_v3  ;;  %1432 = vmatpush.bf16.msra.mxu2 %v4188_v53 }
 0x1af   : > { %1344 = vmatpush.bf16.msra.mxu0 %v4100_v22 }
 0x1b0   : > { %1420 = vmatpush.bf16.msra.mxu1 %v4051_v8  ;;  %1433 = vmatpush.bf16.msra.mxu2 %v4213_v62 }
 0x1b3   : > { %1345 = vmatpush.bf16.msra.mxu0 %v4118_v28 }
 0x1b4   : > { %1421 = vmatpush.bf16.msra.mxu1 %v4083_v17  ;;  %1434 = vmatpush.bf16.msra.mxu2 %v4237_v7 }
 0x1b7   : > { %1346 = vmatpush.bf16.msra.mxu0 %v4136_v34 }
 0x1b8   : > { %1422 = vmatpush.bf16.msra.mxu1 %v4103_v23  ;;  %1435 = vmatpush.bf16.msra.mxu2 %v4259_v13 }
 0x1bb   : > { %1347 = vmatpush.bf16.msra.mxu0 %v4166_v46 }
 0x1bc   : > { %1423 = vmatpush.bf16.msra.mxu1 %v4121_v29  ;;  %1436 = vmatpush.bf16.msra.mxu2 %v4277_v20 }
 0x1bf   : > { %1348 = vmatpush.bf16.msra.mxu0 %v4190_v54 }
 0x1c0   : > { %1424 = vmatpush.bf16.msra.mxu1 %v4139_v35  ;;  %1437 = vmatpush.bf16.msra.mxu2 %v4292_v25 }
 0x1c3   : > { %1349 = vmatpush.bf16.msra.mxu0 %v4215_v63 }
 0x1c4   : > { %1425 = vmatpush.bf16.msra.mxu1 %v4152_v40  ;;  %1438 = vmatpush.bf16.msra.mxu2 %v4305_v31 }
 0x1c7   : > { %1350 = vmatpush.bf16.msra.mxu0 %v4232_v6 }
 0x1c8   : > { %1426 = vmatpush.bf16.msra.mxu1 %v4179_v50  ;;  %1439 = vmatpush.bf16.msra.mxu2 %v4321_v37 }
 0x227   : > { %v1122_v55 = vpop.f32.mrf.mxu0  ;;  %v1135_v1 = vpop.f32.mrf.mxu1 }
 0x228   : > { %v1123_v27 = vadd.f32 %v1122_v55, %v4396_v49  ;;  %v1136_v0 = vadd.f32 %v1135_v1, %v4412_v12 }
 0x22a   : > { %v1152_v41 = vadd.f32 %v1123_v27, %v4389_v45  ;;  %v1172_v38 = vadd.f32 %v1136_v0, %v669_v33 }
 0x22c   : > { %v3348_v51 = vmul.f32 -1.442695, %v1152_v41  ;;  %v3349_v44 = vmul.f32 -1.442695, %v1172_v38 }
 0x22e   : > { %3791 = vpow2.f32 %v3348_v51  ;;  %v1148_v10 = vpop.f32.mrf.mxu2 }
 0x22f   : > { %3793 = vpow2.f32 %v3349_v44  ;;  %v1124_v52 = vpop.f32.mrf.mxu0  ;;  %v1137_v58 = vpop.f32.mrf.mxu1  ;;  %v1149_v38 = vadd.f32 %v1148_v10, %v4416_v39 }
 0x230   : > { %v698_v58 = vadd.f32 %v4470_v16, %v4419_v60 }
 0x234   : > { %v3792_v4 = vpop.eup %3791 }
 0x235   : > { %v3794_v11 = vpop.eup %3793  ;;  %v1156_v48 = vadd.f32 1.0, %v3792_v4 }
 0x236   : > { %v1176_v2 = vadd.f32 1.0, %v3794_v11  ;;  %v1150_v9 = vpop.f32.mrf.mxu2 }
 0x237   : > { %3795 = vrcp.f32 %v1156_v48  ;;  %v1168_v55 = vand.u32 2147483648, %v1156_v48  ;;  %v1166_v33 = vand.u32 2147483647, %v1156_v48  ;;  %vm1162_vm12 = vweird.f32 %v1156_v48 }
 0x238   : > { %3797 = vrcp.f32 %v1176_v2  ;;  %v1188_v11 = vand.u32 2147483648, %v1176_v2  ;;  %vm1182_vm2 = vweird.f32 %v1176_v2  ;;  %v1186_v9 = vand.u32 2147483647, %v1176_v2 }
 0x239   : > { %v1169_v41 = vor.u32 1.1754944e-38, %v1168_v55  ;;  %vm1167_vm0 = vcmp.eq.f32.partialorder %v1166_v33, 8.507059e+37  ;;  %v671_v33 = vadd.f32 %v4472_v19, %v4408_v5 }
 0x23a   : > { %vm1187_vm4 = vcmp.eq.f32.partialorder %v1186_v9, 8.507059e+37 }
 0x23d   : > { %v3796_v14 = vpop.eup %3795 }
 0x23e   : > { %v3798_v42 = vpop.eup %3797  ;;  %v1158_v56 = vmul.f32 %v3796_v14, %v1156_v48  ;;  %vm1163_vm11 = vweird.f32 %v3796_v14  ;;  %v1189_v48 = vor.u32 1.1754944e-38, %v1188_v11 }
 0x23f   : > { %v1178_v32 = vmul.f32 %v3798_v42, %v1176_v2  ;;  %vm1164_vm15 = vmor %vm1162_vm12, %vm1163_vm11  ;;  %vm1183_vm1 = vweird.f32 %v3798_v42 }
 0x240   : > { %v1159_v45 = vsub.f32 1.0, %v1158_v56  ;;  %vm1184_vm3 = vmor %vm1182_vm2, %vm1183_vm1 }
 0x241   : > { %v1179_v61 = vsub.f32 1.0, %v1178_v32 }
 0x242   : > { %v1160_v1 = vmul.f32 %v3796_v14, %v1159_v45 }
 0x243   : > { %v1180_v27 = vmul.f32 %v3798_v42, %v1179_v61  ;;  %v4548_v61 = vpop.permute.xlu1 %1202 }
 0x244   : > { %v1161_v0 = vadd.f32 %v3796_v14, %v1160_v1  ;;  %vm1204_vm5 = vcmp.eq.s32.totalorder %v4548_v61, 1 }
 0x245   : > { %v1181_v52 = vadd.f32 %v3798_v42, %v1180_v27 }
 0x246   : > { %v1165_v51 = vsel %vm1164_vm15, %v3796_v14, %v1161_v0 }
 0x247   : > { %v1170_v44 = vsel %vm1167_vm0, %v1169_v41, %v1165_v51  ;;  %v1185_v32 = vsel %vm1184_vm3, %v3798_v42, %v1181_v52 }
 0x248   : > { %v1192_v4 = vmul.f32 %v1170_v44, %v1149_v38  ;;  %v1190_v45 = vsel %vm1187_vm4, %v1189_v48, %v1185_v32  ;;  %v642_v44 = vadd.f32 %v4391_v47, %v4386_v43  ;;  %v1404_v47 = vsel %vm1403_vm6, 1, %v5598_v36 }
 0x249   : > { %v1195_v10 = vsub.f32 1.0, %v1190_v45  ;;  %v1197_v1 = vmul.f32 %v1190_v45, %v4512_v30  ;;  %1406 = vperm.xlu2 %3768, %v1404_v47  }
 0x24a   : > { %v1193_v56 = vadd.f32 %v1192_v4, %v698_v58 }
 0x24c   : > { %3799 = vtanh.f32 %v1193_v56 }
 0x252   : > { %v3800_v14 = vpop.eup %3799 }
 0x253   : > { %v1196_v55 = vmul.f32 %v3800_v14, %v1195_v10 }
 0x255   : > { %v1198_v16 = vadd.f32 %v1197_v1, %v1196_v55 }
 0x257   : > { %v4555_v2 = vsel %vm1204_vm5, %v1198_v16, %v4512_v30 }
 0x258   : > { %v1206_v42 = vpack.c.bf16 %v4555_v2, %v4555_v2 }
 0x25a   : > { %1208 = vst [vmem:[#allocation3 + $0x8] sm:$0xf] %v1206_v42  ;;  %1223 = vmatmul.bf16.vlgmr.msrb.gmra.mxu3 %v1206_v42  ;;  %1236 = vmatmul.bf16.vlgmr.msrb.gmra.mxu0 %v1206_v42 }
 0x25b   : > { %1249 = vmatmul.bf16.vlgmr.msrb.gmra.mxu1 %v1206_v42  ;;  %1445 = vmatpush.bf16.msrb.mxu3 %v4077_v15 }
 0x25c   : > { %1521 = vmatpush.bf16.msrb.mxu0 %v4042_v3  ;;  %1534 = vmatpush.bf16.msrb.mxu1 %v4188_v53 }
 0x25f   : > { %1446 = vmatpush.bf16.msrb.mxu3 %v4100_v22 }
 0x260   : > { %1522 = vmatpush.bf16.msrb.mxu0 %v4051_v8  ;;  %1535 = vmatpush.bf16.msrb.mxu1 %v4213_v62 }
 0x263   : > { %1447 = vmatpush.bf16.msrb.mxu3 %v4118_v28 }
 0x264   : > { %1523 = vmatpush.bf16.msrb.mxu0 %v4083_v17  ;;  %1536 = vmatpush.bf16.msrb.mxu1 %v4237_v7 }
 0x267   : > { %1448 = vmatpush.bf16.msrb.mxu3 %v4136_v34 }
 0x268   : > { %1524 = vmatpush.bf16.msrb.mxu0 %v4103_v23  ;;  %1537 = vmatpush.bf16.msrb.mxu1 %v4259_v13 }
 0x26b   : > { %1449 = vmatpush.bf16.msrb.mxu3 %v4166_v46 }
 0x26c   : > { %1525 = vmatpush.bf16.msrb.mxu0 %v4121_v29  ;;  %1538 = vmatpush.bf16.msrb.mxu1 %v4277_v20 }
 0x26f   : > { %1450 = vmatpush.bf16.msrb.mxu3 %v4190_v54 }
 0x270   : > { %1526 = vmatpush.bf16.msrb.mxu0 %v4139_v35  ;;  %1539 = vmatpush.bf16.msrb.mxu1 %v4292_v25 }
 0x273   : > { %1451 = vmatpush.bf16.msrb.mxu3 %v4215_v63 }
 0x274   : > { %1527 = vmatpush.bf16.msrb.mxu0 %v4152_v40  ;;  %1540 = vmatpush.bf16.msrb.mxu1 %v4305_v31 }
 0x277   : > { %1452 = vmatpush.bf16.msrb.mxu3 %v4232_v6 }
 0x278   : > { %1528 = vmatpush.bf16.msrb.mxu0 %v4179_v50  ;;  %1541 = vmatpush.bf16.msrb.mxu1 %v4321_v37 }
 0x2d7   : > { %v1237_v30 = vpop.f32.mrf.mxu0 }
 0x2d8   : > { %v1238_v27 = vadd.f32 %v1237_v30, %v4412_v12  ;;  %v1250_v0 = vpop.f32.mrf.mxu1 }
 0x2da   : > { %v1274_v41 = vadd.f32 %v1238_v27, %v671_v33 }
 0x2dc   : > { %v3351_v38 = vmul.f32 -1.442695, %v1274_v41  ;;  %v1506_v41 = vsel %vm1505_vm7, 1, %v5598_v36 }
 0x2dd   : > { %v1224_v51 = vpop.f32.mrf.mxu3  ;;  %1508 = vperm.xlu2 %3768, %v1506_v41  }
 0x2de   : > { %3801 = vpow2.f32 %v3351_v38  ;;  %v1225_v52 = vadd.f32 %v1224_v51, %v4396_v49 }
 0x2df   : > { %v1239_v58 = vpop.f32.mrf.mxu0 }
 0x2e0   : > { %v1254_v4 = vadd.f32 %v1225_v52, %v642_v44  ;;  %v1252_v11 = vpop.f32.mrf.mxu1  ;;  %v1251_v52 = vadd.f32 %v1250_v0, %v4416_v39 }
 0x2e1   : > { %v700_v11 = vadd.f32 %v4474_v21, %v4419_v60 }
 0x2e2   : > { %v3350_v9 = vmul.f32 -1.442695, %v1254_v4 }
 0x2e4   : > { %v3802_v56 = vpop.eup %3801  ;;  %3803 = vpow2.f32 %v3350_v9 }
 0x2e5   : > { %v1278_v32 = vadd.f32 1.0, %v3802_v56  ;;  %v1226_v19 = vpop.f32.mrf.mxu3 }
 0x2e7   : > { %3805 = vrcp.f32 %v1278_v32  ;;  %v1290_v9 = vand.u32 2147483648, %v1278_v32  ;;  %vm1284_vm0 = vweird.f32 %v1278_v32  ;;  %v1288_v19 = vand.u32 2147483647, %v1278_v32 }
 0x2e9   : > { %vm1289_vm2 = vcmp.eq.f32.partialorder %v1288_v19, 8.507059e+37  ;;  %v703_v19 = vadd.f32 %v4478_v26, %v4419_v60 }
 0x2ea   : > { %v3804_v48 = vpop.eup %3803 }
 0x2eb   : > { %v1258_v45 = vadd.f32 1.0, %v3804_v48 }
 0x2ed   : > { %3807 = vrcp.f32 %v1258_v45  ;;  %v3806_v10 = vpop.eup %3805  ;;  %v1270_v30 = vand.u32 2147483648, %v1258_v45  ;;  %v1268_v27 = vand.u32 2147483647, %v1258_v45  ;;  %vm1264_vm9 = vweird.f32 %v1258_v45 }
 0x2ee   : > { %v1280_v14 = vmul.f32 %v3806_v10, %v1278_v32  ;;  %vm1285_vm15 = vweird.f32 %v3806_v10 }
 0x2ef   : > { %v1271_v44 = vor.u32 1.1754944e-38, %v1270_v30  ;;  %vm1269_vm12 = vcmp.eq.f32.partialorder %v1268_v27, 8.507059e+37  ;;  %vm1286_vm1 = vmor %vm1284_vm0, %vm1285_vm15 }
 0x2f0   : > { %v1281_v16 = vsub.f32 1.0, %v1280_v14  ;;  %v1291_v14 = vor.u32 1.1754944e-38, %v1290_v9 }
 0x2f2   : > { %v1282_v38 = vmul.f32 %v3806_v10, %v1281_v16 }
 0x2f3   : > { %v3808_v55 = vpop.eup %3807 }
 0x2f4   : > { %v1260_v1 = vmul.f32 %v3808_v55, %v1258_v45  ;;  %vm1265_vm8 = vweird.f32 %v3808_v55  ;;  %v1283_v4 = vadd.f32 %v3806_v10, %v1282_v38 }
 0x2f5   : > { %vm1266_vm11 = vmor %vm1264_vm9, %vm1265_vm8 }
 0x2f6   : > { %v1261_v42 = vsub.f32 1.0, %v1260_v1  ;;  %v1287_v45 = vsel %vm1286_vm1, %v3806_v10, %v1283_v4 }
 0x2f7   : > { %v1292_v47 = vsel %vm1289_vm2, %v1291_v14, %v1287_v45 }
 0x2f8   : > { %v1262_v33 = vmul.f32 %v3808_v55, %v1261_v42  ;;  %v1297_v0 = vsub.f32 1.0, %v1292_v47  ;;  %v1299_v16 = vmul.f32 %v1292_v47, %v4555_v2  ;;  %v4597_v42 = vpop.permute.xlu1 %1304 }
 0x2f9   : > { %vm1306_vm3 = vcmp.eq.s32.totalorder %v4597_v42, 1 }
 0x2fa   : > { %v1263_v51 = vadd.f32 %v3808_v55, %v1262_v33 }
 0x2fc   : > { %v1267_v58 = vsel %vm1266_vm11, %v3808_v55, %v1263_v51 }
 0x2fd   : > { %v1272_v18 = vsel %vm1269_vm12, %v1271_v44, %v1267_v58 }
 0x2fe   : > { %v1294_v56 = vmul.f32 %v1272_v18, %v1251_v52 }
 0x300   : > { %v1295_v48 = vadd.f32 %v1294_v56, %v700_v11 }
 0x302   : > { %3809 = vtanh.f32 %v1295_v48 }
 0x308   : > { %v3810_v55 = vpop.eup %3809 }
 0x309   : > { %v1298_v1 = vmul.f32 %v3810_v55, %v1297_v0 }
 0x30b   : > { %v1300_v30 = vadd.f32 %v1299_v16, %v1298_v1 }
 0x30d   : > { %v4603_v21 = vsel %vm1306_vm3, %v1300_v30, %v4555_v2 }
 0x30e   : > { %v1308_v32 = vpack.c.bf16 %v4603_v21, %v4603_v21 }
 0x310   : > { %1310 = vst [vmem:[#allocation3 + $0xc] sm:$0xf] %v1308_v32  ;;  %1325 = vmatmul.bf16.vlgmr.msrb.gmra.mxu2 %v1308_v32  ;;  %1338 = vmatmul.bf16.vlgmr.msra.gmra.mxu3 %v1308_v32 }
 0x311   : > { %1351 = vmatmul.bf16.vlgmr.msra.gmra.mxu0 %v1308_v32  ;;  %1547 = vmatpush.bf16.msrb.mxu2 %v4077_v15  ;;  %v4639_v32 = vpop.permute.xlu2 %1406 }
 0x312   : > { %1623 = vmatpush.bf16.msra.mxu3 %v4042_v3  ;;  %1636 = vmatpush.bf16.msra.mxu0 %v4188_v53  ;;  %5599 = vst [vmem:[#allocation15_spill] sm:$0xff] %v4639_v32  ;;  %vm1408_vm0 = vcmp.eq.s32.totalorder %v4639_v32, 1 }
 0x315   : > { %1548 = vmatpush.bf16.msrb.mxu2 %v4100_v22 }
 0x316   : > { %1624 = vmatpush.bf16.msra.mxu3 %v4051_v8  ;;  %1637 = vmatpush.bf16.msra.mxu0 %v4213_v62 }
 0x319   : > { %1549 = vmatpush.bf16.msrb.mxu2 %v4118_v28 }
 0x31a   : > { %1625 = vmatpush.bf16.msra.mxu3 %v4083_v17  ;;  %1638 = vmatpush.bf16.msra.mxu0 %v4237_v7 }
 0x31d   : > { %1550 = vmatpush.bf16.msrb.mxu2 %v4136_v34 }
 0x31e   : > { %1626 = vmatpush.bf16.msra.mxu3 %v4103_v23  ;;  %1639 = vmatpush.bf16.msra.mxu0 %v4259_v13  ;;  %v674_v23 = vadd.f32 %v4476_v24, %v4408_v5 }
 0x321   : > { %1551 = vmatpush.bf16.msrb.mxu2 %v4166_v46 }
 0x322   : > { %1627 = vmatpush.bf16.msra.mxu3 %v4121_v29  ;;  %1640 = vmatpush.bf16.msra.mxu0 %v4277_v20 }
 0x325   : > { %1552 = vmatpush.bf16.msrb.mxu2 %v4190_v54 }
 0x326   : > { %1628 = vmatpush.bf16.msra.mxu3 %v4139_v35  ;;  %1641 = vmatpush.bf16.msra.mxu0 %v4292_v25 }
 0x329   : > { %1553 = vmatpush.bf16.msrb.mxu2 %v4215_v63 }
 0x32a   : > { %1629 = vmatpush.bf16.msra.mxu3 %v4152_v40  ;;  %1642 = vmatpush.bf16.msra.mxu0 %v4305_v31 }
 0x32d   : > { %1554 = vmatpush.bf16.msrb.mxu2 %v4232_v6 }
 0x32e   : > { %1630 = vmatpush.bf16.msra.mxu3 %v4179_v50  ;;  %1643 = vmatpush.bf16.msra.mxu0 %v4321_v37 }
 0x38e   : > { %v1352_v3 = vpop.f32.mrf.mxu0 }
 0x38f   : > { %v1353_v18 = vadd.f32 %v1352_v3, %v4416_v39 }
 0x393   : > { %v1326_v8 = vpop.f32.mrf.mxu2  ;;  %v1339_v17 = vpop.f32.mrf.mxu3 }
 0x394   : > { %v1327_v29 = vadd.f32 %v1326_v8, %v4396_v49  ;;  %v1340_v35 = vadd.f32 %v1339_v17, %v4412_v12 }
 0x396   : > { %v1356_v40 = vadd.f32 %v1327_v29, %v4401_v57  ;;  %v1376_v53 = vadd.f32 %v1340_v35, %v674_v23  ;;  %v1354_v62 = vpop.f32.mrf.mxu0  ;;  %v5600_v29 = vld [vmem:[#allocation4_spill] sm:$0xff] }
 0x397   : > { %v647_v35 = vadd.f32 %v5600_v29, %v4386_v43 }
 0x398   : > { %v3352_v7 = vmul.f32 -1.442695, %v1356_v40  ;;  %v3353_v13 = vmul.f32 -1.442695, %v1376_v53  ;;  %v3712_v40 = vld [vmem:[%s5564_s7 + $0x98] sm:$0xf0] }
 0x399   : > { %v5601_v53 = vld [vmem:[#allocation9_spill] sm:$0xff] }
 0x39a   : > { %3811 = vpow2.f32 %v3352_v7  ;;  %v676_v62 = vadd.f32 %v5601_v53, %v4408_v5 }
 0x39b   : > { %3813 = vpow2.f32 %v3353_v13  ;;  %v1328_v50 = vpop.f32.mrf.mxu2  ;;  %v1341_v20 = vpop.f32.mrf.mxu3 }
 0x3a0   : > { %v3812_v25 = vpop.eup %3811 }
 0x3a1   : > { %v3814_v31 = vpop.eup %3813  ;;  %v1360_v37 = vadd.f32 1.0, %v3812_v25 }
 0x3a2   : > { %v1380_v2 = vadd.f32 1.0, %v3814_v31  ;;  %v3438_v31 = vld [vmem:[%s5564_s7 + $0x78] sm:$0xf] }
 0x3a3   : > { %3815 = vrcp.f32 %v1360_v37  ;;  %v1372_v57 = vand.u32 2147483648, %v1360_v37  ;;  %v1370_v44 = vand.u32 2147483647, %v1360_v37  ;;  %vm1366_vm6 = vweird.f32 %v1360_v37 }
 0x3a4   : > { %3817 = vrcp.f32 %v1380_v2  ;;  %v1392_v48 = vand.u32 2147483648, %v1380_v2  ;;  %vm1386_vm11 = vweird.f32 %v1380_v2  ;;  %v1390_v14 = vand.u32 2147483647, %v1380_v2 }
 0x3a5   : > { %v1373_v4 = vor.u32 1.1754944e-38, %v1372_v57  ;;  %vm1371_vm8 = vcmp.eq.f32.partialorder %v1370_v44, 8.507059e+37  ;;  %v3706_v57 = vld [vmem:[%s5564_s7 + $0x68] sm:$0xf0]  ;;  %v3414_v44 = vld [vmem:[%s5564_s7 + $0x48] sm:$0xf] }
 0x3a6   : > { %v1393_v55 = vor.u32 1.1754944e-38, %v1392_v48  ;;  %vm1391_vm15 = vcmp.eq.f32.partialorder %v1390_v14, 8.507059e+37  ;;  %v3390_v48 = vld [vmem:[%s5564_s7 + $0x18] sm:$0xf] }
 0x3a9   : > { %v3816_v24 = vpop.eup %3815 }
 0x3aa   : > { %v3818_v10 = vpop.eup %3817  ;;  %v1362_v33 = vmul.f32 %v3816_v24, %v1360_v37  ;;  %vm1367_vm4 = vweird.f32 %v3816_v24  ;;  %v3709_v37 = vld [vmem:[%s5564_s7 + $0x80] sm:$0xf0] }
 0x3ab   : > { %v1382_v27 = vmul.f32 %v3818_v10, %v1380_v2  ;;  %vm1368_vm7 = vmor %vm1366_vm6, %vm1367_vm4  ;;  %vm1387_vm9 = vweird.f32 %v3818_v10 }
 0x3ac   : > { %v1363_v41 = vsub.f32 1.0, %v1362_v33  ;;  %vm1388_vm12 = vmor %vm1386_vm11, %vm1387_vm9 }
 0x3ad   : > { %v1383_v38 = vsub.f32 1.0, %v1382_v27 }
 0x3ae   : > { %v1364_v51 = vmul.f32 %v3816_v24, %v1363_v41  ;;  %v3426_v41 = vld [vmem:[%s5564_s7 + $0x60] sm:$0xf] }
 0x3af   : > { %v1384_v52 = vmul.f32 %v3818_v10, %v1383_v38 }
 0x3b0   : > { %v1365_v58 = vadd.f32 %v3816_v24, %v1364_v51  ;;  %v3427_v51 = vor.u32 %v3706_v57, %v3426_v41  ;;  %v4729_v41 = vld [vmem:[#allocation3 + $0x8] sm:$0xff] }
 0x3b1   : > { %v1385_v56 = vadd.f32 %v3818_v10, %v1384_v52  ;;  %v3703_v52 = vld [vmem:[%s5564_s7 + $0x50] sm:$0xf0] }
 0x3b2   : > { %v1369_v11 = vsel %vm1368_vm7, %v3816_v24, %v1365_v58  ;;  %v3439_v24 = vor.u32 %v3709_v37, %v3438_v31  ;;  %v4715_v31 = vpop.permute.xlu2 %1508 }
 0x3b3   : > { %v1374_v9 = vsel %vm1371_vm8, %v1373_v4, %v1369_v11  ;;  %v1389_v0 = vsel %vm1388_vm12, %v3818_v10, %v1385_v56  ;;  %v3415_v4 = vor.u32 %v3703_v52, %v3414_v44  ;;  %v3402_v11 = vld [vmem:[%s5564_s7 + $0x30] sm:$0xf]  ;;  %5603 = vst [vmem:[#allocation4_spill] sm:$0xff] %v4715_v31  ;;  %vm1510_vm12 = vcmp.eq.s32.totalorder %v4715_v31, 1  ;;  %v3736_v52 = vld [vmem:[%s5565_s8 + $0x98] sm:$0xf0] }
 0x3b4   : > { %v1396_v45 = vmul.f32 %v1374_v9, %v1353_v18  ;;  %v1394_v1 = vsel %vm1391_vm15, %v1393_v55, %v1389_v0  ;;  %v3700_v9 = vld [vmem:[%s5564_s7 + $0x38] sm:$0xf0]  ;;  %v3546_v44 = vld [vmem:[%s5565_s8 + $0x90] sm:$0xf] }
 0x3b5   : > { %v1399_v16 = vsub.f32 1.0, %v1394_v1  ;;  %v1401_v8 = vmul.f32 %v1394_v1, %v4603_v21  ;;  %v3403_v56 = vor.u32 %v3700_v9, %v3402_v11  ;;  %v3378_v1 = vld [vmem:[%s5564_s7] sm:$0xf] }
 0x3b6   : > { %v1397_v47 = vadd.f32 %v1396_v45, %v703_v19  ;;  %v3697_v45 = vld [vmem:[%s5564_s7 + $0x20] sm:$0xf0] }
 0x3b7   : > { %v3391_v0 = vor.u32 %v3697_v45, %v3390_v48 }
 0x3b8   : > { %3819 = vtanh.f32 %v1397_v47 }
 0x3be   : > { %v3820_v30 = vpop.eup %3819 }
 0x3bf   : > { %v1400_v3 = vmul.f32 %v3820_v30, %v1399_v16  ;;  %v3694_v16 = vld [vmem:[%s5564_s7 + $0x8] sm:$0xf0] }
 0x3c1   : > { %v1402_v26 = vadd.f32 %v1401_v8, %v1400_v3 }
 0x3c3   : > { %v4646_v17 = vsel %vm1408_vm0, %v1402_v26, %v4603_v21 }
 0x3c4   : > { %v1410_v23 = vpack.c.bf16 %v4646_v17, %v4646_v17 }
 0x3c6   : > { %1412 = vst [vmem:[#allocation3 + $0x10] sm:$0xf] %v1410_v23  ;;  %1427 = vmatmul.bf16.vlgmr.msra.gmra.mxu1 %v1410_v23  ;;  %1440 = vmatmul.bf16.vlgmr.msra.gmra.mxu2 %v1410_v23 }
 0x3c7   : > { %1453 = vmatmul.bf16.vlgmr.msrb.gmra.mxu3 %v1410_v23  ;;  %1649 = vmatpush.bf16.msra.mxu1 %v4077_v15 }
 0x3cb   : > { %1650 = vmatpush.bf16.msra.mxu1 %v4100_v22  ;;  %v3462_v22 = vld [vmem:[%s5564_s7 + $0xa8] sm:$0xf] }
 0x3cf   : > { %1651 = vmatpush.bf16.msra.mxu1 %v4118_v28  ;;  %v3715_v28 = vld [vmem:[%s5564_s7 + $0xb0] sm:$0xf0] }
 0x3d3   : > { %1652 = vmatpush.bf16.msra.mxu1 %v4136_v34 }
 0x3d7   : > { %1653 = vmatpush.bf16.msra.mxu1 %v4166_v46  ;;  %v3463_v46 = vor.u32 %v3715_v28, %v3462_v22  ;;  %v5602_v28 = vld [vmem:[#allocation10_spill] sm:$0xff] }
 0x3d9   : > { %1919 = vmatpush.bf16.msra.mxu2 %v3463_v46 }
 0x3db   : > { %1654 = vmatpush.bf16.msra.mxu1 %v4190_v54 }
 0x3df   : > { %1655 = vmatpush.bf16.msra.mxu1 %v4215_v63 }
 0x3e3   : > { %1656 = vmatpush.bf16.msra.mxu1 %v4232_v6  ;;  %v3450_v6 = vld [vmem:[%s5564_s7 + $0x90] sm:$0xf] }
 0x3e4   : > { %v3451_v50 = vor.u32 %v3712_v40, %v3450_v6 }
 0x3e6   : > { %1920 = vmatpush.bf16.msra.mxu2 %v3451_v50 }
 0x3ea   : > { %1921 = vmatpush.bf16.msra.mxu2 %v3439_v24 }
 0x3ee   : > { %1922 = vmatpush.bf16.msra.mxu2 %v3427_v51 }
 0x3f2   : > { %1923 = vmatpush.bf16.msra.mxu2 %v3415_v4  ;;  %v3534_v4 = vld [vmem:[%s5565_s8 + $0x78] sm:$0xf] }
 0x3f6   : > { %1924 = vmatpush.bf16.msra.mxu2 %v3403_v56 }
 0x3fa   : > { %1925 = vmatpush.bf16.msra.mxu2 %v3391_v0  ;;  %v3730_v0 = vld [vmem:[%s5565_s8 + $0x68] sm:$0xf0] }
 0x443   : > { %v1428_v21 = vpop.f32.mrf.mxu1 }
 0x444   : > { %v1429_v15 = vadd.f32 %v1428_v21, %v4396_v49  ;;  %v3379_v21 = vor.u32 %v3694_v16, %v3378_v1  ;;  %v3714_v1 = vld [vmem:[%s5564_s7 + $0xac] sm:$0xf]  ;;  %v3464_v16 = vld [vmem:[%s5564_s7 + $0xb4] sm:$0xf0] }
 0x446   : > { %v1458_v34 = vadd.f32 %v1429_v15, %v647_v35  ;;  %1926 = vmatpush.bf16.msra.mxu2 %v3379_v21  ;;  %v3716_v21 = vld [vmem:[%s5564_s7 + $0xb8] sm:$0xf0] }
 0x448   : > { %v3354_v54 = vmul.f32 -1.442695, %v1458_v34  ;;  %v705_v34 = vadd.f32 %v5602_v28, %v4419_v60  ;;  %v3727_v28 = vld [vmem:[%s5565_s8 + $0x50] sm:$0xf0] }
 0x449   : > { %v1441_v63 = vpop.f32.mrf.mxu2 }
 0x44a   : > { %3821 = vpow2.f32 %v3354_v54  ;;  %v1442_v7 = vadd.f32 %v1441_v63, %v4412_v12  ;;  %v1454_v13 = vpop.f32.mrf.mxu3 }
 0x44b   : > { %v1430_v20 = vpop.f32.mrf.mxu1  ;;  %v1455_v15 = vadd.f32 %v1454_v13, %v4416_v39 }
 0x44c   : > { %v1478_v25 = vadd.f32 %v1442_v7, %v676_v62 }
 0x44e   : > { %v3355_v2 = vmul.f32 -1.442695, %v1478_v25 }
 0x450   : > { %v3822_v10 = vpop.eup %3821  ;;  %3823 = vpow2.f32 %v3355_v2 }
 0x451   : > { %v1462_v33 = vadd.f32 1.0, %v3822_v10  ;;  %v1443_v27 = vpop.f32.mrf.mxu2 }
 0x452   : > { %v1456_v38 = vpop.f32.mrf.mxu3  ;;  %v4726_v27 = vld [vmem:[#allocation3] sm:$0xff] }
 0x453   : > { %3825 = vrcp.f32 %v1462_v33  ;;  %v1474_v55 = vand.u32 2147483648, %v1462_v33  ;;  %v1472_v3 = vand.u32 2147483647, %v1462_v33  ;;  %vm1468_vm2 = vweird.f32 %v1462_v33  ;;  %v3739_v38 = vld [vmem:[%s5565_s8 + $0xb0] sm:$0xf0] }
 0x455   : > { %v1475_v29 = vor.u32 1.1754944e-38, %v1474_v55  ;;  %vm1473_vm6 = vcmp.eq.f32.partialorder %v1472_v3, 8.507059e+37  ;;  %v5605_v3 = vld [vmem:[#allocation5_spill] sm:$0xff] }
 0x456   : > { %v3824_v58 = vpop.eup %3823 }
 0x457   : > { %v1482_v18 = vadd.f32 1.0, %v3824_v58  ;;  %v4750_v58 = vor.u32 %v3736_v52, %v3546_v44  ;;  %v3486_v52 = vld [vmem:[%s5565_s8 + $0x18] sm:$0xf] }
 0x459   : > { %v3826_v19 = vpop.eup %3825  ;;  %3827 = vrcp.f32 %v1482_v18  ;;  %v1494_v63 = vand.u32 2147483648, %v1482_v18  ;;  %v1492_v40 = vand.u32 2147483647, %v1482_v18  ;;  %vm1488_vm8 = vweird.f32 %v1482_v18 }
 0x45a   : > { %v1464_v14 = vmul.f32 %v3826_v19, %v1462_v33  ;;  %vm1469_vm1 = vweird.f32 %v3826_v19 }
 0x45b   : > { %vm1470_vm4 = vmor %vm1468_vm2, %vm1469_vm1  ;;  %v1495_v7 = vor.u32 1.1754944e-38, %v1494_v63  ;;  %vm1493_vm11 = vcmp.eq.f32.partialorder %v1492_v40, 8.507059e+37  ;;  %v3458_v40 = vld [vmem:[%s5564_s7 + $0x98] sm:$0xf] }
 0x45c   : > { %v1465_v47 = vsub.f32 1.0, %v1464_v14 }
 0x45e   : > { %v1466_v30 = vmul.f32 %v3826_v19, %v1465_v47  ;;  %v3522_v47 = vld [vmem:[%s5565_s8 + $0x60] sm:$0xf] }
 0x45f   : > { %v3828_v8 = vpop.eup %3827  ;;  %v4772_v55 = vor.u32 %v3730_v0, %v3522_v47  ;;  %v3434_v0 = vld [vmem:[%s5564_s7 + $0x68] sm:$0xf] }
 0x460   : > { %v1484_v26 = vmul.f32 %v3828_v8, %v1482_v18  ;;  %v1467_v23 = vadd.f32 %v3826_v19, %v1466_v30  ;;  %vm1489_vm7 = vweird.f32 %v3828_v8  ;;  %v3733_v18 = vld [vmem:[%s5565_s8 + $0x80] sm:$0xf0]  ;;  %v3470_v30 = vld [vmem:[%s5564_s7 + $0xb0] sm:$0xf] }
 0x461   : > { %vm1490_vm9 = vmor %vm1488_vm8, %vm1489_vm7  ;;  %v4759_v11 = vor.u32 %v3733_v18, %v3534_v4  ;;  %v3721_v4 = vld [vmem:[%s5565_s8 + $0x20] sm:$0xf0] }
 0x462   : > { %v1485_v35 = vsub.f32 1.0, %v1484_v26  ;;  %v1471_v22 = vsel %vm1470_vm4, %v3826_v19, %v1467_v23  ;;  %v5604_v19 = vld [vmem:[#allocation11_spill] sm:$0xff]  ;;  %v3467_v23 = vor.u32 %v3714_v1, %v3464_v16  ;;  %v3707_v1 = vld [vmem:[%s5564_s7 + $0x70] sm:$0xf0]  ;;  %v3474_v16 = vld [vmem:[%s5565_s8] sm:$0xf] }
 0x463   : > { %v1476_v46 = vsel %vm1473_vm6, %v1475_v29, %v1471_v22  ;;  %v679_v48 = vadd.f32 %v5604_v19, %v4408_v5  ;;  %v3471_v29 = vor.u32 %v3716_v21, %v3470_v30  ;;  %v3510_v22 = vld [vmem:[%s5565_s8 + $0x48] sm:$0xf]  ;;  %v3705_v19 = vld [vmem:[%s5564_s7 + $0x64] sm:$0xf]  ;;  %v3435_v30 = vor.u32 %v3707_v1, %v3434_v0  ;;  %v3422_v21 = vld [vmem:[%s5564_s7 + $0x50] sm:$0xf] }
 0x464   : > { %v1486_v54 = vmul.f32 %v3828_v8, %v1485_v35  ;;  %v1498_v6 = vmul.f32 %v1476_v46, %v1455_v15  ;;  %1948 = vmatpush.bf16.msrb.mxu3 %v3467_v23  ;;  %v3452_v46 = vld [vmem:[%s5564_s7 + $0x9c] sm:$0xf0]  ;;  %v4802_v63 = vor.u32 %v3727_v28, %v3510_v22  ;;  %v3416_v23 = vld [vmem:[%s5564_s7 + $0x54] sm:$0xf0]  ;;  %v3699_v28 = vld [vmem:[%s5564_s7 + $0x34] sm:$0xf] }
 0x465   : > { %v3386_v0 = vld [vmem:[%s5564_s7 + $0x8] sm:$0xf] }
 0x466   : > { %v1487_v53 = vadd.f32 %v3828_v8, %v1486_v54  ;;  %v1499_v62 = vadd.f32 %v1498_v6, %v705_v34  ;;  %v3711_v34 = vld [vmem:[%s5564_s7 + $0x94] sm:$0xf] }
 0x467   : > { %v3455_v6 = vor.u32 %v3711_v34, %v3452_v46  ;;  %v3404_v34 = vld [vmem:[%s5564_s7 + $0x3c] sm:$0xf0]  ;;  %v3410_v46 = vld [vmem:[%s5564_s7 + $0x38] sm:$0xf] }
 0x468   : > { %v1491_v50 = vsel %vm1490_vm9, %v3828_v8, %v1487_v53  ;;  %3829 = vtanh.f32 %v1499_v62  ;;  %v3713_v53 = vld [vmem:[%s5564_s7 + $0xa0] sm:$0xf0] }
 0x469   : > { %v1496_v13 = vsel %vm1493_vm11, %v1495_v7, %v1491_v50  ;;  %v3459_v50 = vor.u32 %v3713_v53, %v3458_v40  ;;  %1949 = vmatpush.bf16.msrb.mxu3 %v3455_v6  ;;  %v3407_v53 = vor.u32 %v3699_v28, %v3404_v34 }
 0x46a   : > { %v1501_v20 = vsub.f32 1.0, %v1496_v13  ;;  %v1503_v2 = vmul.f32 %v1496_v13, %v4646_v17  ;;  %v3498_v13 = vld [vmem:[%s5565_s8 + $0x30] sm:$0xf] }
 0x46e   : > { %v3830_v25 = vpop.eup %3829 }
 0x46f   : > { %v1502_v37 = vmul.f32 %v3830_v25, %v1501_v20  ;;  %v3724_v20 = vld [vmem:[%s5565_s8 + $0x38] sm:$0xf0] }
 0x470   : > { %v4817_v25 = vor.u32 %v3724_v20, %v3498_v13 }
 0x471   : > { %v1504_v24 = vadd.f32 %v1503_v2, %v1502_v37  ;;  %v3708_v37 = vld [vmem:[%s5564_s7 + $0x7c] sm:$0xf]  ;;  %v3440_v2 = vld [vmem:[%s5564_s7 + $0x84] sm:$0xf0] }
 0x473   : > { %v4722_v10 = vsel %vm1510_vm12, %v1504_v24, %v4646_v17  ;;  %v3558_v17 = vld [vmem:[%s5565_s8 + $0xa8] sm:$0xf]  ;;  %v3446_v24 = vld [vmem:[%s5564_s7 + $0x80] sm:$0xf] }
 0x474   : > { %v1512_v33 = vpack.c.bf16 %v4722_v10, %v4722_v10  ;;  %v4741_v51 = vor.u32 %v3739_v38, %v3558_v17  ;;  %v3710_v17 = vld [vmem:[%s5564_s7 + $0x88] sm:$0xf0] }
 0x475   : > { %v3447_v38 = vor.u32 %v3710_v17, %v3446_v24  ;;  %v3398_v17 = vld [vmem:[%s5564_s7 + $0x20] sm:$0xf] }
 0x476   : > { %1514 = vst [vmem:[#allocation3 + $0x14] sm:$0xf] %v1512_v33  ;;  %1529 = vmatmul.bf16.vlgmr.msrb.gmra.mxu0 %v1512_v33  ;;  %1542 = vmatmul.bf16.vlgmr.msrb.gmra.mxu1 %v1512_v33 }
 0x477   : > { %1555 = vmatmul.bf16.vlgmr.msrb.gmra.mxu2 %v1512_v33  ;;  %2201 = vmatpush.bf16.msrb.mxu1 %v4741_v51  ;;  %v3443_v33 = vor.u32 %v3708_v37, %v3440_v2  ;;  %v3696_v37 = vld [vmem:[%s5564_s7 + $0x1c] sm:$0xf]  ;;  %v3392_v2 = vld [vmem:[%s5564_s7 + $0x24] sm:$0xf0] }
 0x478   : > { %1977 = vmatpush.bf16.msrb.mxu0 %v3471_v29 }
 0x479   : > { %1950 = vmatpush.bf16.msrb.mxu3 %v3443_v33  ;;  %v3395_v33 = vor.u32 %v3696_v37, %v3392_v2 }
 0x47b   : > { %2202 = vmatpush.bf16.msrb.mxu1 %v4750_v58 }
 0x47c   : > { %1978 = vmatpush.bf16.msrb.mxu0 %v3459_v50 }
 0x47d   : > { %v4732_v57 = vld [vmem:[#allocation3 + $0x10] sm:$0xff] }
 0x47f   : > { %2203 = vmatpush.bf16.msrb.mxu1 %v4759_v11 }
 0x480   : > { %1979 = vmatpush.bf16.msrb.mxu0 %v3447_v38  ;;  %v3698_v38 = vld [vmem:[%s5564_s7 + $0x28] sm:$0xf0] }
 0x483   : > { %2204 = vmatpush.bf16.msrb.mxu1 %v4772_v55 }
 0x484   : > { %1980 = vmatpush.bf16.msrb.mxu0 %v3435_v30  ;;  %v3695_v30 = vld [vmem:[%s5564_s7 + $0x10] sm:$0xf0] }
 0x487   : > { %1927 = vmatmul.bf16.vlgmr.msra.gmra.mxu2 %v4726_v27  ;;  %2205 = vmatpush.bf16.msrb.mxu1 %v4802_v63 }
 0x48b   : > { %2206 = vmatpush.bf16.msrb.mxu1 %v4817_v25 }
 0x497   : > { %1932 = vmatmul.bf16.gmra.mxu2 %v4729_v41 }
 0x4a7   : > { %1937 = vmatmul.bf16.gmra.mxu2 %v4732_v57 }
 0x4f3   : > { %v1530_v9 = vpop.f32.mrf.mxu0  ;;  %v1543_v56 = vpop.f32.mrf.mxu1 }
 0x4f4   : > { %v1531_v45 = vadd.f32 %v1530_v9, %v4396_v49  ;;  %v1544_v14 = vadd.f32 %v1543_v56, %v4412_v12  ;;  %v4840_v56 = vor.u32 %v3721_v4, %v3486_v52 }
 0x4f6   : > { %v1560_v8 = vadd.f32 %v1531_v45, %v5605_v3  ;;  %v1580_v26 = vadd.f32 %v1544_v14, %v679_v48  ;;  %v3428_v48 = vld [vmem:[%s5564_s7 + $0x6c] sm:$0xf0]  ;;  %2207 = vmatpush.bf16.msrb.mxu1 %v4840_v56  ;;  %v3718_v3 = vld [vmem:[%s5565_s8 + $0x8] sm:$0xf0] }
 0x4f7   : > { %v3431_v47 = vor.u32 %v3705_v19, %v3428_v48 }
 0x4f8   : > { %v3356_v35 = vmul.f32 -1.442695, %v1560_v8  ;;  %v3357_v15 = vmul.f32 -1.442695, %v1580_v26  ;;  %v3702_v8 = vld [vmem:[%s5564_s7 + $0x4c] sm:$0xf]  ;;  %v4868_v26 = vor.u32 %v3718_v3, %v3474_v16 }
 0x4f9   : > { %1951 = vmatpush.bf16.msrb.mxu3 %v3431_v47  ;;  %v3419_v29 = vor.u32 %v3702_v8, %v3416_v23  ;;  %v3380_v47 = vld [vmem:[%s5564_s7 + $0xc] sm:$0xf0]  ;;  %v3387_v23 = vor.u32 %v3695_v30, %v3386_v0  ;;  %v3500_v0 = vld [vmem:[%s5565_s8 + $0x3c] sm:$0xf0]  ;;  %v3717_v30 = vld [vmem:[%s5565_s8 + $0x4] sm:$0xf] }
 0x4fa   : > { %3831 = vpow2.f32 %v3356_v35  ;;  %v4800_v54 = vpop.f32.mrf.mxu2  ;;  %v3704_v35 = vld [vmem:[%s5564_s7 + $0x58] sm:$0xf0]  ;;  %2208 = vmatpush.bf16.msrb.mxu1 %v4868_v26 }
 0x4fb   : > { %3833 = vpow2.f32 %v3357_v15  ;;  %v1532_v62 = vpop.f32.mrf.mxu0  ;;  %v1545_v7 = vpop.f32.mrf.mxu1  ;;  %v3423_v15 = vor.u32 %v3704_v35, %v3422_v21  ;;  %v5606_v21 = vld [vmem:[#allocation12_spill] sm:$0xff] }
 0x4fc   : > { %v3701_v62 = vld [vmem:[%s5564_s7 + $0x40] sm:$0xf0] }
 0x4fd   : > { %1952 = vmatpush.bf16.msrb.mxu3 %v3419_v29  ;;  %1981 = vmatpush.bf16.msrb.mxu0 %v3423_v15  ;;  %v3411_v50 = vor.u32 %v3701_v62, %v3410_v46  ;;  %v708_v29 = vadd.f32 %v5606_v21, %v4419_v60  ;;  %v4928_v62 = vpop.permute.xlu0 %1610 }
 0x4fe   : > { %5607 = vst [vmem:[#allocation9_spill] sm:$0xff] %v4928_v62  ;;  %vm1612_vm11 = vcmp.eq.s32.totalorder %v4928_v62, 1 }
 0x500   : > { %v3832_v44 = vpop.eup %3831 }
 0x501   : > { %v3834_v18 = vpop.eup %3833  ;;  %v4838_v9 = vadd.f32 1.0, %v3832_v44  ;;  %1953 = vmatpush.bf16.msrb.mxu3 %v3407_v53  ;;  %1982 = vmatpush.bf16.msrb.mxu0 %v3411_v50 }
 0x502   : > { %v4848_v45 = vadd.f32 1.0, %v3834_v18  ;;  %v1558_v14 = vpop.f32.mrf.mxu2  ;;  %v3399_v18 = vor.u32 %v3698_v38, %v3398_v17  ;;  %v3732_v17 = vld [vmem:[%s5565_s8 + $0x7c] sm:$0xf]  ;;  %v3536_v38 = vld [vmem:[%s5565_s8 + $0x84] sm:$0xf0] }
 0x503   : > { %3835 = vrcp.f32 %v4838_v9  ;;  %v1576_v20 = vand.u32 2147483648, %v4838_v9  ;;  %v1574_v52 = vand.u32 2147483647, %v4838_v9  ;;  %vm1570_vm1 = vweird.f32 %v4838_v9  ;;  %v3693_v14 = vld [vmem:[%s5564_s7 + $0x4] sm:$0xf] }
 0x504   : > { %3837 = vrcp.f32 %v4848_v45  ;;  %v3383_v16 = vor.u32 %v3693_v14, %v3380_v47  ;;  %v1596_v35 = vand.u32 2147483648, %v4848_v45  ;;  %vm1590_vm7 = vweird.f32 %v4848_v45  ;;  %v3723_v47 = vld [vmem:[%s5565_s8 + $0x34] sm:$0xf] }
 0x505   : > { %v1577_v48 = vor.u32 1.1754944e-38, %v1576_v20  ;;  %1954 = vmatpush.bf16.msrb.mxu3 %v3395_v33  ;;  %vm1575_vm4 = vcmp.eq.f32.partialorder %v1574_v52, 8.507059e+37  ;;  %1983 = vmatpush.bf16.msrb.mxu0 %v3399_v18  ;;  %v3548_v33 = vld [vmem:[%s5565_s8 + $0x9c] sm:$0xf0]  ;;  %v3729_v52 = vld [vmem:[%s5565_s8 + $0x64] sm:$0xf] }
 0x506   : > { %v1597_v34 = vor.u32 1.1754944e-38, %v1596_v35 }
 0x509   : > { %v3836_v22 = vpop.eup %3835  ;;  %1955 = vmatpush.bf16.msrb.mxu3 %v3383_v16  ;;  %1984 = vmatpush.bf16.msrb.mxu0 %v3387_v23  ;;  %v3488_v16 = vld [vmem:[%s5565_s8 + $0x24] sm:$0xf0] }
 0x50a   : > { %v3838_v6 = vpop.eup %3837  ;;  %v1566_v40 = vmul.f32 %v3836_v22, %v4838_v9  ;;  %vm1571_vm15 = vweird.f32 %v3836_v22  ;;  %v1557_v9 = vadd.f32 %v4800_v54, %v4416_v39  ;;  %v1594_v54 = vand.u32 2147483647, %v4848_v45  ;;  %v5608_v23 = vld [vmem:[#allocation13_spill] sm:$0xff] }
 0x50b   : > { %v1586_v7 = vmul.f32 %v3838_v6, %v4848_v45  ;;  %vm1572_vm2 = vmor %vm1570_vm1, %vm1571_vm15  ;;  %vm1591_vm6 = vweird.f32 %v3838_v6  ;;  %v3738_v45 = vld [vmem:[%s5565_s8 + $0xac] sm:$0xf]  ;;  %v681_v21 = vadd.f32 %v5608_v23, %v4408_v5 }
 0x50c   : > { %v1567_v13 = vsub.f32 1.0, %v1566_v40  ;;  %vm1592_vm8 = vmor %vm1590_vm7, %vm1591_vm6  ;;  %vm1595_vm9 = vcmp.eq.f32.partialorder %v1594_v54, 8.507059e+37 }
 0x50d   : > { %v1587_v24 = vsub.f32 1.0, %v1586_v7 }
 0x50e   : > { %v1568_v44 = vmul.f32 %v3836_v22, %v1567_v13 }
 0x50f   : > { %v1588_v4 = vmul.f32 %v3838_v6, %v1587_v24  ;;  %v3735_v24 = vld [vmem:[%s5565_s8 + $0x94] sm:$0xf] }
 0x510   : > { %v1569_v19 = vadd.f32 %v3836_v22, %v1568_v44  ;;  %v4966_v44 = vor.u32 %v3732_v17, %v3536_v38  ;;  %v3737_v17 = vld [vmem:[%s5565_s8 + $0xa0] sm:$0xf0] }
 0x511   : > { %v1589_v8 = vadd.f32 %v3838_v6, %v1588_v4  ;;  %v3524_v4 = vld [vmem:[%s5565_s8 + $0x6c] sm:$0xf0] }
 0x512   : > { %v1573_v1 = vsel %vm1572_vm2, %v3836_v22, %v1569_v19  ;;  %v4977_v18 = vor.u32 %v3729_v52, %v3524_v4  ;;  %v3726_v19 = vld [vmem:[%s5565_s8 + $0x4c] sm:$0xf] }
 0x513   : > { %v1578_v3 = vsel %vm1575_vm4, %v1577_v48, %v1573_v1  ;;  %v1593_v28 = vsel %vm1592_vm8, %v3838_v6, %v1589_v8  ;;  %v3560_v6 = vld [vmem:[%s5565_s8 + $0xb4] sm:$0xf0]  ;;  %v3720_v1 = vld [vmem:[%s5565_s8 + $0x1c] sm:$0xf] }
 0x514   : > { %v1600_v15 = vmul.f32 %v1578_v3, %v1557_v9  ;;  %v1598_v46 = vsel %vm1595_vm9, %v1597_v34, %v1593_v28  ;;  %v4945_v2 = vor.u32 %v3738_v45, %v3560_v6  ;;  %v3512_v48 = vld [vmem:[%s5565_s8 + $0x54] sm:$0xf0]  ;;  %v5002_v9 = vor.u32 %v3723_v47, %v3500_v0  ;;  %v3476_v3 = vld [vmem:[%s5565_s8 + $0xc] sm:$0xf0] }
 0x515   : > { %v1603_v40 = vsub.f32 1.0, %v1598_v46  ;;  %v1605_v50 = vmul.f32 %v1598_v46, %v4722_v10  ;;  %v4988_v14 = vor.u32 %v3726_v19, %v3512_v48  ;;  %v5024_v8 = vor.u32 %v3717_v30, %v3476_v3  ;;  %v5609_v28 = vld [vmem:[#allocation6_spill] sm:$0xff]  ;;  %v3542_v19 = vld [vmem:[%s5565_s8 + $0x80] sm:$0xf]  ;;  %v3734_v48 = vld [vmem:[%s5565_s8 + $0x88] sm:$0xf0] }
 0x516   : > { %v1601_v22 = vadd.f32 %v1600_v15, %v708_v29  ;;  %v5087_v47 = vor.u32 %v3734_v48, %v3542_v19 }
 0x518   : > { %3839 = vtanh.f32 %v1601_v22 }
 0x51e   : > { %v3840_v53 = vpop.eup %3839 }
 0x51f   : > { %v1604_v7 = vmul.f32 %v3840_v53, %v1603_v40 }
 0x521   : > { %v1606_v13 = vadd.f32 %v1605_v50, %v1604_v7 }
 0x523   : > { %v4941_v20 = vsel %vm1612_vm11, %v1606_v13, %v4722_v10  ;;  %v4955_v10 = vor.u32 %v3735_v24, %v3548_v33  ;;  %v3554_v24 = vld [vmem:[%s5565_s8 + $0x98] sm:$0xf] }
 0x524   : > { %v1614_v37 = vpack.c.bf16 %v4941_v20, %v4941_v20  ;;  %v5075_v38 = vor.u32 %v3737_v17, %v3554_v24 }
 0x526   : > { %1616 = vst [vmem:[#allocation3 + $0x18] sm:$0xf] %v1614_v37  ;;  %1631 = vmatmul.bf16.vlgmr.msra.gmra.mxu3 %v1614_v37  ;;  %1644 = vmatmul.bf16.vlgmr.msra.gmra.mxu0 %v1614_v37 }
 0x527   : > { %1657 = vmatmul.bf16.vlgmr.msra.gmra.mxu1 %v1614_v37  ;;  %2292 = vmatpush.bf16.msra.mxu3 %v4741_v51 }
 0x528   : > { %2214 = vmatpush.bf16.msra.mxu1 %v4945_v2  ;;  %2305 = vmatpush.bf16.msra.mxu0 %v4945_v2 }
 0x52b   : > { %2293 = vmatpush.bf16.msra.mxu3 %v4750_v58 }
 0x52c   : > { %2215 = vmatpush.bf16.msra.mxu1 %v4955_v10  ;;  %2306 = vmatpush.bf16.msra.mxu0 %v4955_v10 }
 0x52f   : > { %2294 = vmatpush.bf16.msra.mxu3 %v4759_v11 }
 0x530   : > { %2216 = vmatpush.bf16.msra.mxu1 %v4966_v44  ;;  %2307 = vmatpush.bf16.msra.mxu0 %v4966_v44 }
 0x533   : > { %2295 = vmatpush.bf16.msra.mxu3 %v4772_v55 }
 0x534   : > { %2217 = vmatpush.bf16.msra.mxu1 %v4977_v18  ;;  %2308 = vmatpush.bf16.msra.mxu0 %v4977_v18 }
 0x536   : > { %1956 = vmatmul.bf16.vlgmr.msrb.gmra.mxu3 %v4726_v27  ;;  %1985 = vmatmul.bf16.vlgmr.msrb.gmra.mxu0 %v4726_v27  ;;  %v5013_v27 = vor.u32 %v3720_v1, %v3488_v16  ;;  %v3530_v1 = vld [vmem:[%s5565_s8 + $0x68] sm:$0xf]  ;;  %v3731_v16 = vld [vmem:[%s5565_s8 + $0x70] sm:$0xf0] }
 0x537   : > { %2209 = vmatmul.bf16.vlgmr.msrb.gmra.mxu1 %v5598_v36  ;;  %2296 = vmatpush.bf16.msra.mxu3 %v4802_v63 }
 0x538   : > { %2218 = vmatpush.bf16.msra.mxu1 %v4988_v14  ;;  %2309 = vmatpush.bf16.msra.mxu0 %v4988_v14 }
 0x53b   : > { %2297 = vmatpush.bf16.msra.mxu3 %v4817_v25 }
 0x53c   : > { %2219 = vmatpush.bf16.msra.mxu1 %v5002_v9  ;;  %2310 = vmatpush.bf16.msra.mxu0 %v5002_v9 }
 0x53f   : > { %2298 = vmatpush.bf16.msra.mxu3 %v4840_v56 }
 0x540   : > { %2220 = vmatpush.bf16.msra.mxu1 %v5013_v27  ;;  %2311 = vmatpush.bf16.msra.mxu0 %v5013_v27 }
 0x543   : > { %2299 = vmatpush.bf16.msra.mxu3 %v4868_v26 }
 0x544   : > { %2221 = vmatpush.bf16.msra.mxu1 %v5024_v8  ;;  %2312 = vmatpush.bf16.msra.mxu0 %v5024_v8 }
 0x546   : > { %1961 = vmatmul.bf16.gmra.mxu3 %v4729_v41  ;;  %1990 = vmatmul.bf16.gmra.mxu0 %v4729_v41 }
 0x547   : > { %2396 = vmatpush.bf16.msrb.mxu3 %v4945_v2  ;;  %2222 = vmatmul.bf16.vlgmr.msra.gmra.mxu1 %v5598_v36 }
 0x54b   : > { %2397 = vmatpush.bf16.msrb.mxu3 %v4955_v10 }
 0x54f   : > { %2398 = vmatpush.bf16.msrb.mxu3 %v4966_v44 }
 0x553   : > { %2399 = vmatpush.bf16.msrb.mxu3 %v4977_v18 }
 0x556   : > { %1966 = vmatmul.bf16.gmra.mxu3 %v4732_v57  ;;  %1995 = vmatmul.bf16.gmra.mxu0 %v4732_v57  ;;  %v652_v57 = vadd.f32 %v5609_v28, %v4386_v43  ;;  %v3566_v43 = vld [vmem:[%s5565_s8 + $0xb0] sm:$0xf] }
 0x557   : > { %2400 = vmatpush.bf16.msrb.mxu3 %v4988_v14 }
 0x55b   : > { %2401 = vmatpush.bf16.msrb.mxu3 %v5002_v9 }
 0x55f   : > { %2402 = vmatpush.bf16.msrb.mxu3 %v5013_v27 }
 0x563   : > { %2403 = vmatpush.bf16.msrb.mxu3 %v5024_v8 }
 0x5a3   : > { %v1645_v41 = vpop.f32.mrf.mxu0 }
 0x5a4   : > { %v1646_v29 = vadd.f32 %v1645_v41, %v4412_v12  ;;  %v5046_v35 = vpop.f32.mrf.mxu1  ;;  %v5097_v41 = vor.u32 %v3731_v16, %v3530_v1  ;;  %v3482_v16 = vld [vmem:[%s5565_s8 + $0x8] sm:$0xf] }
 0x5a6   : > { %v1682_v15 = vadd.f32 %v1646_v29, %v681_v21  ;;  %v3518_v21 = vld [vmem:[%s5565_s8 + $0x50] sm:$0xf]  ;;  %v3728_v29 = vld [vmem:[%s5565_s8 + $0x58] sm:$0xf0] }
 0x5a8   : > { %v3359_v54 = vmul.f32 -1.442695, %v1682_v15 }
 0x5a9   : > { %v1632_v22 = vpop.f32.mrf.mxu3 }
 0x5aa   : > { %3841 = vpow2.f32 %v3359_v54  ;;  %v1633_v34 = vadd.f32 %v1632_v22, %v4396_v49  ;;  %v3740_v49 = vld [vmem:[%s5565_s8 + $0xb8] sm:$0xf0] }
 0x5ab   : > { %v1647_v46 = vpop.f32.mrf.mxu0  ;;  %v5062_v6 = vor.u32 %v3740_v49, %v3566_v43 }
 0x5ac   : > { %v1662_v40 = vadd.f32 %v1633_v34, %v652_v57  ;;  %v1660_v53 = vpop.f32.mrf.mxu1  ;;  %v5111_v34 = vor.u32 %v3728_v29, %v3518_v21  ;;  %v5158_v21 = vpop.permute.xlu1 %1712 }
 0x5ad   : > { %2227 = vmatpush.bf16.msrb.mxu2 %v5062_v6  ;;  %2318 = vmatpush.bf16.msrb.mxu1 %v5062_v6  ;;  %v3725_v53 = vld [vmem:[%s5565_s8 + $0x40] sm:$0xf0]  ;;  %5611 = vst [vmem:[#allocation10_spill] sm:$0xff] %v5158_v21 }
 0x5ae   : > { %v3358_v7 = vmul.f32 -1.442695, %v1662_v40  ;;  %2409 = vmatpush.bf16.msrb.mxu0 %v5062_v6  ;;  %v3506_v40 = vld [vmem:[%s5565_s8 + $0x38] sm:$0xf] }
 0x5b0   : > { %v3842_v50 = vpop.eup %3841  ;;  %3843 = vpow2.f32 %v3358_v7 }
 0x5b1   : > { %v5051_v5 = vadd.f32 1.0, %v3842_v50  ;;  %v1634_v12 = vpop.f32.mrf.mxu3  ;;  %2228 = vmatpush.bf16.msrb.mxu2 %v5075_v38  ;;  %2319 = vmatpush.bf16.msrb.mxu1 %v5075_v38  ;;  %v1659_v50 = vadd.f32 %v5046_v35, %v4416_v39  ;;  %v3494_v39 = vld [vmem:[%s5565_s8 + $0x20] sm:$0xf]  ;;  %v3722_v35 = vld [vmem:[%s5565_s8 + $0x28] sm:$0xf0] }
 0x5b2   : > { %2410 = vmatpush.bf16.msrb.mxu0 %v5075_v38 }
 0x5b3   : > { %3845 = vrcp.f32 %v5051_v5  ;;  %v1698_v17 = vand.u32 2147483648, %v5051_v5  ;;  %vm1692_vm7 = vweird.f32 %v5051_v5 }
 0x5b4   : > { %v5054_v13 = vpop.f32.mrf.mxu1 }
 0x5b5   : > { %2229 = vmatpush.bf16.msrb.mxu2 %v5087_v47  ;;  %2320 = vmatpush.bf16.msrb.mxu1 %v5087_v47  ;;  %v1699_v1 = vor.u32 1.1754944e-38, %v1698_v17 }
 0x5b6   : > { %v3844_v45 = vpop.eup %3843  ;;  %2411 = vmatpush.bf16.msrb.mxu0 %v5087_v47 }
 0x5b7   : > { %v1666_v37 = vadd.f32 1.0, %v3844_v45  ;;  %v5126_v45 = vor.u32 %v3725_v53, %v3506_v40  ;;  %v1759_v53 = vld [vmem:[%s5566_s9] sm:$0x7] }
 0x5b8   : > { %v5212_v17 = vperm.slane %v1759_v53, 1 }
 0x5b9   : > { %3847 = vrcp.f32 %v1666_v37  ;;  %v5070_v33 = vpop.eup %3845  ;;  %v1678_v15 = vand.u32 2147483648, %v1666_v37  ;;  %v1676_v22 = vand.u32 2147483647, %v1666_v37  ;;  %2230 = vmatpush.bf16.msrb.mxu2 %v5097_v41  ;;  %2321 = vmatpush.bf16.msrb.mxu1 %v5097_v41  ;;  %vm1672_vm1 = vweird.f32 %v1666_v37 }
 0x5ba   : > { %v1688_v4 = vmul.f32 %v5070_v33, %v5051_v5  ;;  %2412 = vmatpush.bf16.msrb.mxu0 %v5097_v41  ;;  %vm1693_vm6 = vweird.f32 %v5070_v33 }
 0x5bb   : > { %v1679_v7 = vor.u32 1.1754944e-38, %v1678_v15  ;;  %vm1677_vm4 = vcmp.eq.f32.partialorder %v1676_v22, 8.507059e+37  ;;  %vm1694_vm8 = vmor %vm1692_vm7, %vm1693_vm6 }
 0x5bc   : > { %v2212_v52 = vpop.f32.mrf.mxu1  ;;  %v1689_v3 = vsub.f32 1.0, %v1688_v4  ;;  %v1696_v4 = vand.u32 2147483647, %v5051_v5  ;;  %v3719_v5 = vld [vmem:[%s5565_s8 + $0x10] sm:$0xf0] }
 0x5bd   : > { %2231 = vmatpush.bf16.msrb.mxu2 %v5111_v34  ;;  %2322 = vmatpush.bf16.msrb.mxu1 %v5111_v34 }
 0x5be   : > { %v1690_v57 = vmul.f32 %v5070_v33, %v1689_v3  ;;  %2413 = vmatpush.bf16.msrb.mxu0 %v5111_v34  ;;  %vm1697_vm9 = vcmp.eq.f32.partialorder %v1696_v4, 8.507059e+37 }
 0x5bf   : > { %v3848_v0 = vpop.eup %3847 }
 0x5c0   : > { %v1668_v30 = vmul.f32 %v3848_v0, %v1666_v37  ;;  %vm1673_vm15 = vweird.f32 %v3848_v0  ;;  %v1691_v43 = vadd.f32 %v5070_v33, %v1690_v57  ;;  %v5610_v37 = vld [vmem:[#allocation14_spill] sm:$0xff] }
 0x5c1   : > { %vm1674_vm2 = vmor %vm1672_vm1, %vm1673_vm15  ;;  %v710_v24 = vadd.f32 %v5610_v37, %v4419_v60  ;;  %2232 = vmatpush.bf16.msrb.mxu2 %v5126_v45  ;;  %2323 = vmatpush.bf16.msrb.mxu1 %v5126_v45  ;;  %vm1714_vm15 = vcmp.eq.s32.totalorder %v5158_v21, 1 }
 0x5c2   : > { %v1669_v23 = vsub.f32 1.0, %v1668_v30  ;;  %v1695_v48 = vsel %vm1694_vm8, %v5070_v33, %v1691_v43  ;;  %2414 = vmatpush.bf16.msrb.mxu0 %v5126_v45  ;;  %v5154_v30 = vor.u32 %v3719_v5, %v3482_v16 }
 0x5c3   : > { %v1700_v33 = vsel %vm1697_vm9, %v1699_v1, %v1695_v48 }
 0x5c4   : > { %v1670_v54 = vmul.f32 %v3848_v0, %v1669_v23  ;;  %v5107_v28 = vpop.f32.mrf.mxu1  ;;  %v1705_v3 = vsub.f32 1.0, %v1700_v33  ;;  %v1707_v29 = vmul.f32 %v1700_v33, %v4941_v20 }
 0x5c6   : > { %v1671_v46 = vadd.f32 %v3848_v0, %v1670_v54 }
 0x5c8   : > { %v1675_v12 = vsel %vm1674_vm2, %v3848_v0, %v1671_v46  ;;  %v5143_v0 = vor.u32 %v3722_v35, %v3494_v39 }
 0x5c9   : > { %v1680_v49 = vsel %vm1677_vm4, %v1679_v7, %v1675_v12  ;;  %v5205_v12 = vperm.slane %v1759_v53, 0 }
 0x5ca   : > { %v1702_v52 = vmul.f32 %v1680_v49, %v1659_v50  ;;  %2233 = vmatpush.bf16.msrb.mxu2 %v5143_v0  ;;  %2324 = vmatpush.bf16.msrb.mxu1 %v5143_v0 }
 0x5cb   : > { %2415 = vmatpush.bf16.msrb.mxu0 %v5143_v0 }
 0x5cc   : > { %v1703_v19 = vadd.f32 %v1702_v52, %v710_v24  ;;  %v2225_v60 = vpop.f32.mrf.mxu1  ;;  %v1957_v52 = vpop.f32.mrf.mxu3 }
 0x5ce   : > { %3849 = vtanh.f32 %v1703_v19  ;;  %2234 = vmatpush.bf16.msrb.mxu2 %v5154_v30  ;;  %2325 = vmatpush.bf16.msrb.mxu1 %v5154_v30  ;;  %v1958_v19 = vadd.f32 %v1957_v52, %v5212_v17 }
 0x5cf   : > { %2416 = vmatpush.bf16.msrb.mxu0 %v5154_v30 }
 0x5d2   : > { %2383 = vmatpush.bf16.msra.mxu2 %v4741_v51  ;;  %2474 = vmatpush.bf16.msra.mxu1 %v4741_v51 }
 0x5d4   : > { %v3850_v23 = vpop.eup %3849 }
 0x5d5   : > { %v1706_v15 = vmul.f32 %v3850_v23, %v1705_v3 }
 0x5d6   : > { %2384 = vmatpush.bf16.msra.mxu2 %v4750_v58  ;;  %2475 = vmatpush.bf16.msra.mxu1 %v4750_v58 }
 0x5d7   : > { %v1708_v54 = vadd.f32 %v1707_v29, %v1706_v15 }
 0x5d9   : > { %v1715_v22 = vsel %vm1714_vm15, %v1708_v54, %v4941_v20  ;;  %v1928_v20 = vpop.f32.mrf.mxu2 }
 0x5da   : > { %v1716_v57 = vpack.c.bf16 %v1715_v22, %v1715_v22  ;;  %2385 = vmatpush.bf16.msra.mxu2 %v4759_v11  ;;  %2476 = vmatpush.bf16.msra.mxu1 %v4759_v11  ;;  %v1929_v49 = vadd.f32 %v1928_v20, %v5205_v12 }
 0x5dc   : > { %1718 = vst [vmem:[#allocation3 + $0x1c] sm:$0xf] %v1716_v57 }
 0x5de   : > { %2386 = vmatpush.bf16.msra.mxu2 %v4772_v55  ;;  %2477 = vmatpush.bf16.msra.mxu1 %v4772_v55 }
 0x5e1   : > { %v5193_v40 = vpop.f32.mrf.mxu2 }
 0x5e2   : > { %2387 = vmatpush.bf16.msra.mxu2 %v4802_v63  ;;  %2478 = vmatpush.bf16.msra.mxu1 %v4802_v63  ;;  %v1931_v62 = vadd.f32 %v5193_v40, %v5205_v12 }
 0x5e3   : > { %v3692_v46 = vld [vmem:[#allocation3 + $0x18] sm:$0xff] }
 0x5e4   : > { %1942 = vmatmul.bf16.gmra.mxu2 %v3692_v46  ;;  %1971 = vmatmul.bf16.gmra.mxu3 %v3692_v46 }
 0x5e5   : > { %2000 = vmatmul.bf16.gmra.mxu0 %v3692_v46 }
 0x5e6   : > { %2388 = vmatpush.bf16.msra.mxu2 %v4817_v25  ;;  %2479 = vmatpush.bf16.msra.mxu1 %v4817_v25 }
 0x5e9   : > { %v5203_v50 = vpop.f32.mrf.mxu2 }
 0x5ea   : > { %2389 = vmatpush.bf16.msra.mxu2 %v4840_v56  ;;  %2480 = vmatpush.bf16.msra.mxu1 %v4840_v56 }
 0x5ee   : > { %2390 = vmatpush.bf16.msra.mxu2 %v4868_v26  ;;  %2481 = vmatpush.bf16.msra.mxu1 %v4868_v26 }
 0x5f1   : > { %v5214_v39 = vpop.f32.mrf.mxu2 }
 0x5f4   : > { %2235 = vmatmul.bf16.vlgmr.msrb.gmra.mxu2 %v5598_v36  ;;  %v2062_v36 = vld [vmem:[%s5567_s10] sm:$0x7] }
 0x5f5   : > { %2487 = vmatpush.bf16.msrb.mxu2 %v4945_v2  ;;  %v5201_v7 = vperm.slane %v2062_v36, 0  ;;  %v5210_v37 = vperm.slane %v2062_v36, 1 }
 0x5f7   : > { %v2211_v43 = vadd.f32 %v5054_v13, %v5201_v7  ;;  %v2224_v35 = vadd.f32 %v5107_v28, %v5210_v37 }
 0x5f9   : > { %2488 = vmatpush.bf16.msrb.mxu2 %v4955_v10  ;;  %v2240_v24 = vadd.f32 %v2211_v43, %v1929_v49  ;;  %v2260_v60 = vadd.f32 %v2224_v35, %v1958_v19  ;;  %v5219_v13 = vpop.f32.mrf.mxu2 }
 0x5fb   : > { %v3568_v4 = vmul.f32 -1.442695, %v2240_v24  ;;  %v3569_v48 = vmul.f32 -1.442695, %v2260_v60  ;;  %v5227_v24 = vperm.slane %v2062_v36, 2  ;;  %v1986_v60 = vpop.f32.mrf.mxu0 }
 0x5fd   : > { %2489 = vmatpush.bf16.msrb.mxu2 %v4966_v44  ;;  %3851 = vpow2.f32 %v3568_v4  ;;  %v5229_v4 = vperm.slane %v1759_v53, 2 }
 0x5fe   : > { %3853 = vpow2.f32 %v3569_v48 }
 0x601   : > { %2490 = vmatpush.bf16.msrb.mxu2 %v4977_v18  ;;  %v5221_v33 = vpop.f32.mrf.mxu2 }
 0x602   : > { %5612 = vst [vmem:[#allocation11_spill] sm:$0xff] %v5221_v33 }
 0x603   : > { %v3852_v1 = vpop.eup %3851 }
 0x604   : > { %v2244_v16 = vadd.f32 1.0, %v3852_v1  ;;  %v3854_v5 = vpop.eup %3853 }
 0x605   : > { %2491 = vmatpush.bf16.msrb.mxu2 %v4988_v14  ;;  %v2264_v3 = vadd.f32 1.0, %v3854_v5 }
 0x606   : > { %3855 = vrcp.f32 %v2244_v16  ;;  %v2256_v49 = vand.u32 2147483648, %v2244_v16  ;;  %vm2250_vm2 = vweird.f32 %v2244_v16  ;;  %v2254_v52 = vand.u32 2147483647, %v2244_v16 }
 0x607   : > { %3857 = vrcp.f32 %v2264_v3  ;;  %v2276_v36 = vand.u32 2147483648, %v2264_v3  ;;  %vm2270_vm8 = vweird.f32 %v2264_v3 }
 0x608   : > { %v2257_v1 = vor.u32 1.1754944e-38, %v2256_v49  ;;  %vm2255_vm6 = vcmp.eq.f32.partialorder %v2254_v52, 8.507059e+37 }
 0x609   : > { %2492 = vmatpush.bf16.msrb.mxu2 %v5002_v9  ;;  %v2277_v21 = vor.u32 1.1754944e-38, %v2276_v36 }
 0x60c   : > { %v3856_v23 = vpop.eup %3855 }
 0x60d   : > { %2493 = vmatpush.bf16.msrb.mxu2 %v5013_v27  ;;  %v2246_v29 = vmul.f32 %v3856_v23, %v2244_v16  ;;  %v3858_v15 = vpop.eup %3857  ;;  %vm2251_vm1 = vweird.f32 %v3856_v23  ;;  %v2274_v16 = vand.u32 2147483647, %v2264_v3 }
 0x60e   : > { %v2266_v22 = vmul.f32 %v3858_v15, %v2264_v3  ;;  %vm2252_vm4 = vmor %vm2250_vm2, %vm2251_vm1  ;;  %vm2271_vm7 = vweird.f32 %v3858_v15  ;;  %v1959_v3 = vpop.f32.mrf.mxu3 }
 0x60f   : > { %v2247_v54 = vsub.f32 1.0, %v2246_v29  ;;  %vm2272_vm9 = vmor %vm2270_vm8, %vm2271_vm7  ;;  %vm2275_vm1 = vcmp.eq.f32.partialorder %v2274_v16, 8.507059e+37 }
 0x610   : > { %v2267_v20 = vsub.f32 1.0, %v2266_v22  ;;  %v1987_v22 = vadd.f32 %v1986_v60, %v5229_v4 }
 0x611   : > { %2494 = vmatpush.bf16.msrb.mxu2 %v5024_v8  ;;  %v2248_v57 = vmul.f32 %v3856_v23, %v2247_v54 }
 0x612   : > { %v2268_v35 = vmul.f32 %v3858_v15, %v2267_v20 }
 0x613   : > { %v2249_v43 = vadd.f32 %v3856_v23, %v2248_v57 }
 0x614   : > { %v2269_v54 = vadd.f32 %v3858_v15, %v2268_v35 }
 0x615   : > { %v2253_v19 = vsel %vm2252_vm4, %v3856_v23, %v2249_v43 }
 0x616   : > { %v2258_v29 = vsel %vm2255_vm6, %v2257_v1, %v2253_v19  ;;  %v2273_v53 = vsel %vm2272_vm9, %v3858_v15, %v2269_v54 }
 0x617   : > { %v2278_v43 = vsel %vm2275_vm1, %v2277_v21, %v2273_v53  ;;  %v5267_v21 = vpop.f32.mrf.mxu0 }
 0x618   : > { %v2283_v49 = vsub.f32 1.0, %v2278_v43 }
 0x61f   : > { %v5269_v15 = vpop.f32.mrf.mxu0 }
 0x627   : > { %v5273_v1 = vpop.f32.mrf.mxu0 }
 0x667   : > { %v5223_v28 = vpop.f32.mrf.mxu2 }
 0x668   : > { %5613 = vst [vmem:[#allocation5_spill] sm:$0xff] %v5223_v28 }
 0x66f   : > { %v5225_v46 = vpop.f32.mrf.mxu2 }
 0x670   : > { %5614 = vst [vmem:[#allocation12_spill] sm:$0xff] %v5225_v46  ;;  %v2285_v46 = vmul.f32 0.0, %v2278_v43  ;;  %v1960_v43 = vadd.f32 %v1959_v3, %v5212_v17 }
 0x677   : > { %v2236_v48 = vpop.f32.mrf.mxu2 }
 0x678   : > { %v2237_v5 = vadd.f32 %v2236_v48, %v5227_v24 }
 0x67a   : > { %v2280_v57 = vmul.f32 %v2258_v29, %v2237_v5  ;;  %v5277_v29 = vpop.f32.mrf.mxu0 }
 0x67b   : > { %5616 = vst [vmem:[#allocation13_spill] sm:$0xff] %v5277_v29 }
 0x67c   : > { %v2281_v20 = vadd.f32 %v2280_v57, %v1987_v22 }
 0x67e   : > { %3859 = vtanh.f32 %v2281_v20 }
 0x67f   : > { %v2238_v23 = vpop.f32.mrf.mxu2 }
 0x682   : > { %v5281_v22 = vpop.f32.mrf.mxu0 }
 0x683   : > { %5617 = vst [vmem:[#allocation6_spill] sm:$0xff] %v5281_v22 }
 0x684   : > { %v3860_v48 = vpop.eup %3859 }
 0x685   : > { %v2284_v52 = vmul.f32 %v3860_v48, %v2283_v49 }
 0x687   : > { %v5233_v19 = vadd.f32 %v2285_v46, %v2284_v52  ;;  %v5271_v46 = vpop.f32.mrf.mxu3 }
 0x689   : > { %v3571_v35 = vpack.c.bf16 %v5233_v19, %v5233_v19 }
 0x68a   : > { %v5285_v57 = vpop.f32.mrf.mxu0 }
 0x68b   : > { %3572 = vmatmul.msk.bf16.vlgmr.msra.gmra.mxu3 %vm4428_vm14, %v3571_v35  ;;  %3575 = vmatmul.msk.bf16.vlgmr.msra.gmra.mxu0 %vm4428_vm14, %v3571_v35  ;;  %5619 = vst [vmem:[#allocation8_spill] sm:$0xff] %v5285_v57 }
 0x68c   : > { %3578 = vmatmul.msk.bf16.vlgmr.msrb.gmra.mxu1 %vm4428_vm14, %v3571_v35  ;;  %2500 = vmatpush.bf16.msra.mxu3 %v5062_v6 }
 0x68d   : > { %2565 = vmatpush.bf16.msra.mxu0 %v4741_v51  ;;  %2578 = vmatpush.bf16.msrb.mxu1 %v4945_v2 }
 0x68f   : > { %v5275_v5 = vpop.f32.mrf.mxu3 }
 0x690   : > { %2501 = vmatpush.bf16.msra.mxu3 %v5075_v38 }
 0x691   : > { %2566 = vmatpush.bf16.msra.mxu0 %v4750_v58  ;;  %2579 = vmatpush.bf16.msrb.mxu1 %v4955_v10 }
 0x692   : > { %v5289_v20 = vpop.f32.mrf.mxu0 }
 0x693   : > { %5621 = vst [vmem:[#allocation17_spill] sm:$0xff] %v5289_v20 }
 0x694   : > { %2502 = vmatpush.bf16.msra.mxu3 %v5087_v47 }
 0x695   : > { %2567 = vmatpush.bf16.msra.mxu0 %v4759_v11  ;;  %2580 = vmatpush.bf16.msrb.mxu1 %v4966_v44 }
 0x697   : > { %v5279_v54 = vpop.f32.mrf.mxu3 }
 0x698   : > { %2503 = vmatpush.bf16.msra.mxu3 %v5097_v41 }
 0x699   : > { %2568 = vmatpush.bf16.msra.mxu0 %v4772_v55  ;;  %2581 = vmatpush.bf16.msrb.mxu1 %v4977_v18 }
 0x69c   : > { %2504 = vmatpush.bf16.msra.mxu3 %v5111_v34 }
 0x69d   : > { %2569 = vmatpush.bf16.msra.mxu0 %v4802_v63  ;;  %2582 = vmatpush.bf16.msrb.mxu1 %v4988_v14 }
 0x69f   : > { %v5283_v36 = vpop.f32.mrf.mxu3 }
 0x6a0   : > { %2505 = vmatpush.bf16.msra.mxu3 %v5126_v45  ;;  %5618 = vst [vmem:[#allocation14_spill] sm:$0xff] %v5283_v36 }
 0x6a1   : > { %2570 = vmatpush.bf16.msra.mxu0 %v4817_v25  ;;  %2583 = vmatpush.bf16.msrb.mxu1 %v5002_v9 }
 0x6a4   : > { %2506 = vmatpush.bf16.msra.mxu3 %v5143_v0 }
 0x6a5   : > { %2571 = vmatpush.bf16.msra.mxu0 %v4840_v56  ;;  %2584 = vmatpush.bf16.msrb.mxu1 %v5013_v27 }
 0x6a7   : > { %v5287_v16 = vpop.f32.mrf.mxu3 }
 0x6a8   : > { %2507 = vmatpush.bf16.msra.mxu3 %v5154_v30  ;;  %5620 = vst [vmem:[#allocation16_spill] sm:$0xff] %v5287_v16 }
 0x6a9   : > { %2572 = vmatpush.bf16.msra.mxu0 %v4868_v26  ;;  %2585 = vmatpush.bf16.msrb.mxu1 %v5024_v8 }
 0x6af   : > { %v5291_v53 = vpop.f32.mrf.mxu3 }
 0x6b0   : > { %5622 = vst [vmem:[#allocation18_spill] sm:$0xff] %v5291_v53 }
 0x708   : > { %v2314_v23 = vpop.f32.mrf.mxu0 }
 0x709   : > { %v2315_v49 = vadd.f32 %v2314_v23, %v5210_v37  ;;  %v2327_v48 = vpop.f32.mrf.mxu1 }
 0x70b   : > { %v2351_v52 = vadd.f32 %v2315_v49, %v1960_v43 }
 0x70d   : > { %v3580_v35 = vmul.f32 -1.442695, %v2351_v52 }
 0x70e   : > { %v2301_v60 = vpop.f32.mrf.mxu3 }
 0x70f   : > { %3861 = vpow2.f32 %v3580_v35  ;;  %v2302_v57 = vadd.f32 %v2301_v60, %v5201_v7 }
 0x710   : > { %v2316_v16 = vpop.f32.mrf.mxu0 }
 0x711   : > { %v2331_v28 = vadd.f32 %v2302_v57, %v1931_v62  ;;  %v2329_v20 = vpop.f32.mrf.mxu1 }
 0x713   : > { %v3579_v31 = vmul.f32 -1.442695, %v2331_v28 }
 0x715   : > { %v3862_v53 = vpop.eup %3861  ;;  %3863 = vpow2.f32 %v3579_v31 }
 0x716   : > { %v2355_v22 = vadd.f32 1.0, %v3862_v53  ;;  %v2303_v3 = vpop.f32.mrf.mxu3  ;;  %v2287_v53 = vsel %vm1001_vm13, %v5233_v19, 0.0 }
 0x718   : > { %3865 = vrcp.f32 %v2355_v22  ;;  %v2367_v36 = vand.u32 2147483648, %v2355_v22  ;;  %v2365_v35 = vand.u32 2147483647, %v2355_v22  ;;  %vm2361_vm2 = vweird.f32 %v2355_v22 }
 0x71a   : > { %v2368_v28 = vor.u32 1.1754944e-38, %v2367_v36  ;;  %vm2366_vm6 = vcmp.eq.f32.partialorder %v2365_v35, 8.507059e+37  ;;  %v1989_v35 = vadd.f32 %v5267_v21, %v5229_v4 }
 0x71b   : > { %v3864_v23 = vpop.eup %3863 }
 0x71c   : > { %v2335_v33 = vadd.f32 1.0, %v3864_v23 }
 0x71e   : > { %v3866_v43 = vpop.eup %3865  ;;  %3867 = vrcp.f32 %v2335_v33  ;;  %v2347_v23 = vand.u32 2147483648, %v2335_v33  ;;  %vm2341_vm8 = vweird.f32 %v2335_v33 }
 0x71f   : > { %v2357_v49 = vmul.f32 %v3866_v43, %v2355_v22  ;;  %vm2362_vm14 = vweird.f32 %v3866_v43 }
 0x720   : > { %vm2363_vm4 = vmor %vm2361_vm2, %vm2362_vm14  ;;  %v2348_v22 = vor.u32 1.1754944e-38, %v2347_v23 }
 0x721   : > { %v2358_v52 = vsub.f32 1.0, %v2357_v49 }
 0x723   : > { %v2359_v40 = vmul.f32 %v3866_v43, %v2358_v52  ;;  %v2345_v52 = vand.u32 2147483647, %v2335_v33 }
 0x724   : > { %v3868_v60 = vpop.eup %3867 }
 0x725   : > { %v2360_v16 = vadd.f32 %v3866_v43, %v2359_v40  ;;  %v2337_v62 = vmul.f32 %v3868_v60, %v2335_v33  ;;  %vm2342_vm7 = vweird.f32 %v3868_v60  ;;  %v2328_v40 = vadd.f32 %v2327_v48, %v5227_v24 }
 0x726   : > { %vm2343_vm9 = vmor %vm2341_vm8, %vm2342_vm7  ;;  %vm2346_vm1 = vcmp.eq.f32.partialorder %v2345_v52, 8.507059e+37 }
 0x727   : > { %v2364_v31 = vsel %vm2363_vm4, %v3866_v43, %v2360_v16  ;;  %v2338_v57 = vsub.f32 1.0, %v2337_v62 }
 0x728   : > { %v2369_v3 = vsel %vm2366_vm6, %v2368_v28, %v2364_v31 }
 0x729   : > { %v2339_v49 = vmul.f32 %v3868_v60, %v2338_v57  ;;  %v2376_v32 = vmul.f32 %v2369_v3, %v2287_v53  ;;  %v2374_v62 = vsub.f32 1.0, %v2369_v3 }
 0x72b   : > { %v2340_v29 = vadd.f32 %v3868_v60, %v2339_v49 }
 0x72d   : > { %v2344_v36 = vsel %vm2343_vm9, %v3868_v60, %v2340_v29  ;;  %v1934_v29 = vadd.f32 %v5203_v50, %v5205_v12  ;;  %v1963_v60 = vadd.f32 %v5271_v46, %v5212_v17 }
 0x72e   : > { %v2349_v43 = vsel %vm2346_vm1, %v2348_v22, %v2344_v36 }
 0x72f   : > { %v2371_v16 = vmul.f32 %v2349_v43, %v2328_v40 }
 0x731   : > { %v2372_v19 = vadd.f32 %v2371_v16, %v1989_v35 }
 0x733   : > { %3869 = vtanh.f32 %v2372_v19 }
 0x739   : > { %v3870_v28 = vpop.eup %3869 }
 0x73a   : > { %v2375_v31 = vmul.f32 %v3870_v28, %v2374_v62 }
 0x73c   : > { %v2377_v57 = vadd.f32 %v2376_v32, %v2375_v31 }
 0x73e   : > { %v5306_v33 = vsel %vm1102_vm10, %v2377_v57, %v2287_v53 }
 0x73f   : > { %v2382_v48 = vpack.c.bf16 %v5306_v33, %v5306_v33 }
 0x741   : > { %2391 = vmatmul.bf16.vlgmr.msra.gmra.mxu2 %v2382_v48  ;;  %2404 = vmatmul.bf16.vlgmr.msrb.gmra.mxu3 %v2382_v48 }
 0x742   : > { %2417 = vmatmul.bf16.vlgmr.msrb.gmra.mxu0 %v2382_v48  ;;  %2591 = vmatpush.bf16.msra.mxu2 %v5062_v6 }
 0x743   : > { %2656 = vmatpush.bf16.msrb.mxu3 %v4741_v51  ;;  %2669 = vmatpush.bf16.msrb.mxu0 %v4945_v2 }
 0x746   : > { %2592 = vmatpush.bf16.msra.mxu2 %v5075_v38 }
 0x747   : > { %2657 = vmatpush.bf16.msrb.mxu3 %v4750_v58  ;;  %2670 = vmatpush.bf16.msrb.mxu0 %v4955_v10 }
 0x74a   : > { %2593 = vmatpush.bf16.msra.mxu2 %v5087_v47 }
 0x74b   : > { %2658 = vmatpush.bf16.msrb.mxu3 %v4759_v11  ;;  %2671 = vmatpush.bf16.msrb.mxu0 %v4966_v44 }
 0x74e   : > { %2594 = vmatpush.bf16.msra.mxu2 %v5097_v41 }
 0x74f   : > { %2659 = vmatpush.bf16.msrb.mxu3 %v4772_v55  ;;  %2672 = vmatpush.bf16.msrb.mxu0 %v4977_v18 }
 0x752   : > { %2595 = vmatpush.bf16.msra.mxu2 %v5111_v34 }
 0x753   : > { %2660 = vmatpush.bf16.msrb.mxu3 %v4802_v63  ;;  %2673 = vmatpush.bf16.msrb.mxu0 %v4988_v14 }
 0x756   : > { %2596 = vmatpush.bf16.msra.mxu2 %v5126_v45 }
 0x757   : > { %2661 = vmatpush.bf16.msrb.mxu3 %v4817_v25  ;;  %2674 = vmatpush.bf16.msrb.mxu0 %v5002_v9 }
 0x75a   : > { %2597 = vmatpush.bf16.msra.mxu2 %v5143_v0 }
 0x75b   : > { %2662 = vmatpush.bf16.msrb.mxu3 %v4840_v56  ;;  %2675 = vmatpush.bf16.msrb.mxu0 %v5013_v27 }
 0x75e   : > { %2598 = vmatpush.bf16.msra.mxu2 %v5154_v30 }
 0x75f   : > { %2663 = vmatpush.bf16.msrb.mxu3 %v4868_v26  ;;  %2676 = vmatpush.bf16.msrb.mxu0 %v5024_v8 }
 0x7bf   : > { %v2418_v59 = vpop.f32.mrf.mxu0 }
 0x7c4   : > { %v2392_v32 = vpop.f32.mrf.mxu2  ;;  %v2405_v21 = vpop.f32.mrf.mxu3 }
 0x7c5   : > { %v2393_v20 = vadd.f32 %v2392_v32, %v5201_v7  ;;  %v2406_v53 = vadd.f32 %v2405_v21, %v5210_v37 }
 0x7c7   : > { %v2422_v3 = vadd.f32 %v2393_v20, %v1934_v29  ;;  %v2442_v23 = vadd.f32 %v2406_v53, %v1963_v60  ;;  %v2420_v49 = vpop.f32.mrf.mxu0  ;;  %v2419_v53 = vadd.f32 %v2418_v59, %v5227_v24 }
 0x7c9   : > { %v3581_v52 = vmul.f32 -1.442695, %v2422_v3  ;;  %v3582_v22 = vmul.f32 -1.442695, %v2442_v23 }
 0x7cb   : > { %3871 = vpow2.f32 %v3581_v52  ;;  %v1992_v52 = vadd.f32 %v5269_v15, %v5229_v4 }
 0x7cc   : > { %3873 = vpow2.f32 %v3582_v22  ;;  %v2394_v40 = vpop.f32.mrf.mxu2  ;;  %v2407_v36 = vpop.f32.mrf.mxu3 }
 0x7d1   : > { %v3872_v43 = vpop.eup %3871 }
 0x7d2   : > { %v3874_v35 = vpop.eup %3873  ;;  %v2426_v16 = vadd.f32 1.0, %v3872_v43 }
 0x7d3   : > { %v2446_v50 = vadd.f32 1.0, %v3874_v35 }
 0x7d4   : > { %3875 = vrcp.f32 %v2426_v16  ;;  %v2438_v57 = vand.u32 2147483648, %v2426_v16  ;;  %v2436_v21 = vand.u32 2147483647, %v2426_v16  ;;  %vm2432_vm10 = vweird.f32 %v2426_v16 }
 0x7d5   : > { %3877 = vrcp.f32 %v2446_v50  ;;  %v2458_v40 = vand.u32 2147483648, %v2446_v50  ;;  %vm2452_vm6 = vweird.f32 %v2446_v50  ;;  %v2456_v36 = vand.u32 2147483647, %v2446_v50 }
 0x7d6   : > { %v2439_v20 = vor.u32 1.1754944e-38, %v2438_v57  ;;  %vm2437_vm2 = vcmp.eq.f32.partialorder %v2436_v21, 8.507059e+37 }
 0x7d7   : > { %vm2457_vm8 = vcmp.eq.f32.partialorder %v2456_v36, 8.507059e+37 }
 0x7da   : > { %v3876_v46 = vpop.eup %3875 }
 0x7db   : > { %v3878_v19 = vpop.eup %3877  ;;  %v2428_v62 = vmul.f32 %v3876_v46, %v2426_v16  ;;  %vm2433_vm13 = vweird.f32 %v3876_v46  ;;  %v2459_v16 = vor.u32 1.1754944e-38, %v2458_v40 }
 0x7dc   : > { %v2448_v28 = vmul.f32 %v3878_v19, %v2446_v50  ;;  %vm2434_vm14 = vmor %vm2432_vm10, %vm2433_vm13  ;;  %vm2453_vm4 = vweird.f32 %v3878_v19 }
 0x7dd   : > { %v2429_v31 = vsub.f32 1.0, %v2428_v62  ;;  %vm2454_vm7 = vmor %vm2452_vm6, %vm2453_vm4 }
 0x7de   : > { %v2449_v48 = vsub.f32 1.0, %v2448_v28 }
 0x7df   : > { %v2430_v32 = vmul.f32 %v3876_v46, %v2429_v31 }
 0x7e0   : > { %v2450_v29 = vmul.f32 %v3878_v19, %v2449_v48 }
 0x7e1   : > { %v2431_v60 = vadd.f32 %v3876_v46, %v2430_v32 }
 0x7e2   : > { %v2451_v49 = vadd.f32 %v3878_v19, %v2450_v29  ;;  %v1965_v29 = vadd.f32 %v5275_v5, %v5212_v17 }
 0x7e3   : > { %v2435_v3 = vsel %vm2434_vm14, %v3876_v46, %v2431_v60 }
 0x7e4   : > { %v2440_v23 = vsel %vm2437_vm2, %v2439_v20, %v2435_v3  ;;  %v2455_v35 = vsel %vm2454_vm7, %v3878_v19, %v2451_v49 }
 0x7e5   : > { %v2462_v22 = vmul.f32 %v2440_v23, %v2419_v53  ;;  %v2460_v62 = vsel %vm2457_vm8, %v2459_v16, %v2455_v35 }
 0x7e6   : > { %v2465_v59 = vsub.f32 1.0, %v2460_v62  ;;  %v2467_v31 = vmul.f32 %v2460_v62, %v5306_v33 }
 0x7e7   : > { %v2463_v43 = vadd.f32 %v2462_v22, %v1992_v52 }
 0x7e9   : > { %3879 = vtanh.f32 %v2463_v43 }
 0x7ef   : > { %v3880_v46 = vpop.eup %3879 }
 0x7f0   : > { %v2466_v28 = vmul.f32 %v3880_v46, %v2465_v59 }
 0x7f2   : > { %v2468_v57 = vadd.f32 %v2467_v31, %v2466_v28 }
 0x7f4   : > { %v5347_v15 = vsel %vm1204_vm5, %v2468_v57, %v5306_v33  ;;  %v1936_v33 = vadd.f32 %v5214_v39, %v5205_v12 }
 0x7f5   : > { %v2473_v50 = vpack.c.bf16 %v5347_v15, %v5347_v15 }
 0x7f7   : > { %2482 = vmatmul.bf16.vlgmr.msra.gmra.mxu1 %v2473_v50  ;;  %2495 = vmatmul.bf16.vlgmr.msrb.gmra.mxu2 %v2473_v50 }
 0x7f8   : > { %2508 = vmatmul.bf16.vlgmr.msra.gmra.mxu3 %v2473_v50  ;;  %2682 = vmatpush.bf16.msra.mxu1 %v5062_v6 }
 0x7f9   : > { %2747 = vmatpush.bf16.msrb.mxu2 %v4741_v51  ;;  %2760 = vmatpush.bf16.msra.mxu3 %v4945_v2 }
 0x7fc   : > { %2683 = vmatpush.bf16.msra.mxu1 %v5075_v38 }
 0x7fd   : > { %2748 = vmatpush.bf16.msrb.mxu2 %v4750_v58  ;;  %2761 = vmatpush.bf16.msra.mxu3 %v4955_v10 }
 0x800   : > { %2684 = vmatpush.bf16.msra.mxu1 %v5087_v47 }
 0x801   : > { %2749 = vmatpush.bf16.msrb.mxu2 %v4759_v11  ;;  %2762 = vmatpush.bf16.msra.mxu3 %v4966_v44 }
 0x804   : > { %2685 = vmatpush.bf16.msra.mxu1 %v5097_v41 }
 0x805   : > { %2750 = vmatpush.bf16.msrb.mxu2 %v4772_v55  ;;  %2763 = vmatpush.bf16.msra.mxu3 %v4977_v18 }
 0x808   : > { %2686 = vmatpush.bf16.msra.mxu1 %v5111_v34 }
 0x809   : > { %2751 = vmatpush.bf16.msrb.mxu2 %v4802_v63  ;;  %2764 = vmatpush.bf16.msra.mxu3 %v4988_v14 }
 0x80c   : > { %2687 = vmatpush.bf16.msra.mxu1 %v5126_v45 }
 0x80d   : > { %2752 = vmatpush.bf16.msrb.mxu2 %v4817_v25  ;;  %2765 = vmatpush.bf16.msra.mxu3 %v5002_v9 }
 0x810   : > { %2688 = vmatpush.bf16.msra.mxu1 %v5143_v0 }
 0x811   : > { %2753 = vmatpush.bf16.msrb.mxu2 %v4840_v56  ;;  %2766 = vmatpush.bf16.msra.mxu3 %v5013_v27 }
 0x814   : > { %2689 = vmatpush.bf16.msra.mxu1 %v5154_v30 }
 0x815   : > { %2754 = vmatpush.bf16.msrb.mxu2 %v4868_v26  ;;  %2767 = vmatpush.bf16.msra.mxu3 %v5024_v8 }
 0x874   : > { %v2483_v61 = vpop.f32.mrf.mxu1 }
 0x875   : > { %v2484_v19 = vadd.f32 %v2483_v61, %v5201_v7 }
 0x877   : > { %v2513_v48 = vadd.f32 %v2484_v19, %v1936_v33  ;;  %v1994_v19 = vadd.f32 %v5273_v1, %v5229_v4 }
 0x879   : > { %v3583_v32 = vmul.f32 -1.442695, %v2513_v48 }
 0x87a   : > { %v2496_v21 = vpop.f32.mrf.mxu2 }
 0x87b   : > { %3881 = vpow2.f32 %v3583_v32  ;;  %v2497_v60 = vadd.f32 %v2496_v21, %v5210_v37  ;;  %v2509_v20 = vpop.f32.mrf.mxu3 }
 0x87c   : > { %v2485_v53 = vpop.f32.mrf.mxu1  ;;  %v2510_v61 = vadd.f32 %v2509_v20, %v5227_v24 }
 0x87d   : > { %v2533_v3 = vadd.f32 %v2497_v60, %v1965_v29 }
 0x87f   : > { %v3584_v23 = vmul.f32 -1.442695, %v2533_v3 }
 0x881   : > { %v3882_v49 = vpop.eup %3881  ;;  %3883 = vpow2.f32 %v3584_v23 }
 0x882   : > { %v2517_v52 = vadd.f32 1.0, %v3882_v49  ;;  %v2498_v22 = vpop.f32.mrf.mxu2 }
 0x883   : > { %v2511_v39 = vpop.f32.mrf.mxu3 }
 0x884   : > { %3885 = vrcp.f32 %v2517_v52  ;;  %v2529_v5 = vand.u32 2147483648, %v2517_v52  ;;  %v2527_v59 = vand.u32 2147483647, %v2517_v52  ;;  %vm2523_vm9 = vweird.f32 %v2517_v52 }
 0x886   : > { %v2530_v57 = vor.u32 1.1754944e-38, %v2529_v5  ;;  %vm2528_vm13 = vcmp.eq.f32.partialorder %v2527_v59, 8.507059e+37 }
 0x887   : > { %v3884_v40 = vpop.eup %3883 }
 0x888   : > { %v2537_v36 = vadd.f32 1.0, %v3884_v40 }
 0x88a   : > { %v3886_v43 = vpop.eup %3885  ;;  %3887 = vrcp.f32 %v2537_v36  ;;  %v2549_v21 = vand.u32 2147483648, %v2537_v36  ;;  %v2547_v60 = vand.u32 2147483647, %v2537_v36  ;;  %vm2543_vm14 = vweird.f32 %v2537_v36 }
 0x88b   : > { %v2519_v35 = vmul.f32 %v3886_v43, %v2517_v52  ;;  %vm2524_vm5 = vweird.f32 %v3886_v43 }
 0x88c   : > { %vm2525_vm1 = vmor %vm2523_vm9, %vm2524_vm5  ;;  %v2550_v23 = vor.u32 1.1754944e-38, %v2549_v21  ;;  %vm2548_vm4 = vcmp.eq.f32.partialorder %v2547_v60, 8.507059e+37 }
 0x88d   : > { %v2520_v16 = vsub.f32 1.0, %v2519_v35 }
 0x88f   : > { %v2521_v62 = vmul.f32 %v3886_v43, %v2520_v16 }
 0x890   : > { %v3888_v46 = vpop.eup %3887 }
 0x891   : > { %v2539_v28 = vmul.f32 %v3888_v46, %v2537_v36  ;;  %v2522_v31 = vadd.f32 %v3886_v43, %v2521_v62  ;;  %vm2544_vm10 = vweird.f32 %v3888_v46 }
 0x892   : > { %vm2545_vm2 = vmor %vm2543_vm14, %vm2544_vm10 }
 0x893   : > { %v2540_v50 = vsub.f32 1.0, %v2539_v28  ;;  %v2526_v33 = vsel %vm2525_vm1, %v3886_v43, %v2522_v31 }
 0x894   : > { %v2531_v48 = vsel %vm2528_vm13, %v2530_v57, %v2526_v33 }
 0x895   : > { %v2541_v32 = vmul.f32 %v3888_v46, %v2540_v50  ;;  %v2553_v29 = vmul.f32 %v2531_v48, %v2510_v61 }
 0x897   : > { %v2542_v53 = vadd.f32 %v3888_v46, %v2541_v32  ;;  %v2554_v3 = vadd.f32 %v2553_v29, %v1994_v19  ;;  %v5624_v32 = vld [vmem:[#allocation13_spill] sm:$0xff] }
 0x898   : > { %v1997_v21 = vadd.f32 %v5624_v32, %v5229_v4 }
 0x899   : > { %v2546_v49 = vsel %vm2545_vm2, %v3888_v46, %v2542_v53  ;;  %3889 = vtanh.f32 %v2554_v3 }
 0x89a   : > { %v2551_v20 = vsel %vm2548_vm4, %v2550_v23, %v2546_v49 }
 0x89b   : > { %v2556_v52 = vsub.f32 1.0, %v2551_v20  ;;  %v2558_v1 = vmul.f32 %v2551_v20, %v5347_v15 }
 0x89f   : > { %v3890_v22 = vpop.eup %3889 }
 0x8a0   : > { %v2557_v39 = vmul.f32 %v3890_v22, %v2556_v52 }
 0x8a2   : > { %v2559_v40 = vadd.f32 %v2558_v1, %v2557_v39 }
 0x8a4   : > { %v5388_v43 = vsel %vm1306_vm3, %v2559_v40, %v5347_v15 }
 0x8a5   : > { %v2564_v36 = vpack.c.bf16 %v5388_v43, %v5388_v43 }
 0x8a7   : > { %2573 = vmatmul.bf16.vlgmr.msra.gmra.mxu0 %v2564_v36  ;;  %2586 = vmatmul.bf16.vlgmr.msrb.gmra.mxu1 %v2564_v36 }
 0x8a8   : > { %2599 = vmatmul.bf16.vlgmr.msra.gmra.mxu2 %v2564_v36  ;;  %2773 = vmatpush.bf16.msra.mxu0 %v5062_v6 }
 0x8a9   : > { %2838 = vmatpush.bf16.msrb.mxu1 %v4741_v51  ;;  %2851 = vmatpush.bf16.msra.mxu2 %v4945_v2 }
 0x8ac   : > { %2774 = vmatpush.bf16.msra.mxu0 %v5075_v38 }
 0x8ad   : > { %2839 = vmatpush.bf16.msrb.mxu1 %v4750_v58  ;;  %2852 = vmatpush.bf16.msra.mxu2 %v4955_v10  ;;  %v1939_v58 = vadd.f32 %v5219_v13, %v5205_v12 }
 0x8b0   : > { %2775 = vmatpush.bf16.msra.mxu0 %v5087_v47 }
 0x8b1   : > { %2840 = vmatpush.bf16.msrb.mxu1 %v4759_v11  ;;  %2853 = vmatpush.bf16.msra.mxu2 %v4966_v44  ;;  %v1968_v11 = vadd.f32 %v5279_v54, %v5212_v17 }
 0x8b4   : > { %2776 = vmatpush.bf16.msra.mxu0 %v5097_v41 }
 0x8b5   : > { %2841 = vmatpush.bf16.msrb.mxu1 %v4772_v55  ;;  %2854 = vmatpush.bf16.msra.mxu2 %v4977_v18 }
 0x8b8   : > { %2777 = vmatpush.bf16.msra.mxu0 %v5111_v34 }
 0x8b9   : > { %2842 = vmatpush.bf16.msrb.mxu1 %v4802_v63  ;;  %2855 = vmatpush.bf16.msra.mxu2 %v4988_v14 }
 0x8bc   : > { %2778 = vmatpush.bf16.msra.mxu0 %v5126_v45 }
 0x8bd   : > { %2843 = vmatpush.bf16.msrb.mxu1 %v4817_v25  ;;  %2856 = vmatpush.bf16.msra.mxu2 %v5002_v9 }
 0x8c0   : > { %2779 = vmatpush.bf16.msra.mxu0 %v5143_v0 }
 0x8c1   : > { %2844 = vmatpush.bf16.msrb.mxu1 %v4840_v56  ;;  %2857 = vmatpush.bf16.msra.mxu2 %v5013_v27 }
 0x8c4   : > { %2780 = vmatpush.bf16.msra.mxu0 %v5154_v30 }
 0x8c5   : > { %2845 = vmatpush.bf16.msrb.mxu1 %v4868_v26  ;;  %2858 = vmatpush.bf16.msra.mxu2 %v5024_v8 }
 0x924   : > { %v2574_v42 = vpop.f32.mrf.mxu0  ;;  %v2587_v51 = vpop.f32.mrf.mxu1 }
 0x925   : > { %v2575_v55 = vadd.f32 %v2574_v42, %v5201_v7  ;;  %v2588_v63 = vadd.f32 %v2587_v51, %v5210_v37 }
 0x927   : > { %v2604_v25 = vadd.f32 %v2575_v55, %v1939_v58  ;;  %v2624_v56 = vadd.f32 %v2588_v63, %v1968_v11  ;;  %v5626_v58 = vld [vmem:[#allocation14_spill] sm:$0xff] }
 0x928   : > { %v1970_v11 = vadd.f32 %v5626_v58, %v5212_v17  ;;  %v5631_v58 = vld [vmem:[#allocation16_spill] sm:$0xff] }
 0x929   : > { %v3585_v2 = vmul.f32 -1.442695, %v2604_v25  ;;  %v3586_v10 = vmul.f32 -1.442695, %v2624_v56 }
 0x92b   : > { %3891 = vpow2.f32 %v3585_v2  ;;  %v2600_v26 = vpop.f32.mrf.mxu2 }
 0x92c   : > { %3893 = vpow2.f32 %v3586_v10  ;;  %v2576_v44 = vpop.f32.mrf.mxu0  ;;  %v2589_v18 = vpop.f32.mrf.mxu1  ;;  %v2601_v61 = vadd.f32 %v2600_v26, %v5227_v24 }
 0x931   : > { %v3892_v14 = vpop.eup %3891 }
 0x932   : > { %v3894_v9 = vpop.eup %3893  ;;  %v2608_v27 = vadd.f32 1.0, %v3892_v14 }
 0x933   : > { %v2628_v8 = vadd.f32 1.0, %v3894_v9  ;;  %v2602_v13 = vpop.f32.mrf.mxu2 }
 0x934   : > { %3895 = vrcp.f32 %v2608_v27  ;;  %v2620_v59 = vand.u32 2147483648, %v2608_v27  ;;  %v2618_v28 = vand.u32 2147483647, %v2608_v27  ;;  %vm2614_vm6 = vweird.f32 %v2608_v27 }
 0x935   : > { %3897 = vrcp.f32 %v2628_v8  ;;  %v2640_v29 = vand.u32 2147483648, %v2628_v8  ;;  %vm2634_vm9 = vweird.f32 %v2628_v8  ;;  %v2638_v53 = vand.u32 2147483647, %v2628_v8 }
 0x936   : > { %v2621_v50 = vor.u32 1.1754944e-38, %v2620_v59  ;;  %vm2619_vm8 = vcmp.eq.f32.partialorder %v2618_v28, 8.507059e+37 }
 0x937   : > { %v2641_v49 = vor.u32 1.1754944e-38, %v2640_v29  ;;  %vm2639_vm13 = vcmp.eq.f32.partialorder %v2638_v53, 8.507059e+37 }
 0x93a   : > { %v3896_v54 = vpop.eup %3895 }
 0x93b   : > { %v3898_v15 = vpop.eup %3897  ;;  %v2610_v35 = vmul.f32 %v3896_v54, %v2608_v27  ;;  %vm2615_vm3 = vweird.f32 %v3896_v54 }
 0x93c   : > { %v2630_v16 = vmul.f32 %v3898_v15, %v2628_v8  ;;  %vm2616_vm7 = vmor %vm2614_vm6, %vm2615_vm3  ;;  %vm2635_vm5 = vweird.f32 %v3898_v15 }
 0x93d   : > { %v2611_v5 = vsub.f32 1.0, %v2610_v35  ;;  %vm2636_vm1 = vmor %vm2634_vm9, %vm2635_vm5 }
 0x93e   : > { %v2631_v62 = vsub.f32 1.0, %v2630_v16 }
 0x93f   : > { %v2612_v46 = vmul.f32 %v3896_v54, %v2611_v5 }
 0x940   : > { %v2632_v31 = vmul.f32 %v3898_v15, %v2631_v62 }
 0x941   : > { %v2613_v57 = vadd.f32 %v3896_v54, %v2612_v46 }
 0x942   : > { %v2633_v48 = vadd.f32 %v3898_v15, %v2632_v31 }
 0x943   : > { %v2617_v33 = vsel %vm2616_vm7, %v3896_v54, %v2613_v57 }
 0x944   : > { %v2622_v19 = vsel %vm2619_vm8, %v2621_v50, %v2617_v33  ;;  %v2637_v23 = vsel %vm2636_vm1, %v3898_v15, %v2633_v48  ;;  %v5628_v50 = vld [vmem:[#allocation6_spill] sm:$0xff] }
 0x945   : > { %v2644_v60 = vmul.f32 %v2622_v19, %v2601_v61  ;;  %v2642_v20 = vsel %vm2639_vm13, %v2641_v49, %v2637_v23  ;;  %v1999_v61 = vadd.f32 %v5628_v50, %v5229_v4 }
 0x946   : > { %v2647_v52 = vsub.f32 1.0, %v2642_v20  ;;  %v2649_v1 = vmul.f32 %v2642_v20, %v5388_v43 }
 0x947   : > { %v2645_v3 = vadd.f32 %v2644_v60, %v1997_v21 }
 0x949   : > { %3899 = vtanh.f32 %v2645_v3 }
 0x94f   : > { %v3900_v22 = vpop.eup %3899 }
 0x950   : > { %v2648_v39 = vmul.f32 %v3900_v22, %v2647_v52  ;;  %v3746_v52 = vld [vmem:[%s5568_s11 + $0x28] sm:$0xff] }
 0x952   : > { %v2650_v40 = vadd.f32 %v2649_v1, %v2648_v39 }
 0x954   : > { %v5429_v42 = vsel %vm1408_vm0, %v2650_v40, %v5388_v43 }
 0x955   : > { %v2655_v51 = vpack.c.bf16 %v5429_v42, %v5429_v42 }
 0x957   : > { %2664 = vmatmul.bf16.vlgmr.msrb.gmra.mxu3 %v2655_v51  ;;  %2677 = vmatmul.bf16.vlgmr.msrb.gmra.mxu0 %v2655_v51 }
 0x958   : > { %2690 = vmatmul.bf16.vlgmr.msra.gmra.mxu1 %v2655_v51  ;;  %2864 = vmatpush.bf16.msrb.mxu3 %v5062_v6  ;;  %v5630_v51 = vld [vmem:[#allocation5_spill] sm:$0xff] }
 0x95c   : > { %2865 = vmatpush.bf16.msrb.mxu3 %v5075_v38 }
 0x960   : > { %2866 = vmatpush.bf16.msrb.mxu3 %v5087_v47 }
 0x964   : > { %2867 = vmatpush.bf16.msrb.mxu3 %v5097_v41  ;;  %v5627_v41 = vld [vmem:[#allocation11_spill] sm:$0xff] }
 0x965   : > { %v1941_v25 = vadd.f32 %v5627_v41, %v5205_v12 }
 0x968   : > { %2868 = vmatpush.bf16.msrb.mxu3 %v5111_v34 }
 0x96c   : > { %2869 = vmatpush.bf16.msrb.mxu3 %v5126_v45 }
 0x970   : > { %2870 = vmatpush.bf16.msrb.mxu3 %v5143_v0 }
 0x974   : > { %2871 = vmatpush.bf16.msrb.mxu3 %v5154_v30 }
 0x9d4   : > { %v2678_v43 = vpop.f32.mrf.mxu0 }
 0x9d5   : > { %v2679_v6 = vadd.f32 %v2678_v43, %v5210_v37  ;;  %v2691_v55 = vpop.f32.mrf.mxu1  ;;  %v1944_v43 = vadd.f32 %v5630_v51, %v5205_v12 }
 0x9d6   : > { %v2692_v46 = vadd.f32 %v2691_v55, %v5227_v24 }
 0x9d7   : > { %v2715_v38 = vadd.f32 %v2679_v6, %v1970_v11  ;;  %v1973_v11 = vadd.f32 %v5631_v58, %v5212_v17 }
 0x9d9   : > { %v3588_v63 = vmul.f32 -1.442695, %v2715_v38 }
 0x9da   : > { %v2665_v47 = vpop.f32.mrf.mxu3 }
 0x9db   : > { %3901 = vpow2.f32 %v3588_v63  ;;  %v2666_v34 = vadd.f32 %v2665_v47, %v5201_v7 }
 0x9dc   : > { %v2680_v45 = vpop.f32.mrf.mxu0 }
 0x9dd   : > { %v2695_v0 = vadd.f32 %v2666_v34, %v1941_v25  ;;  %v2693_v56 = vpop.f32.mrf.mxu1 }
 0x9df   : > { %v3587_v30 = vmul.f32 -1.442695, %v2695_v0 }
 0x9e1   : > { %v3902_v2 = vpop.eup %3901  ;;  %3903 = vpow2.f32 %v3587_v30 }
 0x9e2   : > { %v2719_v10 = vadd.f32 1.0, %v3902_v2  ;;  %v2667_v26 = vpop.f32.mrf.mxu3 }
 0x9e4   : > { %3905 = vrcp.f32 %v2719_v10  ;;  %v2731_v33 = vand.u32 2147483648, %v2719_v10  ;;  %vm2725_vm3 = vweird.f32 %v2719_v10  ;;  %v2729_v48 = vand.u32 2147483647, %v2719_v10 }
 0x9e6   : > { %v2732_v29 = vor.u32 1.1754944e-38, %v2731_v33  ;;  %vm2730_vm7 = vcmp.eq.f32.partialorder %v2729_v48, 8.507059e+37 }
 0x9e7   : > { %v3904_v44 = vpop.eup %3903 }
 0x9e8   : > { %v2699_v18 = vadd.f32 1.0, %v3904_v44 }
 0x9ea   : > { %3907 = vrcp.f32 %v2699_v18  ;;  %v3906_v14 = vpop.eup %3905  ;;  %v2711_v15 = vand.u32 2147483648, %v2699_v18  ;;  %v2709_v16 = vand.u32 2147483647, %v2699_v18  ;;  %vm2705_vm10 = vweird.f32 %v2699_v18 }
 0x9eb   : > { %v2721_v9 = vmul.f32 %v3906_v14, %v2719_v10  ;;  %vm2726_vm4 = vweird.f32 %v3906_v14 }
 0x9ec   : > { %v2712_v59 = vor.u32 1.1754944e-38, %v2711_v15  ;;  %vm2710_vm2 = vcmp.eq.f32.partialorder %v2709_v16, 8.507059e+37  ;;  %vm2727_vm6 = vmor %vm2725_vm3, %vm2726_vm4 }
 0x9ed   : > { %v2722_v13 = vsub.f32 1.0, %v2721_v9 }
 0x9ef   : > { %v2723_v5 = vmul.f32 %v3906_v14, %v2722_v13 }
 0x9f0   : > { %v3908_v27 = vpop.eup %3907 }
 0x9f1   : > { %v2701_v8 = vmul.f32 %v3908_v27, %v2699_v18  ;;  %vm2706_vm0 = vweird.f32 %v3908_v27  ;;  %v2724_v31 = vadd.f32 %v3906_v14, %v2723_v5 }
 0x9f2   : > { %vm2707_vm14 = vmor %vm2705_vm10, %vm2706_vm0 }
 0x9f3   : > { %v2702_v54 = vsub.f32 1.0, %v2701_v8  ;;  %v2728_v21 = vsel %vm2727_vm6, %v3906_v14, %v2724_v31 }
 0x9f4   : > { %v2733_v60 = vsel %vm2730_vm7, %v2732_v29, %v2728_v21 }
 0x9f5   : > { %v2703_v35 = vmul.f32 %v3908_v27, %v2702_v54  ;;  %v2738_v53 = vsub.f32 1.0, %v2733_v60  ;;  %v2740_v49 = vmul.f32 %v2733_v60, %v5429_v42 }
 0x9f7   : > { %v2704_v62 = vadd.f32 %v3908_v27, %v2703_v35 }
 0x9f9   : > { %v2708_v28 = vsel %vm2707_vm14, %v3908_v27, %v2704_v62  ;;  %vm2944_vm14 = vcmask 31744  }
 0x9fa   : > { %v2713_v57 = vsel %vm2710_vm2, %v2712_v59, %v2708_v28  ;;  %v5632_v59 = vld [vmem:[#allocation8_spill] sm:$0xff] }
 0x9fb   : > { %v2735_v19 = vmul.f32 %v2713_v57, %v2692_v46  ;;  %v2002_v46 = vadd.f32 %v5632_v59, %v5229_v4 }
 0x9fd   : > { %v2736_v32 = vadd.f32 %v2735_v19, %v1999_v61 }
 0x9ff   : > { %3909 = vtanh.f32 %v2736_v32 }
 0xa05   : > { %v3910_v3 = vpop.eup %3909 }
 0xa06   : > { %v2739_v23 = vmul.f32 %v3910_v3, %v2738_v53 }
 0xa08   : > { %v2741_v20 = vadd.f32 %v2740_v49, %v2739_v23  ;;  %v3748_v49 = vld [vmem:[%s5568_s11 + $0x38] sm:$0xff] }
 0xa09   : > { %3013 = vmatpush.bf16.msra.mxu1 %v3748_v49 }
 0xa0a   : > { %v5454_v22 = vsel %vm1510_vm12, %v2741_v20, %v5429_v42  ;;  %v3747_v20 = vld [vmem:[%s5568_s11 + $0x30] sm:$0xff] }
 0xa0b   : > { %v2746_v39 = vpack.c.bf16 %v5454_v22, %v5454_v22 }
 0xa0d   : > { %2755 = vmatmul.bf16.vlgmr.msrb.gmra.mxu2 %v2746_v39  ;;  %2768 = vmatmul.bf16.vlgmr.msra.gmra.mxu3 %v2746_v39 }
 0xa0e   : > { %2781 = vmatmul.bf16.vlgmr.msra.gmra.mxu0 %v2746_v39  ;;  %3014 = vmatpush.bf16.msra.mxu1 %v3747_v20  ;;  %v5634_v39 = vld [vmem:[#allocation12_spill] sm:$0xff] }
 0xa12   : > { %3015 = vmatpush.bf16.msra.mxu1 %v3746_v52 }
 0xa8b   : > { %v2782_v1 = vpop.f32.mrf.mxu0 }
 0xa8c   : > { %v2783_v35 = vadd.f32 %v2782_v1, %v5227_v24  ;;  %v1946_v1 = vadd.f32 %v5634_v39, %v5205_v12 }
 0xa90   : > { %v2756_v40 = vpop.f32.mrf.mxu2  ;;  %v2769_v36 = vpop.f32.mrf.mxu3 }
 0xa91   : > { %v2757_v6 = vadd.f32 %v2756_v40, %v5201_v7  ;;  %v2770_v42 = vadd.f32 %v2769_v36, %v5210_v37  ;;  %v3745_v36 = vld [vmem:[%s5568_s11 + $0x20] sm:$0xff] }
 0xa92   : > { %3016 = vmatpush.bf16.msra.mxu1 %v3745_v36 }
 0xa93   : > { %v2786_v55 = vadd.f32 %v2757_v6, %v1944_v43  ;;  %v2806_v38 = vadd.f32 %v2770_v42, %v1973_v11  ;;  %v2784_v63 = vpop.f32.mrf.mxu0  ;;  %v3744_v11 = vld [vmem:[%s5568_s11 + $0x18] sm:$0xff]  ;;  %v5635_v6 = vld [vmem:[#allocation18_spill] sm:$0xff] }
 0xa94   : > { %v1975_v42 = vadd.f32 %v5635_v6, %v5212_v17  ;;  %v2943_v63 = vld [vmem:[%s5569_s12] sm:$0x3] }
 0xa95   : > { %v3589_v47 = vmul.f32 -1.442695, %v2786_v55  ;;  %v3590_v41 = vmul.f32 -1.442695, %v2806_v38 }
 0xa96   : > { %3017 = vmatpush.bf16.msra.mxu1 %v3744_v11 }
 0xa97   : > { %3911 = vpow2.f32 %v3589_v47  ;;  %v3743_v47 = vld [vmem:[%s5568_s11 + $0x10] sm:$0xff] }
 0xa98   : > { %3913 = vpow2.f32 %v3590_v41  ;;  %v2758_v25 = vpop.f32.mrf.mxu2  ;;  %v2771_v34 = vpop.f32.mrf.mxu3 }
 0xa9a   : > { %3018 = vmatpush.bf16.msra.mxu1 %v3743_v47 }
 0xa9d   : > { %v3912_v45 = vpop.eup %3911 }
 0xa9e   : > { %v3914_v0 = vpop.eup %3913  ;;  %v2790_v56 = vadd.f32 1.0, %v3912_v45  ;;  %v2942_v45 = vld [vmem:[%s549_s24] sm:$0xf] }
 0xa9f   : > { %v2810_v30 = vadd.f32 1.0, %v3914_v0  ;;  %v3742_v0 = vld [vmem:[%s5568_s11 + $0x8] sm:$0xff] }
 0xaa0   : > { %3915 = vrcp.f32 %v2790_v56  ;;  %v2802_v14 = vand.u32 2147483648, %v2790_v56  ;;  %v2800_v8 = vand.u32 2147483647, %v2790_v56  ;;  %vm2796_vm8 = vweird.f32 %v2790_v56  ;;  %3019 = vmatpush.bf16.msra.mxu1 %v3742_v0 }
 0xaa1   : > { %3917 = vrcp.f32 %v2810_v30  ;;  %v2822_v31 = vand.u32 2147483648, %v2810_v30  ;;  %vm2816_vm13 = vweird.f32 %v2810_v30  ;;  %v2820_v57 = vand.u32 2147483647, %v2810_v30 }
 0xaa2   : > { %v2803_v15 = vor.u32 1.1754944e-38, %v2802_v14  ;;  %vm2801_vm9 = vcmp.eq.f32.partialorder %v2800_v8, 8.507059e+37 }
 0xaa3   : > { %v2823_v33 = vor.u32 1.1754944e-38, %v2822_v31  ;;  %vm2821_vm10 = vcmp.eq.f32.partialorder %v2820_v57, 8.507059e+37  ;;  %v5636_v31 = vld [vmem:[#allocation17_spill] sm:$0xff] }
 0xaa4   : > { %v2004_v57 = vadd.f32 %v5636_v31, %v5229_v4 }
 0xaa6   : > { %v3916_v2 = vpop.eup %3915 }
 0xaa7   : > { %v3918_v10 = vpop.eup %3917  ;;  %v2792_v26 = vmul.f32 %v3916_v2, %v2790_v56  ;;  %vm2797_vm12 = vweird.f32 %v3916_v2 }
 0xaa8   : > { %v2812_v44 = vmul.f32 %v3918_v10, %v2810_v30  ;;  %vm2798_vm5 = vmor %vm2796_vm8, %vm2797_vm12  ;;  %vm2817_vm1 = vweird.f32 %v3918_v10  ;;  %v3741_v30 = vld [vmem:[%s5568_s11] sm:$0xff] }
 0xaa9   : > { %v2793_v18 = vsub.f32 1.0, %v2792_v26  ;;  %vm2818_vm0 = vmor %vm2816_vm13, %vm2817_vm1  ;;  %3020 = vmatpush.bf16.msra.mxu1 %v3741_v30 }
 0xaaa   : > { %v2813_v9 = vsub.f32 1.0, %v2812_v44  ;;  %v3755_v44 = vld [vmem:[%s5571_s14 + $0x30] sm:$0xff] }
 0xaab   : > { %v2794_v27 = vmul.f32 %v3916_v2, %v2793_v18 }
 0xaac   : > { %v2814_v13 = vmul.f32 %v3918_v10, %v2813_v9 }
 0xaad   : > { %v2795_v54 = vadd.f32 %v3916_v2, %v2794_v27  ;;  %v3754_v27 = vld [vmem:[%s5571_s14 + $0x28] sm:$0xff] }
 0xaae   : > { %v2815_v62 = vadd.f32 %v3918_v10, %v2814_v13 }
 0xaaf   : > { %v2799_v16 = vsel %vm2798_vm5, %v3916_v2, %v2795_v54 }
 0xab0   : > { %v2804_v5 = vsel %vm2801_vm9, %v2803_v15, %v2799_v16  ;;  %v2819_v61 = vsel %vm2818_vm0, %v3918_v10, %v2815_v62  ;;  %v3756_v10 = vld [vmem:[%s5571_s14 + $0x38] sm:$0xff] }
 0xab1   : > { %v2826_v28 = vmul.f32 %v2804_v5, %v2783_v35  ;;  %v2824_v19 = vsel %vm2821_vm10, %v2823_v33, %v2819_v61  ;;  %3103 = vmatpush.bf16.msrb.mxu2 %v3756_v10  ;;  %v3753_v5 = vld [vmem:[%s5571_s14 + $0x20] sm:$0xff] }
 0xab2   : > { %v2829_v48 = vsub.f32 1.0, %v2824_v19  ;;  %v2831_v29 = vmul.f32 %v2824_v19, %v5454_v22 }
 0xab3   : > { %v2827_v50 = vadd.f32 %v2826_v28, %v2002_v46 }
 0xab5   : > { %3919 = vtanh.f32 %v2827_v50  ;;  %3104 = vmatpush.bf16.msrb.mxu2 %v3755_v44 }
 0xab9   : > { %3105 = vmatpush.bf16.msrb.mxu2 %v3754_v27 }
 0xabb   : > { %v3920_v32 = vpop.eup %3919 }
 0xabc   : > { %v2830_v21 = vmul.f32 %v3920_v32, %v2829_v48 }
 0xabd   : > { %3106 = vmatpush.bf16.msrb.mxu2 %v3753_v5 }
 0xabe   : > { %v2832_v60 = vadd.f32 %v2831_v29, %v2830_v21 }
 0xac0   : > { %v5471_v3 = vsel %vm1612_vm11, %v2832_v60, %v5454_v22  ;;  %vm2948_vm11 = vcmask 1041408  }
 0xac1   : > { %v2837_v23 = vpack.c.bf16 %v5471_v3, %v5471_v3  ;;  %v2950_v25 = vsel %vm2948_vm11, %v2943_v63, 0  ;;  %v3770_v63 = vld [vmem:[%s5572_s15] ss:$0 sm:$0xff] }
 0xac2   : > { %2959 = vmatpush.bf16.msrb.mxu0 %v2950_v25 }
 0xac3   : > { %2846 = vmatmul.bf16.vlgmr.msrb.gmra.mxu1 %v2837_v23  ;;  %2859 = vmatmul.bf16.vlgmr.msra.gmra.mxu2 %v2837_v23 }
 0xac4   : > { %2872 = vmatmul.bf16.vlgmr.msrb.gmra.mxu3 %v2837_v23 }
 0xac5   : > { %3593 = vmatmul.msk.bf16.vlgmr.msrb.gmra.mxu0 %vm2944_vm14, %v2942_v45 }
 0xb40   : > { %v2847_v22 = vpop.f32.mrf.mxu1 }
 0xb41   : > { %v2848_v40 = vadd.f32 %v2847_v22, %v5201_v7 }
 0xb42   : > { %v2961_v36 = vpop.f32.mrf.mxu0 }
 0xb43   : > { %v2877_v51 = vadd.f32 %v2848_v40, %v1946_v1  ;;  %v3752_v1 = vld [vmem:[%s5571_s14 + $0x18] sm:$0xff]  ;;  %v3751_v40 = vld [vmem:[%s5571_s14 + $0x10] sm:$0xff] }
 0xb44   : > { %3107 = vmatpush.bf16.msrb.mxu2 %v3752_v1 }
 0xb45   : > { %v3591_v43 = vmul.f32 -1.442695, %v2877_v51 }
 0xb46   : > { %v2860_v58 = vpop.f32.mrf.mxu2 }
 0xb47   : > { %3921 = vpow2.f32 %v3591_v43  ;;  %v2861_v12 = vadd.f32 %v2860_v58, %v5210_v37  ;;  %v2873_v55 = vpop.f32.mrf.mxu3  ;;  %v3750_v43 = vld [vmem:[%s5571_s14 + $0x8] sm:$0xff]  ;;  %v3769_v58 = vld [vmem:[%s5570_s13] ss:$0 sm:$0xff] }
 0xb48   : > { %v2849_v7 = vpop.f32.mrf.mxu1  ;;  %v2874_v46 = vadd.f32 %v2873_v55, %v5227_v24  ;;  %3108 = vmatpush.bf16.msrb.mxu2 %v3751_v40 }
 0xb49   : > { %v2897_v38 = vadd.f32 %v2861_v12, %v1975_v42 }
 0xb4a   : > { %v2963_v51 = vpop.f32.mrf.mxu0 }
 0xb4b   : > { %v3592_v41 = vmul.f32 -1.442695, %v2897_v38 }
 0xb4c   : > { %3109 = vmatpush.bf16.msrb.mxu2 %v3750_v43 }
 0xb4d   : > { %v3922_v37 = vpop.eup %3921  ;;  %3923 = vpow2.f32 %v3592_v41 }
 0xb4e   : > { %v2881_v17 = vadd.f32 1.0, %v3922_v37  ;;  %v2862_v34 = vpop.f32.mrf.mxu2 }
 0xb4f   : > { %v2875_v56 = vpop.f32.mrf.mxu3 }
 0xb50   : > { %3925 = vrcp.f32 %v2881_v17  ;;  %v2893_v8 = vand.u32 2147483648, %v2881_v17  ;;  %v2891_v54 = vand.u32 2147483647, %v2881_v17  ;;  %vm2887_vm4 = vweird.f32 %v2881_v17 }
 0xb52   : > { %v2894_v62 = vor.u32 1.1754944e-38, %v2893_v8  ;;  %vm2892_vm6 = vcmp.eq.f32.partialorder %v2891_v54, 8.507059e+37 }
 0xb53   : > { %v3924_v2 = vpop.eup %3923 }
 0xb54   : > { %v2901_v26 = vadd.f32 1.0, %v3924_v2 }
 0xb56   : > { %v3926_v18 = vpop.eup %3925  ;;  %3927 = vrcp.f32 %v2901_v26  ;;  %v2913_v33 = vand.u32 2147483648, %v2901_v26  ;;  %v2911_v48 = vand.u32 2147483647, %v2901_v26  ;;  %vm2907_vm12 = vweird.f32 %v2901_v26 }
 0xb57   : > { %v2883_v14 = vmul.f32 %v3926_v18, %v2881_v17  ;;  %vm2888_vm2 = vweird.f32 %v3926_v18 }
 0xb58   : > { %vm2889_vm3 = vmor %vm2887_vm4, %vm2888_vm2  ;;  %v2914_v29 = vor.u32 1.1754944e-38, %v2913_v33  ;;  %vm2912_vm5 = vcmp.eq.f32.partialorder %v2911_v48, 8.507059e+37 }
 0xb59   : > { %v2884_v9 = vsub.f32 1.0, %v2883_v14 }
 0xb5b   : > { %v2885_v13 = vmul.f32 %v3926_v18, %v2884_v9 }
 0xb5c   : > { %v3928_v15 = vpop.eup %3927 }
 0xb5d   : > { %v2903_v35 = vmul.f32 %v3928_v15, %v2901_v26  ;;  %v2886_v16 = vadd.f32 %v3926_v18, %v2885_v13  ;;  %vm2908_vm7 = vweird.f32 %v3928_v15 }
 0xb5e   : > { %vm2909_vm8 = vmor %vm2907_vm12, %vm2908_vm7 }
 0xb5f   : > { %v2904_v59 = vsub.f32 1.0, %v2903_v35  ;;  %v2890_v28 = vsel %vm2889_vm3, %v3926_v18, %v2886_v16 }
 0xb60   : > { %v2895_v50 = vsel %vm2892_vm6, %v2894_v62, %v2890_v28 }
 0xb61   : > { %v2905_v61 = vmul.f32 %v3928_v15, %v2904_v59  ;;  %v2917_v19 = vmul.f32 %v2895_v50, %v2874_v46 }
 0xb63   : > { %v2906_v32 = vadd.f32 %v3928_v15, %v2905_v61  ;;  %v2918_v21 = vadd.f32 %v2917_v19, %v2004_v57 }
 0xb65   : > { %v2910_v60 = vsel %vm2909_vm8, %v3928_v15, %v2906_v32  ;;  %3929 = vtanh.f32 %v2918_v21 }
 0xb66   : > { %v2915_v24 = vsel %vm2912_vm5, %v2914_v29, %v2910_v60 }
 0xb67   : > { %v2920_v53 = vsub.f32 1.0, %v2915_v24  ;;  %v2922_v4 = vmul.f32 %v2915_v24, %v5471_v3 }
 0xb6b   : > { %v3930_v23 = vpop.eup %3929 }
 0xb6c   : > { %v2921_v49 = vmul.f32 %v3930_v23, %v2920_v53 }
 0xb6e   : > { %v2923_v20 = vadd.f32 %v2922_v4, %v2921_v49 }
 0xb70   : > { %v2924_v22 = vsel %vm1714_vm15, %v2923_v20, %v5471_v3  ;;  %v3749_v3 = vld [vmem:[%s5571_s14] sm:$0xff] }
 0xb71   : > { %v2925_v39 = vpack.c.bf16 %v2924_v22, %v2924_v22  ;;  %3110 = vmatpush.bf16.msrb.mxu2 %v3749_v3 }
 0xb73   : > { %3021 = vmatmul.bf16.vlgmr.msra.gmra.mxu1 %v2925_v39 }
 0xbf0   : > { %v3022_v11 = vpop.f32.mrf.mxu1 }
 0xbf1   : > { %v3023_v6 = vadd.f32 %v3022_v11, %v2961_v36 }
 0xbf3   : > { %v3030_v42 = vadd.f32 %v3769_v58, %v3023_v6 }
 0xbf5   : > { %vm3031_vm15 = vcmp.gt.f32.partialorder %v3030_v42, 0.0  ;;  %v3032_v12 = vmul.f32 0.1, %v3030_v42 }
 0xbf7   : > { %v3033_v55 = vsel %vm3031_vm15, %v3030_v42, %v3032_v12 }
 0xbf8   : > { %v3034_v7 = vpack.c.bf16 %v3033_v55, %v3033_v55  ;;  %v3024_v38 = vpop.f32.mrf.mxu1 }
 0xbfa   : > { %3111 = vmatmul.bf16.vlgmr.msrb.gmra.mxu2 %v3034_v7 }
 0xc7d   : > { %v3112_v47 = vpop.f32.mrf.mxu2 }
 0xc7e   : > { %v3113_v41 = vadd.f32 %v3770_v63, %v3112_v47 }
 0xc80   : > { %3116 = vst [vmem:[%s553_s27] sm:$0xff] %v3113_v41 }
 0xc85   : > { %v3114_v25 = vpop.f32.mrf.mxu2 }
 0xc86 PF: > { %s26_s21 = sadd.s32 1, %s3937_s21  }
 0xc87   : > { %p23_p4 = scmp.ge.s32.totalorder %s26_s21, 4  }
 0xc89   :  { %25 = sbr.rel (!%p23_p4) target bundleno = 2 (0x2), region = 135 }

</bundles_post_ra>
